<compile_context>
chip_gen: v5e
topology: v5e:2x2
jax: 0.10.0
libtpu: 0.0.40
codegen_flags: <defaults>
</compile_context>

<pallas_src>
import functools

import jax
import jax.numpy as jnp
from jax.experimental import pallas as pl
from jax.experimental.pallas import tpu as pltpu


def _round_up(n, m):
    return ((n + m - 1) // m) * m


# ------------------------------------------------------------------ MLP + KS1 kernel
def _mlp_kernel(x_ref, w0, b0, w1, b1, w2, b2, w3, b3, wo, bo, knot_ref,
                *, tmin_col, tmax_col):
    # x_ref: (tb, inputSize) f32; w*: f32 (in, out); b*: f32 (1, out);
    # wo: f32 (1, hidden); bo: f32 (1, 1); knot_ref: (1, tb) f32 (lane-dense row).
    x = x_ref[...]

    h = jnp.maximum(jnp.dot(x, w0[...], preferred_element_type=jnp.float32) + b0[...], 0.0)
    h = jnp.maximum(jnp.dot(h, w1[...], preferred_element_type=jnp.float32) + b1[...], 0.0)
    # dropout1 (p=0.2): identity in eval/inference mode
    h = jnp.maximum(jnp.dot(h, w2[...], preferred_element_type=jnp.float32) + b2[...], 0.0)
    # dropout2 (p=0.2): identity in eval/inference mode
    h = jnp.maximum(jnp.dot(h, w3[...], preferred_element_type=jnp.float32) + b3[...], 0.0)
    # dropout3 (p=0.2): identity in eval/inference mode

    # Output layer (hidden -> 1): VPU multiply + cross-lane reduce (no N=1 MXU matmul).
    y = jnp.sum(h * wo[...], axis=-1, keepdims=True) + bo[...]          # (tb, 1)

    # sigmoid = 1 / (1 + exp(-y)): exp on EUP, reciprocal kept off the VALU divide path.
    y = pl.reciprocal(1.0 + jnp.exp(-y), approx=False)

    # KS1. Threshold layer.  tmin = t[:,1], tmax = t[:,-2] are static columns of the
    # already-resident x tile -> slice in-kernel instead of shipping extra 1-lane operands.
    tmin = x[:, tmin_col:tmin_col + 1]
    tmax = x[:, tmax_col:tmax_col + 1]
    eps = 1e-5
    y = jnp.where(y < tmin, tmin + eps, jnp.where(y > tmax, tmax - eps, y))

    # Lane-dense store: (tb, 1) column -> (1, tb) row (single XLU transpose).
    knot_ref[...] = jnp.transpose(y)


def _mlp_reference(x, params, tmin_col, tmax_col):
    """Plain-jnp MLP + KS1 (used as the small-batch fallback and for verification)."""
    w0, b0, w1, b1, w2, b2, w3, b3, wo, bo = params
    h = jax.nn.relu(x @ w0 + b0)
    h = jax.nn.relu(h @ w1 + b1)
    h = jax.nn.relu(h @ w2 + b2)
    h = jax.nn.relu(h @ w3 + b3)
    y = jnp.sum(h * wo, axis=-1, keepdims=True) + bo
    y = jax.nn.sigmoid(y)
    tmin = x[:, tmin_col:tmin_col + 1]
    tmax = x[:, tmax_col:tmax_col + 1]
    eps = 1e-5
    return jnp.where(y < tmin, tmin + eps, jnp.where(y > tmax, tmax - eps, y))


def mlp_forward(x, params, *, tmin_col, tmax_col, tile_b=1024, min_pallas_batch=256):
    """Batch-tiled MLP + KS1 with resident weights; returns knot of shape (B, 1)."""
    B, F = x.shape

    # Small-batch fallback: the custom-call boundary + weight DMA outweighs the compute
    # and prevents XLA from fusing the MLP with the downstream spline ops.
    if B < min_pallas_batch:
        return _mlp_reference(x, params, tmin_col, tmax_col)

    # Tile choice: as large as possible (grid-step amortization) but capped at ceil(B/2)
    # rounded to 128 so the "parallel" batch axis has >=2 steps (both TCs on v7x).
    # tb is a multiple of 128 so the lane-dense (1, tb) output block is unmasked.
    half = _round_up(-(-B // 2), 128)
    tb = max(128, min(tile_b, half))
    Bp = _round_up(B, tb)
    if Bp != B:
        x = jnp.pad(x, ((0, Bp - B), (0, 0)))

    kernel = functools.partial(_mlp_kernel, tmin_col=tmin_col, tmax_col=tmax_col)

    in_specs = (
        [pl.BlockSpec((tb, F), lambda i: (i, 0))]
        # Constant index_map -> weights/biases stay resident across batch tiles.
        + [pl.BlockSpec(p.shape, lambda i: (0, 0)) for p in params]
    )

    out = pl.pallas_call(
        kernel,
        out_shape=jax.ShapeDtypeStruct((1, Bp), jnp.float32),
        grid=(Bp // tb,),
        in_specs=in_specs,
        out_specs=pl.BlockSpec((1, tb), lambda i: (0, i)),   # lane-dense output row
        compiler_params=pltpu.CompilerParams(dimension_semantics=("parallel",)),
    )(x, *params)

    return out[0, :B][:, None]                                # back to (B, 1)


# ------------------------------------------------------------------ B-spline glue (plain JAX)
def bspline_basis(knots, u, k):
    """Clamped Cox-de-Boor basis. knots: (B, nk), u: (B, m) -> (B, m, nk-k-1)."""
    # TODO(synk): NDPWithBatch3 is external to the provided module; implemented as the
    # standard clamped Cox-de-Boor recursion (boundary handling may differ from the reference).
    nk = knots.shape[1]
    U = knots[:, None, :]                                     # (B, 1, nk)
    uu = u[:, :, None]                                        # (B, m, 1)
    N = ((uu >= U[..., :-1]) & (uu < U[..., 1:])).astype(jnp.float32)   # degree 0
    at_end = (u >= knots[:, -1:])                             # u == last knot -> last span
    last_span = jnp.zeros((nk - 1,), jnp.float32).at[nk - k - 2].set(1.0)
    N = jnp.where(at_end[:, :, None], last_span, N)
    for d in range(1, k + 1):
        left_den = U[..., d:-1] - U[..., :-(d + 1)]
        right_den = U[..., d + 1:] - U[..., 1:-d]
        left = jnp.where(left_den > 0,
                         (uu - U[..., :-(d + 1)]) / jnp.where(left_den > 0, left_den, 1.0), 0.0)
        right = jnp.where(right_den > 0,
                          (U[..., d + 1:] - uu) / jnp.where(right_den > 0, right_den, 1.0), 0.0)
        N = left * N[..., :-1] + right * N[..., 1:]
    return N


def compute_control_points(A, Q):
    # TODO(synk): computeControlPointsWithBatch2 is external to the provided module; stand-in is
    # batched regularized normal-equations least squares (no Pallas equivalent for the solve).
    AtA = jnp.einsum("bmn,bmq->bnq", A, A)
    AtQ = jnp.einsum("bmn,bmp->bnp", A, Q)
    reg = 1e-6 * jnp.eye(AtA.shape[-1], dtype=AtA.dtype)
    return jnp.linalg.solve(AtA + reg, AtQ)


# ------------------------------------------------------------------ full forward
def knot_placement_forward(x, params, *, input_size, p, k):
    d = p + 1
    l = input_size // d
    B = x.shape[0]

    flatcurves = x[:, :input_size - l]                        # (B, p*l)
    t = x[:, input_size - l:]                                 # (B, l)
    curves = jnp.transpose(flatcurves.reshape(B, p, l), (0, 2, 1))   # (B, l, p)

    # MLP + KS1 threshold layer (single batch-tiled Pallas kernel; tmin/tmax come from
    # static columns of x inside the kernel).
    tmin_col = input_size - l + 1      # column of t[:, 1]
    tmax_col = input_size - 2          # column of t[:, -2]
    knot = mlp_forward(x, params, tmin_col=tmin_col, tmax_col=tmax_col)   # (B, 1)

    # KS2. Approximation layer (plain JAX / XLA so it fuses; shapes are tiny).
    zeros = jnp.zeros((B, k + 1), jnp.float32)
    ones = jnp.ones((B, k + 1), jnp.float32)
    xknots = jnp.concatenate([zeros, knot, ones], axis=1)     # (B, 2k+3)

    A = bspline_basis(xknots, t[:, 1:-1], k)                  # (B, l-2, k+2)
    c = compute_control_points(A, curves[:, 1:-1])            # (B, k+2, p)
    # Interior spline evaluation: ~140-MAC batched matmul; left to XLA (no per-batch
    # Pallas grid steps, fuses with the basis / solve ops).
    interior = jnp.einsum("bmn,bnp->bmp", A, c)               # (B, l-2, p)

    splines = jnp.concatenate([curves[:, :1], interior, curves[:, -1:]], axis=1)
    return splines, t, curves, xknots, knot


# ------------------------------------------------------------------ deterministic params
def init_params(key, input_size, hidden_size):
    """All-f32 parameters (PyTorch Linear default-init style).  Output layer stored as a
    (1, hidden) row for the in-kernel VPU reduction."""
    sizes = [(input_size, hidden_size), (hidden_size, hidden_size),
             (hidden_size, hidden_size), (hidden_size, hidden_size)]
    params = []
    for fi, fo in sizes:
        key, kw, kb = jax.random.split(key, 3)
        bound = 1.0 / (fi ** 0.5)
        W = jax.random.uniform(kw, (fi, fo), jnp.float32, -bound, bound)
        b = jax.random.uniform(kb, (1, fo), jnp.float32, -bound, bound)
        params += [W, b]
    key, kw, kb = jax.random.split(key, 3)
    bound = 1.0 / (hidden_size ** 0.5)
    wo = jax.random.uniform(kw, (1, hidden_size), jnp.float32, -bound, bound)
    bo = jax.random.uniform(kb, (1, 1), jnp.float32, -bound, bound)
    params += [wo, bo]
    return tuple(params)


# ------------------------------------------------------------------ main
if __name__ == "__main__":
    # Small model shapes consistent with the module structure (inputSize = (p+1) * l).
    INPUT_SIZE, HIDDEN_SIZE, P, K = 48, 64, 2, 3
    D = P + 1
    L = INPUT_SIZE // D

    key = jax.random.PRNGKey(0)
    kp, kc, kt = jax.random.split(key, 3)
    params = init_params(kp, INPUT_SIZE, HIDDEN_SIZE)

    fwd = jax.jit(functools.partial(knot_placement_forward,
                                    input_size=INPUT_SIZE, p=P, k=K))

    def make_inputs(key_c, key_t, batch):
        # curves: values in [0,1]; t: monotonically increasing parameterization in [0,1].
        flatcurves = jax.random.uniform(key_c, (batch, P * L), jnp.float32)
        raw_t = jnp.sort(jax.random.uniform(key_t, (batch, L), jnp.float32), axis=1)
        t = (raw_t - raw_t[:, :1]) / (raw_t[:, -1:] - raw_t[:, :1])
        return jnp.concatenate([flatcurves, t], axis=1)      # (batch, INPUT_SIZE)

    # ---- Batch large enough to take the Pallas path (2 grid steps of 256 rows). ----
    B_BIG = 512
    x_big = make_inputs(kc, kt, B_BIG)
    splines, t_out, curves, xknots, knot = fwd(x_big, params)
    jax.block_until_ready((splines, t_out, curves, xknots, knot))

    assert splines.shape == (B_BIG, L, P)
    assert t_out.shape == (B_BIG, L)
    assert curves.shape == (B_BIG, L, P)
    assert xknots.shape == (B_BIG, 2 * (K + 1) + 1)
    assert knot.shape == (B_BIG, 1)
    assert bool(jnp.all(jnp.isfinite(splines)))

    # Cross-check the Pallas MLP+KS1 against the plain-jnp reference.
    knot_ref = _mlp_reference(x_big, params, INPUT_SIZE - L + 1, INPUT_SIZE - 2)
    max_err = float(jnp.max(jnp.abs(knot - knot_ref)))
    assert max_err < 2e-2, f"knot mismatch vs jnp reference: {max_err}"

    # ---- Tiny batch exercises the plain-jnp fallback path. ----
    kc2, kt2 = jax.random.split(jax.random.PRNGKey(1))
    x_small = make_inputs(kc2, kt2, 4)
    outs_small = fwd(x_small, params)
    jax.block_until_ready(outs_small)
    assert outs_small[0].shape == (4, L, P)
    assert bool(jnp.all(jnp.isfinite(outs_small[0])))

    print("KERNEL_OK")
</pallas_src>

<mosaic_0001>
module attributes {stable_mosaic.version = 11 : i64} {
  func.func @_mlp_kernel(%arg0: i32, %arg1: memref<256x48xf32, #tpu.memory_space<vmem>>, %arg2: memref<48x64xf32, #tpu.memory_space<vmem>>, %arg3: memref<1x64xf32, #tpu.memory_space<vmem>>, %arg4: memref<64x64xf32, #tpu.memory_space<vmem>>, %arg5: memref<1x64xf32, #tpu.memory_space<vmem>>, %arg6: memref<64x64xf32, #tpu.memory_space<vmem>>, %arg7: memref<1x64xf32, #tpu.memory_space<vmem>>, %arg8: memref<64x64xf32, #tpu.memory_space<vmem>>, %arg9: memref<1x64xf32, #tpu.memory_space<vmem>>, %arg10: memref<1x64xf32, #tpu.memory_space<vmem>>, %arg11: memref<1x1xf32, #tpu.memory_space<vmem>>, %arg12: memref<1x256xf32, #tpu.memory_space<vmem>>) attributes {dimension_semantics = [#tpu.dimension_semantics<parallel>], iteration_bounds = array<i64: 2>, scalar_prefetch = 0 : i64, scratch_operands = 0 : i64, tpu.core_type = #tpu.core_type<tc>, window_params = [{transform_indices = @transform_0, window_bounds = array<i64: 256, 48>}, {pipeline_mode = #tpu.pipeline_mode<synchronous>, transform_indices = @transform_1, window_bounds = array<i64: 48, 64>}, {pipeline_mode = #tpu.pipeline_mode<synchronous>, transform_indices = @transform_2, window_bounds = array<i64: 1, 64>}, {pipeline_mode = #tpu.pipeline_mode<synchronous>, transform_indices = @transform_3, window_bounds = array<i64: 64, 64>}, {pipeline_mode = #tpu.pipeline_mode<synchronous>, transform_indices = @transform_4, window_bounds = array<i64: 1, 64>}, {pipeline_mode = #tpu.pipeline_mode<synchronous>, transform_indices = @transform_5, window_bounds = array<i64: 64, 64>}, {pipeline_mode = #tpu.pipeline_mode<synchronous>, transform_indices = @transform_6, window_bounds = array<i64: 1, 64>}, {pipeline_mode = #tpu.pipeline_mode<synchronous>, transform_indices = @transform_7, window_bounds = array<i64: 64, 64>}, {pipeline_mode = #tpu.pipeline_mode<synchronous>, transform_indices = @transform_8, window_bounds = array<i64: 1, 64>}, {pipeline_mode = #tpu.pipeline_mode<synchronous>, transform_indices = @transform_9, window_bounds = array<i64: 1, 64>}, {pipeline_mode = #tpu.pipeline_mode<synchronous>, transform_indices = @transform_10, window_bounds = array<i64: 1, 1>}, {transform_indices = @transform_11, window_bounds = array<i64: 1, 256>}]} {
    %c0 = arith.constant 0 : index
    %c0_0 = arith.constant 0 : index
    %0 = vector.load %arg1[%c0, %c0_0] : memref<256x48xf32, #tpu.memory_space<vmem>>, vector<256x48xf32>
    %c0_1 = arith.constant 0 : index
    %c0_2 = arith.constant 0 : index
    %1 = vector.load %arg2[%c0_1, %c0_2] : memref<48x64xf32, #tpu.memory_space<vmem>>, vector<48x64xf32>
    %cst = arith.constant dense<0.000000e+00> : vector<256x64xf32>
    %2 = tpu.matmul %0, %1, %cst {dimension_numbers = #tpu.dot_dimension_numbers<[1], [0], [0], [1], [0, 0, 1, 1], [], []>} : vector<256x48xf32>, vector<48x64xf32>, vector<256x64xf32> -> vector<256x64xf32>
    %c0_3 = arith.constant 0 : index
    %c0_4 = arith.constant 0 : index
    %3 = vector.load %arg3[%c0_3, %c0_4] : memref<1x64xf32, #tpu.memory_space<vmem>>, vector<1x64xf32>
    %4 = vector.broadcast %3 : vector<1x64xf32> to vector<256x64xf32>
    %5 = arith.addf %2, %4 : vector<256x64xf32>
    %cst_5 = arith.constant 0.000000e+00 : f32
    %6 = vector.broadcast %cst_5 : f32 to vector<256x64xf32>
    %7 = arith.maximumf %5, %6 : vector<256x64xf32>
    %c0_6 = arith.constant 0 : index
    %c0_7 = arith.constant 0 : index
    %8 = vector.load %arg4[%c0_6, %c0_7] : memref<64x64xf32, #tpu.memory_space<vmem>>, vector<64x64xf32>
    %cst_8 = arith.constant dense<0.000000e+00> : vector<256x64xf32>
    %9 = tpu.matmul %7, %8, %cst_8 {dimension_numbers = #tpu.dot_dimension_numbers<[1], [0], [0], [1], [0, 0, 1, 1], [], []>} : vector<256x64xf32>, vector<64x64xf32>, vector<256x64xf32> -> vector<256x64xf32>
    %c0_9 = arith.constant 0 : index
    %c0_10 = arith.constant 0 : index
    %10 = vector.load %arg5[%c0_9, %c0_10] : memref<1x64xf32, #tpu.memory_space<vmem>>, vector<1x64xf32>
    %11 = vector.broadcast %10 : vector<1x64xf32> to vector<256x64xf32>
    %12 = arith.addf %9, %11 : vector<256x64xf32>
    %cst_11 = arith.constant 0.000000e+00 : f32
    %13 = vector.broadcast %cst_11 : f32 to vector<256x64xf32>
    %14 = arith.maximumf %12, %13 : vector<256x64xf32>
    %c0_12 = arith.constant 0 : index
    %c0_13 = arith.constant 0 : index
    %15 = vector.load %arg6[%c0_12, %c0_13] : memref<64x64xf32, #tpu.memory_space<vmem>>, vector<64x64xf32>
    %cst_14 = arith.constant dense<0.000000e+00> : vector<256x64xf32>
    %16 = tpu.matmul %14, %15, %cst_14 {dimension_numbers = #tpu.dot_dimension_numbers<[1], [0], [0], [1], [0, 0, 1, 1], [], []>} : vector<256x64xf32>, vector<64x64xf32>, vector<256x64xf32> -> vector<256x64xf32>
    %c0_15 = arith.constant 0 : index
    %c0_16 = arith.constant 0 : index
    %17 = vector.load %arg7[%c0_15, %c0_16] : memref<1x64xf32, #tpu.memory_space<vmem>>, vector<1x64xf32>
    %18 = vector.broadcast %17 : vector<1x64xf32> to vector<256x64xf32>
    %19 = arith.addf %16, %18 : vector<256x64xf32>
    %cst_17 = arith.constant 0.000000e+00 : f32
    %20 = vector.broadcast %cst_17 : f32 to vector<256x64xf32>
    %21 = arith.maximumf %19, %20 : vector<256x64xf32>
    %c0_18 = arith.constant 0 : index
    %c0_19 = arith.constant 0 : index
    %22 = vector.load %arg8[%c0_18, %c0_19] : memref<64x64xf32, #tpu.memory_space<vmem>>, vector<64x64xf32>
    %cst_20 = arith.constant dense<0.000000e+00> : vector<256x64xf32>
    %23 = tpu.matmul %21, %22, %cst_20 {dimension_numbers = #tpu.dot_dimension_numbers<[1], [0], [0], [1], [0, 0, 1, 1], [], []>} : vector<256x64xf32>, vector<64x64xf32>, vector<256x64xf32> -> vector<256x64xf32>
    %c0_21 = arith.constant 0 : index
    %c0_22 = arith.constant 0 : index
    %24 = vector.load %arg9[%c0_21, %c0_22] : memref<1x64xf32, #tpu.memory_space<vmem>>, vector<1x64xf32>
    %25 = vector.broadcast %24 : vector<1x64xf32> to vector<256x64xf32>
    %26 = arith.addf %23, %25 : vector<256x64xf32>
    %cst_23 = arith.constant 0.000000e+00 : f32
    %27 = vector.broadcast %cst_23 : f32 to vector<256x64xf32>
    %28 = arith.maximumf %26, %27 : vector<256x64xf32>
    %c0_24 = arith.constant 0 : index
    %c0_25 = arith.constant 0 : index
    %29 = vector.load %arg10[%c0_24, %c0_25] : memref<1x64xf32, #tpu.memory_space<vmem>>, vector<1x64xf32>
    %30 = vector.broadcast %29 : vector<1x64xf32> to vector<256x64xf32>
    %31 = arith.mulf %28, %30 : vector<256x64xf32>
    %cst_26 = arith.constant dense<0.000000e+00> : vector<256xf32>
    %32 = vector.multi_reduction <add>, %31, %cst_26 [1] : vector<256x64xf32> to vector<256xf32>
    %33 = vector.shape_cast %32 : vector<256xf32> to vector<256x1xf32>
    %c0_27 = arith.constant 0 : index
    %c0_28 = arith.constant 0 : index
    %34 = vector.load %arg11[%c0_27, %c0_28] : memref<1x1xf32, #tpu.memory_space<vmem>>, vector<1x1xf32>
    %35 = vector.broadcast %34 : vector<1x1xf32> to vector<256x1xf32>
    %36 = arith.addf %33, %35 : vector<256x1xf32>
    %cst_29 = arith.constant 0.000000e+00 : f32
    %37 = vector.broadcast %cst_29 : f32 to vector<256x1xf32>
    %38 = arith.subf %37, %36 : vector<256x1xf32>
    %39 = math.exp %38 : vector<256x1xf32>
    %cst_30 = arith.constant 1.000000e+00 : f32
    %40 = vector.broadcast %cst_30 : f32 to vector<256x1xf32>
    %41 = arith.addf %40, %39 : vector<256x1xf32>
    %42 = tpu.reciprocal %41 : vector<256x1xf32> -> vector<256x1xf32>
    %43 = vector.extract_strided_slice %0 {offsets = [0, 33], sizes = [256, 1], strides = [1, 1]} : vector<256x48xf32> to vector<256x1xf32>
    %44 = vector.extract_strided_slice %0 {offsets = [0, 46], sizes = [256, 1], strides = [1, 1]} : vector<256x48xf32> to vector<256x1xf32>
    %45 = arith.cmpf olt, %42, %43 : vector<256x1xf32>
    %cst_31 = arith.constant 9.99999974E-6 : f32
    %46 = vector.broadcast %cst_31 : f32 to vector<256x1xf32>
    %47 = arith.addf %43, %46 : vector<256x1xf32>
    %48 = arith.cmpf ogt, %42, %44 : vector<256x1xf32>
    %cst_32 = arith.constant 9.99999974E-6 : f32
    %49 = vector.broadcast %cst_32 : f32 to vector<256x1xf32>
    %50 = arith.subf %44, %49 : vector<256x1xf32>
    %51 = arith.select %48, %50, %42 : vector<256x1xi1>, vector<256x1xf32>
    %52 = arith.select %45, %47, %51 : vector<256x1xi1>, vector<256x1xf32>
    %53 = tpu.transpose %52, [1, 0] : vector<256x1xf32> -> vector<1x256xf32>
    %c0_33 = arith.constant 0 : index
    %c0_34 = arith.constant 0 : index
    %54 = vector.load %arg12[%c0_33, %c0_34] : memref<1x256xf32, #tpu.memory_space<vmem>>, vector<1x256xf32>
    tpu.vector_store %arg12[%c0_33, %c0_34], %53 {strides = array<i32>} : memref<1x256xf32, #tpu.memory_space<vmem>>, vector<1x256xf32>,
    return
  }
  func.func @transform_0(%arg0: i32) -> (i32, i32) {
    %c0_i32 = arith.constant 0 : i32
    %c0_i32_0 = arith.constant 0 : i32
    return %arg0, %c0_i32 : i32, i32
  }
  func.func @transform_1(%arg0: i32) -> (i32, i32) {
    %c0_i32 = arith.constant 0 : i32
    %c0_i32_0 = arith.constant 0 : i32
    %c0_i32_1 = arith.constant 0 : i32
    return %c0_i32, %c0_i32_0 : i32, i32
  }
  func.func @transform_2(%arg0: i32) -> (i32, i32) {
    %c0_i32 = arith.constant 0 : i32
    %c0_i32_0 = arith.constant 0 : i32
    %c0_i32_1 = arith.constant 0 : i32
    return %c0_i32, %c0_i32_0 : i32, i32
  }
  func.func @transform_3(%arg0: i32) -> (i32, i32) {
    %c0_i32 = arith.constant 0 : i32
    %c0_i32_0 = arith.constant 0 : i32
    %c0_i32_1 = arith.constant 0 : i32
    return %c0_i32, %c0_i32_0 : i32, i32
  }
  func.func @transform_4(%arg0: i32) -> (i32, i32) {
    %c0_i32 = arith.constant 0 : i32
    %c0_i32_0 = arith.constant 0 : i32
    %c0_i32_1 = arith.constant 0 : i32
    return %c0_i32, %c0_i32_0 : i32, i32
  }
  func.func @transform_5(%arg0: i32) -> (i32, i32) {
    %c0_i32 = arith.constant 0 : i32
    %c0_i32_0 = arith.constant 0 : i32
    %c0_i32_1 = arith.constant 0 : i32
    return %c0_i32, %c0_i32_0 : i32, i32
  }
  func.func @transform_6(%arg0: i32) -> (i32, i32) {
    %c0_i32 = arith.constant 0 : i32
    %c0_i32_0 = arith.constant 0 : i32
    %c0_i32_1 = arith.constant 0 : i32
    return %c0_i32, %c0_i32_0 : i32, i32
  }
  func.func @transform_7(%arg0: i32) -> (i32, i32) {
    %c0_i32 = arith.constant 0 : i32
    %c0_i32_0 = arith.constant 0 : i32
    %c0_i32_1 = arith.constant 0 : i32
    return %c0_i32, %c0_i32_0 : i32, i32
  }
  func.func @transform_8(%arg0: i32) -> (i32, i32) {
    %c0_i32 = arith.constant 0 : i32
    %c0_i32_0 = arith.constant 0 : i32
    %c0_i32_1 = arith.constant 0 : i32
    return %c0_i32, %c0_i32_0 : i32, i32
  }
  func.func @transform_9(%arg0: i32) -> (i32, i32) {
    %c0_i32 = arith.constant 0 : i32
    %c0_i32_0 = arith.constant 0 : i32
    %c0_i32_1 = arith.constant 0 : i32
    return %c0_i32, %c0_i32_0 : i32, i32
  }
  func.func @transform_10(%arg0: i32) -> (i32, i32) {
    %c0_i32 = arith.constant 0 : i32
    %c0_i32_0 = arith.constant 0 : i32
    %c0_i32_1 = arith.constant 0 : i32
    return %c0_i32, %c0_i32_0 : i32, i32
  }
  func.func @transform_11(%arg0: i32) -> (i32, i32) {
    %c0_i32 = arith.constant 0 : i32
    %c0_i32_0 = arith.constant 0 : i32
    return %c0_i32, %arg0 : i32, i32
  }
}

</mosaic_0001>

<bundles_post_ra>
// kernel: knot_placement_forward.1
= control target key start
LH: loop header
LB: loop body
LE: loop exit
PB: predicated region body
PF: predicated region fallthrough
CT: control target
= control target key end

     0   :  { %s6092_s0 = inlined_call_operand.vmem [shape: f32[512,48], index: 0, kind: input, shape index: {}]   ;;  %s6093_s1 = inlined_call_operand.hbm [shape: f32[48,64], index: 1, kind: input, shape index: {}]   ;;  %s6094_s2 = inlined_call_operand.hbm [shape: f32[1,64], index: 2, kind: input, shape index: {}]   ;;  %s6095_s3 = inlined_call_operand.hbm [shape: f32[64,64], index: 3, kind: input, shape index: {}]   ;;  %s6096_s4 = inlined_call_operand.hbm [shape: f32[1,64], index: 4, kind: input, shape index: {}]   ;;  %s6097_s5 = inlined_call_operand.hbm [shape: f32[64,64], index: 5, kind: input, shape index: {}]   ;;  %s6098_s6 = inlined_call_operand.hbm [shape: f32[1,64], index: 6, kind: input, shape index: {}]   ;;  %s6099_s7 = inlined_call_operand.hbm [shape: f32[64,64], index: 7, kind: input, shape index: {}]   ;;  %s6100_s8 = inlined_call_operand.hbm [shape: f32[1,64], index: 8, kind: input, shape index: {}]   ;;  %s6101_s9 = inlined_call_operand.hbm [shape: f32[1,64], index: 9, kind: input, shape index: {}]   ;;  %s6102_s10 = inlined_call_operand.<no memory space> [shape: f32[1,1], index: 10, kind: input, shape index: {}]   ;;  %s6103_s11 = inlined_call_operand.vmem [shape: f32[1,512], index: 11, kind: output, shape index: {}]  }
   0x1   :  { %v16_v0 = vstv %s6102_s10 }
   0x2   :  { %17 = vst [vmem:[#allocation2] sm:$0x1] %v16_v0 }
   0x3   :  { %18 = vsyncpa [#allocation4], 0 }
   0x4   :  { %19 = vsyncpa [#allocation6], 0 }
   0x5   :  { %20 = vsyncpa [#allocation9], 0 }
   0x6   :  { %21 = vsyncpa [#allocation12], 0 }
   0x7   :  { %22 = vsyncpa [#allocation15], 0  ;;  %s3981_s19 = smov 0  }
   0x8 LB: > { %s321_s10 = sshll.u32 %s6094_s2, 4  ;;  %s3990_s22 = sadd.s32 4294967295, %s3903_s19   ;;  %s3903_s19 = sphi %s3981_s19, %s28_s19   ;;  %s322_s10 = int_to_ptr.hbm [resolvable:$true] %s321_s10 }
   0x9   : > { %p3172_p0 = scmp.ge.s32.totalorder %s3903_s19, 1  ;;  %p295_p1 = scmp.lt.s32.totalorder %s3903_s19, 3 }
   0xa   : > { %p3422_p2 = scmp.eq.s32.totalorder %s3990_s22, 0  ;;  %s3905_s24 = smov [#allocation5]  }
   0xb   : > { %p3995_p3 = pnand %p3172_p0, %p295_p1  ;;  %s323_s25 = sshll.u32 %s3905_s24, 4  ;;  %s324_s25 = int_to_ptr.vmem [resolvable:$true] %s323_s25 }
   0xc   : > { %s347_s28 = sshll.u32 %s6096_s4, 4  ;;  %s373_s12 = sshll.u32 %s6098_s6, 4  ;;  %s348_s28 = int_to_ptr.hbm [resolvable:$true] %s347_s28  ;;  %s374_s12 = int_to_ptr.hbm [resolvable:$true] %s373_s12 }
   0xd   : > { %p3394_p4 = pneg %p3995_p3  ;;  %s3906_s14 = smov [#allocation8]  }
   0xe   : > { %s349_s15 = sshll.u32 %s3906_s14, 4  ;;  %s3907_s16 = smov [#allocation11]   ;;  %s350_s15 = int_to_ptr.vmem [resolvable:$true] %s349_s15 }
   0xf   : > { %p4009_p5 = pnand %p3422_p2, %p3394_p4  ;;  %s375_s17 = sshll.u32 %s3907_s16, 4  ;;  %s376_s17 = int_to_ptr.vmem [resolvable:$true] %s375_s17 }
  0x10   : > { %s399_s21 = sshll.u32 %s6100_s8, 4  ;;  %s306_s27 = sshll.u32 %s6093_s1, 4  ;;  %s400_s21 = int_to_ptr.hbm [resolvable:$true] %s399_s21  ;;  %s307_s27 = int_to_ptr.hbm [resolvable:$true] %s306_s27 }
  0x11   : > { %3400 = dma.hbm_to_vmem [thread:$0]  (!%p4009_p5), %s322_s10, 16, %s324_s25, [#allocation6]  }
  0x12   : > { %3406 = dma.hbm_to_vmem [thread:$0]  (!%p4009_p5), %s348_s28, 16, %s350_s15, [#allocation9]  }
  0x13   : > { %3412 = dma.hbm_to_vmem [thread:$0]  (!%p4009_p5), %s374_s12, 16, %s376_s17, [#allocation12]  }
  0x14   : > { %s3908_s29 = smov [#allocation14]   ;;  %s3909_s10 = smov [#allocation3]  }
  0x15   : > { %s401_s30 = sshll.u32 %s3908_s29, 4  ;;  %s308_s25 = sshll.u32 %s3909_s10, 4  ;;  %s402_s30 = int_to_ptr.vmem [resolvable:$true] %s401_s30  ;;  %s309_s25 = int_to_ptr.vmem [resolvable:$true] %s308_s25 }
  0x16   : > { %3418 = dma.hbm_to_vmem [thread:$0]  (!%p4009_p5), %s400_s21, 16, %s402_s30, [#allocation15]  }
  0x17   : > { %s3910_s28 = smov 128   ;;  %s3911_s14 = smov 8  }
  0x18   : > { %3397 = dma.hbm_to_vmem [thread:$0]  (!%p4009_p5), %s307_s27, 768, %s309_s25, [#allocation4], %s3910_s28, %s3910_s28, %s3911_s14  }
  0x19   : > { %s332_s16 = sshll.u32 %s6095_s3, 4  ;;  %s3912_s17 = smov [#allocation7]   ;;  %s333_s16 = int_to_ptr.hbm [resolvable:$true] %s332_s16 }
  0x1a   : > { %s334_s18 = sshll.u32 %s3912_s17, 4  ;;  %s358_s21 = sshll.u32 %s6097_s5, 4  ;;  %s335_s18 = int_to_ptr.vmem [resolvable:$true] %s334_s18  ;;  %s359_s21 = int_to_ptr.hbm [resolvable:$true] %s358_s21 }
  0x1b   : > { %3403 = dma.hbm_to_vmem [thread:$0]  (!%p4009_p5), %s333_s16, 1024, %s335_s18, [#allocation6], %s3910_s28, %s3910_s28, %s3911_s14  }
  0x1c   : > { %s3913_s26 = smov [#allocation10]   ;;  %s384_s10 = sshll.u32 %s6099_s7, 4  ;;  %s385_s10 = int_to_ptr.hbm [resolvable:$true] %s384_s10 }
  0x1d   : > { %s360_s29 = sshll.u32 %s3913_s26, 4  ;;  %s411_s15 = sshll.u32 %s6101_s9, 4  ;;  %s361_s29 = int_to_ptr.vmem [resolvable:$true] %s360_s29  ;;  %s412_s15 = int_to_ptr.hbm [resolvable:$true] %s411_s15 }
  0x1e   : > { %3409 = dma.hbm_to_vmem [thread:$0]  (!%p4009_p5), %s359_s21, 1024, %s361_s29, [#allocation9], %s3910_s28, %s3910_s28, %s3911_s14  }
  0x1f   : > { %s3914_s17 = smov [#allocation13]   ;;  %s3915_s16 = smov [#allocation16]  }
  0x20   : > { %s386_s20 = sshll.u32 %s3914_s17, 4  ;;  %s413_s18 = sshll.u32 %s3915_s16, 4  ;;  %s387_s20 = int_to_ptr.vmem [resolvable:$true] %s386_s20  ;;  %s414_s18 = int_to_ptr.vmem [resolvable:$true] %s413_s18 }
  0x21   : > { %3415 = dma.hbm_to_vmem [thread:$0]  (!%p4009_p5), %s385_s10, 1024, %s387_s20, [#allocation12], %s3910_s28, %s3910_s28, %s3911_s14  }
  0x22   : > { %3421 = dma.hbm_to_vmem [thread:$0]  (!%p4009_p5), %s412_s15, 16, %s414_s18, [#allocation15]  }
  0x23   : > { %438 = sbr.rel (%p3995_p3) target bundleno = 1071 (0x42f), region = 64 }
  0x28   : > { %3882 = dma.done.wait (%p3422_p2), [#allocation4], 768  }
  0x29   : > { %3884 = vsyncadd (%p3422_p2), [#allocation4], 4294966528 }
  0x2a   : > { %3886 = dma.done.wait (%p3422_p2), [#allocation6], 1040  }
  0x2b   : > { %3888 = vsyncadd (%p3422_p2), [#allocation6], 4294966256 }
  0x2c   : > { %3890 = dma.done.wait (%p3422_p2), [#allocation9], 1040  }
  0x2d   : > { %3892 = vsyncadd (%p3422_p2), [#allocation9], 4294966256 }
  0x2e   : > { %3894 = dma.done.wait (%p3422_p2), [#allocation12], 1040  }
  0x2f   : > { %3896 = vsyncadd (%p3422_p2), [#allocation12], 4294966256 }
  0x30   : > { %3898 = dma.done.wait (%p3422_p2), [#allocation15], 32  }
  0x31   : > { %3900 = vsyncadd (%p3422_p2), [#allocation15], 4294967264  ;;  %s3193_s23 = sshll.u32 %s3990_s22, 5  ;;  %v566_v1 = vld [vmem:[#allocation3 + $0x28] sm:$0xff]  ;;  %v565_v2 = vld [vmem:[#allocation3 + $0x20] sm:$0xff]  ;;  %vm571_vm0 = vcmask 392192  }
  0x32   : > { %p519_p6 = scmp.lt.s32.totalorder %s3193_s23, 63  ;;  %678 = vmatpush.msra.mxu0 %v566_v1  ;;  %v564_v3 = vld [vmem:[#allocation3 + $0x18] sm:$0xff]  ;;  %v563_v4 = vld [vmem:[#allocation3 + $0x10] sm:$0xff]  ;;  %v562_v5 = vld [vmem:[#allocation3 + $0x8] sm:$0xff]  ;;  %s3916_s21 = smov 95   ;;  %vm825_vm1 = vcmask 523264  }
  0x33   : > { %v561_v6 = vld [vmem:[#allocation3] sm:$0xff]  ;;  %v820_v22 = vld [vmem:[#allocation7 + $0x38] sm:$0xff]  ;;  %v817_v26 = vld [vmem:[#allocation7 + $0x20] sm:$0xff]  ;;  %s3917_s26 = smov 82   ;;  %s3195_s29 = sshll.u32 %s3990_s22, 1 }
  0x34   : > { %s6396_s23 = smov (!%p519_p6, %s3193_s23), 63  ;;  %679 = vmatpush.msra.mxu0 %v565_v2  ;;  %v819_v23 = vld [vmem:[#allocation7 + $0x30] sm:$0xff]  ;;  %930 = vmatpush.msra.mxu1 %v820_v22  ;;  %v818_v25 = vld [vmem:[#allocation7 + $0x28] sm:$0xff]  ;;  %v816_v27 = vld [vmem:[#allocation7 + $0x18] sm:$0xff]  ;;  %p525_p7 = scmp.lt.s32.totalorder %s3195_s29, 3 }
  0x35   : > { %s3194_s13 = sshll.u32 %s6396_s23, 3  ;;  %v815_v28 = vld [vmem:[#allocation7 + $0x10] sm:$0xff]  ;;  %v814_v29 = vld [vmem:[#allocation7 + $0x8] sm:$0xff]  ;;  %v813_v31 = vld [vmem:[#allocation7] sm:$0xff] }
  0x36   : > { %680 = vmatpush.msra.mxu0 %v564_v3  ;;  %s4075_s24 = scalar_lea.vmem %s6092_s0, %s3194_s13  ;;  %931 = vmatpush.msra.mxu1 %v819_v23  ;;  %v4209_v35 = vld [vmem:[#allocation5] ss:$0 sm:$0xff]  ;;  %s6398_s29 = smov (!%p525_p7, %s3195_s29), 3 }
  0x37   : > { %v4078_v7 = vld [vmem:[%s4075_s24] sm:$0xff]  ;;  %v4083_v8 = vld [vmem:[%s4075_s24 + $0x8] sm:$0xff]  ;;  %v4088_v9 = vld [vmem:[%s4075_s24 + $0x10] sm:$0xff]  ;;  %s527_s10 = scalar_lea.vmem %s6103_s11, %s6398_s29 }
  0x38   : > { %681 = vmatpush.msra.mxu0 %v563_v4  ;;  %v4093_v10 = vld [vmem:[%s4075_s24 + $0x18] sm:$0xff]  ;;  %v4098_v11 = vld [vmem:[%s4075_s24 + $0x20] sm:$0xff]  ;;  %2319 = vrot.lane.b32.xlu0 %v4083_v8, %s3916_s21  ;;  %v4109_v12 = vld [vmem:[%s4075_s24 + $0x28] sm:$0xff] }
  0x39   : > { %2321 = vrot.lane.b32.xlu1 %v4088_v9, %s3916_s21  ;;  %2317 = vrot.lane.b32.xlu2 %v4078_v7, %s3916_s21  ;;  %v4114_v13 = vld [vmem:[%s4075_s24 + $0x30] sm:$0xff]  ;;  %v4125_v14 = vld [vmem:[%s4075_s24 + $0x38] sm:$0xff] }
  0x3a   : > { %682 = vmatpush.msra.mxu0 %v562_v5  ;;  %v4128_v15 = vld [vmem:[%s4075_s24 + $0x48] sm:$0xff]  ;;  %v4139_v16 = vld [vmem:[%s4075_s24 + $0x50] sm:$0xff]  ;;  %v4142_v17 = vld [vmem:[%s4075_s24 + $0x60] sm:$0xff]  ;;  %932 = vmatpush.msra.mxu1 %v818_v25 }
  0x3b   : > { %v4145_v18 = vld [vmem:[%s4075_s24 + $0x40] sm:$0xff]  ;;  %v4156_v19 = vld [vmem:[%s4075_s24 + $0x68] sm:$0xff]  ;;  %v4159_v20 = vld [vmem:[%s4075_s24 + $0x58] sm:$0xff] }
  0x3c   : > { %683 = vmatpush.msra.mxu0 %v561_v6  ;;  %v4168_v21 = vld [vmem:[%s4075_s24 + $0x70] sm:$0xff]  ;;  %v4175_v24 = vld [vmem:[%s4075_s24 + $0x78] sm:$0xff]  ;;  %933 = vmatpush.msra.mxu1 %v817_v26  ;;  %v4182_v30 = vld [vmem:[%s4075_s24 + $0x80] sm:$0xff] }
  0x3d   : > { %3196 = vmatmul.msk.f32.vlgmr.msra.gmra.mxu0 %vm571_vm0, %v4078_v7  ;;  %v4189_v32 = vld [vmem:[%s4075_s24 + $0x88] sm:$0xff]  ;;  %v4196_v33 = vld [vmem:[%s4075_s24 + $0x90] sm:$0xff]  ;;  %v4203_v34 = vld [vmem:[%s4075_s24 + $0x98] sm:$0xff] }
  0x3e   : > { %934 = vmatpush.msra.mxu1 %v816_v27  ;;  %v4213_v38 = vld [vmem:[%s4075_s24 + $0xa0] sm:$0xff]  ;;  %v4222_v42 = vld [vmem:[%s4075_s24 + $0xa8] sm:$0xff]  ;;  %v4231_v46 = vld [vmem:[%s4075_s24 + $0xb0] sm:$0xff] }
  0x3f   : > { %v4240_v50 = vld [vmem:[%s4075_s24 + $0xb8] sm:$0xff]  ;;  %v4249_v54 = vld [vmem:[%s4075_s24 + $0xc0] sm:$0xff]  ;;  %v4258_v58 = vld [vmem:[%s4075_s24 + $0xc8] sm:$0xff] }
  0x40   : > { %2325 = vrot.lane.b32.xlu0 %v4098_v11, %s3916_s21  ;;  %935 = vmatpush.msra.mxu1 %v815_v28  ;;  %v4267_v62 = vld [vmem:[%s4075_s24 + $0xd0] sm:$0xff]  ;;  %v4276_v2 = vld [vmem:[%s4075_s24 + $0xd8] sm:$0xff]  ;;  %v4285_v6 = vld [vmem:[%s4075_s24 + $0xe0] sm:$0xff] }
  0x41   : > { %2329 = vrot.lane.b32.xlu1 %v4114_v13, %s3916_s21  ;;  %2323 = vrot.lane.b32.xlu2 %v4093_v10, %s3916_s21  ;;  %v4294_v26 = vld [vmem:[%s4075_s24 + $0xe8] sm:$0xff] }
  0x42   : > { %936 = vmatpush.msra.mxu1 %v814_v29 }
  0x44   : > { %937 = vmatpush.msra.mxu1 %v813_v31  ;;  %v4303_v31 = vld [vmem:[%s4075_s24 + $0xf0] sm:$0xff] }
  0x45   : > { %3197 = vmatmul.msk.f32.gmra.mxu0 %vm571_vm0, %v4083_v8 }
  0x48   : > { %2331 = vrot.lane.b32.xlu0 %v4125_v14, %s3916_s21 }
  0x49   : > { %2335 = vrot.lane.b32.xlu1 %v4128_v15, %s3916_s21  ;;  %2327 = vrot.lane.b32.xlu2 %v4109_v12, %s3916_s21 }
  0x4d   : > { %3198 = vmatmul.msk.f32.gmra.mxu0 %vm571_vm0, %v4088_v9 }
  0x50   : > { %2337 = vrot.lane.b32.xlu0 %v4139_v16, %s3916_s21 }
  0x51   : > { %2341 = vrot.lane.b32.xlu1 %v4142_v17, %s3916_s21  ;;  %2333 = vrot.lane.b32.xlu2 %v4145_v18, %s3916_s21 }
  0x55   : > { %3199 = vmatmul.msk.f32.gmra.mxu0 %vm571_vm0, %v4093_v10 }
  0x58   : > { %2343 = vrot.lane.b32.xlu0 %v4156_v19, %s3916_s21 }
  0x59   : > { %2339 = vrot.lane.b32.xlu2 %v4159_v20, %s3916_s21  ;;  %2347 = vrot.lane.b32.xlu1 %v4175_v24, %s3916_s21 }
  0x5d   : > { %3200 = vmatmul.msk.f32.gmra.mxu0 %vm571_vm0, %v4098_v11 }
  0x60   : > { %2349 = vrot.lane.b32.xlu0 %v4182_v30, %s3916_s21 }
  0x61   : > { %2345 = vrot.lane.b32.xlu2 %v4168_v21, %s3916_s21  ;;  %2353 = vrot.lane.b32.xlu1 %v4196_v33, %s3916_s21 }
  0x65   : > { %3201 = vmatmul.msk.f32.gmra.mxu0 %vm571_vm0, %v4109_v12 }
  0x68   : > { %2355 = vrot.lane.b32.xlu0 %v4203_v34, %s3916_s21 }
  0x69   : > { %2351 = vrot.lane.b32.xlu2 %v4189_v32, %s3916_s21  ;;  %2359 = vrot.lane.b32.xlu1 %v4222_v42, %s3916_s21 }
  0x6d   : > { %3202 = vmatmul.msk.f32.gmra.mxu0 %vm571_vm0, %v4114_v13 }
  0x70   : > { %2361 = vrot.lane.b32.xlu0 %v4231_v46, %s3916_s21 }
  0x71   : > { %2357 = vrot.lane.b32.xlu2 %v4213_v38, %s3916_s21  ;;  %2365 = vrot.lane.b32.xlu1 %v4249_v54, %s3916_s21 }
  0x75   : > { %3203 = vmatmul.msk.f32.gmra.mxu0 %vm571_vm0, %v4125_v14 }
  0x78   : > { %2367 = vrot.lane.b32.xlu0 %v4258_v58, %s3916_s21 }
  0x79   : > { %2363 = vrot.lane.b32.xlu2 %v4240_v50, %s3916_s21  ;;  %2371 = vrot.lane.b32.xlu1 %v4276_v2, %s3916_s21 }
  0x7d   : > { %3204 = vmatmul.msk.f32.gmra.mxu0 %vm571_vm0, %v4145_v18 }
  0x80   : > { %2373 = vrot.lane.b32.xlu0 %v4285_v6, %s3916_s21 }
  0x81   : > { %2369 = vrot.lane.b32.xlu2 %v4267_v62, %s3916_s21  ;;  %2377 = vrot.lane.b32.xlu1 %v4303_v31, %s3916_s21 }
  0x85   : > { %3205 = vmatmul.msk.f32.gmra.mxu0 %vm571_vm0, %v4128_v15 }
  0x89   : > { %2375 = vrot.lane.b32.xlu2 %v4294_v26, %s3916_s21  ;;  %2479 = vrot.lane.b32.xlu1 %v4083_v8, %s3917_s26 }
  0x8d   : > { %3206 = vmatmul.msk.f32.gmra.mxu0 %vm571_vm0, %v4139_v16 }
  0x91   : > { %2477 = vrot.lane.b32.xlu2 %v4078_v7, %s3917_s26  ;;  %2485 = vrot.lane.b32.xlu1 %v4098_v11, %s3917_s26 }
  0x95   : > { %3207 = vmatmul.msk.f32.gmra.mxu0 %vm571_vm0, %v4159_v20 }
  0x99   : > { %2483 = vrot.lane.b32.xlu2 %v4093_v10, %s3917_s26  ;;  %2491 = vrot.lane.b32.xlu1 %v4125_v14, %s3917_s26 }
  0x9d   : > { %3208 = vmatmul.msk.f32.gmra.mxu0 %vm571_vm0, %v4142_v17 }
  0xa1   : > { %2489 = vrot.lane.b32.xlu2 %v4114_v13, %s3917_s26  ;;  %2497 = vrot.lane.b32.xlu1 %v4139_v16, %s3917_s26 }
  0xa5   : > { %3209 = vmatmul.msk.f32.gmra.mxu0 %vm571_vm0, %v4156_v19 }
  0xa9   : > { %2495 = vrot.lane.b32.xlu2 %v4128_v15, %s3917_s26  ;;  %2503 = vrot.lane.b32.xlu1 %v4156_v19, %s3917_s26 }
  0xad   : > { %3210 = vmatmul.msk.f32.gmra.mxu0 %vm571_vm0, %v4168_v21 }
  0xb1   : > { %2501 = vrot.lane.b32.xlu2 %v4142_v17, %s3917_s26  ;;  %2509 = vrot.lane.b32.xlu1 %v4182_v30, %s3917_s26 }
  0xb5   : > { %3211 = vmatmul.msk.f32.gmra.mxu0 %vm571_vm0, %v4175_v24 }
  0xb9   : > { %2507 = vrot.lane.b32.xlu2 %v4175_v24, %s3917_s26  ;;  %2515 = vrot.lane.b32.xlu1 %v4203_v34, %s3917_s26 }
  0xba   : > { %v685_v36 = vpop.f32.mrf.mxu0 }
  0xbb   : > { %v686_v37 = vadd.f32 %v4209_v35, %v685_v36 }
  0xbd   : > { %v781_v39 = vmax.f32 %v686_v37, 0.0  ;;  %3212 = vmatmul.msk.f32.gmra.mxu0 %vm571_vm0, %v4182_v30  ;;  %v1074_v37 = vld [vmem:[#allocation10 + $0x38] sm:$0xff] }
  0xbe   : > { %1183 = vmatpush.msra.mxu2 %v1074_v37 }
  0xbf   : > { %3228 = vmatmul.msk.f32.vlgmr.msra.gmra.mxu1 %vm825_vm1, %v781_v39  ;;  %v4313_v39 = vld [vmem:[%s4075_s24 + $0xf8] sm:$0xff] }
  0xc0   : > { %2379 = vrot.lane.b32.xlu0 %v4313_v39, %s3916_s21 }
  0xc1   : > { %2513 = vrot.lane.b32.xlu2 %v4196_v33, %s3917_s26  ;;  %2521 = vrot.lane.b32.xlu1 %v4231_v46, %s3917_s26 }
  0xc2   : > { %v688_v40 = vpop.f32.mrf.mxu0 }
  0xc3   : > { %v689_v41 = vadd.f32 %v4209_v35, %v688_v40 }
  0xc5   : > { %v782_v43 = vmax.f32 %v689_v41, 0.0  ;;  %3213 = vmatmul.msk.f32.gmra.mxu0 %vm571_vm0, %v4189_v32 }
  0xc7   : > { %3229 = vmatmul.msk.f32.gmra.mxu1 %vm825_vm1, %v782_v43  ;;  %v1073_v43 = vld [vmem:[#allocation10 + $0x30] sm:$0xff] }
  0xc8   : > { %1184 = vmatpush.msra.mxu2 %v1073_v43  ;;  %2481 = vrot.lane.b32.xlu0 %v4088_v9, %s3917_s26 }
  0xc9   : > { %2519 = vrot.lane.b32.xlu2 %v4222_v42, %s3917_s26  ;;  %2527 = vrot.lane.b32.xlu1 %v4258_v58, %s3917_s26 }
  0xca   : > { %v691_v44 = vpop.f32.mrf.mxu0 }
  0xcb   : > { %v692_v45 = vadd.f32 %v4209_v35, %v691_v44 }
  0xcd   : > { %v783_v47 = vmax.f32 %v692_v45, 0.0  ;;  %3214 = vmatmul.msk.f32.gmra.mxu0 %vm571_vm0, %v4196_v33  ;;  %v1072_v45 = vld [vmem:[#allocation10 + $0x28] sm:$0xff] }
  0xce   : > { %1185 = vmatpush.msra.mxu2 %v1072_v45 }
  0xcf   : > { %3230 = vmatmul.msk.f32.gmra.mxu1 %vm825_vm1, %v783_v47  ;;  %v1071_v47 = vld [vmem:[#allocation10 + $0x20] sm:$0xff] }
  0xd0   : > { %1186 = vmatpush.msra.mxu2 %v1071_v47  ;;  %2487 = vrot.lane.b32.xlu0 %v4109_v12, %s3917_s26 }
  0xd1   : > { %2525 = vrot.lane.b32.xlu2 %v4249_v54, %s3917_s26  ;;  %2533 = vrot.lane.b32.xlu1 %v4285_v6, %s3917_s26 }
  0xd2   : > { %v694_v48 = vpop.f32.mrf.mxu0 }
  0xd3   : > { %v695_v49 = vadd.f32 %v4209_v35, %v694_v48  ;;  %v1070_v48 = vld [vmem:[#allocation10 + $0x18] sm:$0xff] }
  0xd4   : > { %1187 = vmatpush.msra.mxu2 %v1070_v48 }
  0xd5   : > { %v784_v51 = vmax.f32 %v695_v49, 0.0  ;;  %3215 = vmatmul.msk.f32.gmra.mxu0 %vm571_vm0, %v4203_v34 }
  0xd7   : > { %3231 = vmatmul.msk.f32.gmra.mxu1 %vm825_vm1, %v784_v51 }
  0xd8   : > { %2493 = vrot.lane.b32.xlu0 %v4145_v18, %s3917_s26 }
  0xd9   : > { %2531 = vrot.lane.b32.xlu2 %v4276_v2, %s3917_s26  ;;  %2539 = vrot.lane.b32.xlu1 %v4313_v39, %s3917_s26 }
  0xda   : > { %v697_v52 = vpop.f32.mrf.mxu0 }
  0xdb   : > { %v698_v53 = vadd.f32 %v4209_v35, %v697_v52  ;;  %v1069_v52 = vld [vmem:[#allocation10 + $0x10] sm:$0xff] }
  0xdc   : > { %1188 = vmatpush.msra.mxu2 %v1069_v52 }
  0xdd   : > { %v785_v55 = vmax.f32 %v698_v53, 0.0  ;;  %3216 = vmatmul.msk.f32.gmra.mxu0 %vm571_vm0, %v4213_v38 }
  0xdf   : > { %3232 = vmatmul.msk.f32.gmra.mxu1 %vm825_vm1, %v785_v55  ;;  %v1068_v55 = vld [vmem:[#allocation10 + $0x8] sm:$0xff] }
  0xe0   : > { %1189 = vmatpush.msra.mxu2 %v1068_v55  ;;  %2499 = vrot.lane.b32.xlu0 %v4159_v20, %s3917_s26 }
  0xe1   : > { %2537 = vrot.lane.b32.xlu2 %v4303_v31, %s3917_s26 }
  0xe2   : > { %v700_v56 = vpop.f32.mrf.mxu0 }
  0xe3   : > { %v701_v57 = vadd.f32 %v4209_v35, %v700_v56  ;;  %v1067_v56 = vld [vmem:[#allocation10] sm:$0xff] }
  0xe4   : > { %1190 = vmatpush.msra.mxu2 %v1067_v56 }
  0xe5   : > { %v786_v59 = vmax.f32 %v701_v57, 0.0  ;;  %3217 = vmatmul.msk.f32.gmra.mxu0 %vm571_vm0, %v4222_v42 }
  0xe7   : > { %3233 = vmatmul.msk.f32.gmra.mxu1 %vm825_vm1, %v786_v59 }
  0xe8   : > { %2505 = vrot.lane.b32.xlu0 %v4168_v21, %s3917_s26 }
  0xea   : > { %v703_v60 = vpop.f32.mrf.mxu0 }
  0xeb   : > { %v704_v61 = vadd.f32 %v4209_v35, %v703_v60 }
  0xed   : > { %v787_v63 = vmax.f32 %v704_v61, 0.0  ;;  %3218 = vmatmul.msk.f32.gmra.mxu0 %vm571_vm0, %v4231_v46 }
  0xef   : > { %3234 = vmatmul.msk.f32.gmra.mxu1 %vm825_vm1, %v787_v63 }
  0xf0   : > { %2511 = vrot.lane.b32.xlu0 %v4189_v32, %s3917_s26 }
  0xf2   : > { %v706_v0 = vpop.f32.mrf.mxu0 }
  0xf3   : > { %v707_v1 = vadd.f32 %v4209_v35, %v706_v0 }
  0xf5   : > { %v788_v3 = vmax.f32 %v707_v1, 0.0  ;;  %3219 = vmatmul.msk.f32.gmra.mxu0 %vm571_vm0, %v4240_v50 }
  0xf7   : > { %3235 = vmatmul.msk.f32.gmra.mxu1 %vm825_vm1, %v788_v3 }
  0xf8   : > { %2517 = vrot.lane.b32.xlu0 %v4213_v38, %s3917_s26 }
  0xfa   : > { %v709_v4 = vpop.f32.mrf.mxu0 }
  0xfb   : > { %v710_v5 = vadd.f32 %v4209_v35, %v709_v4 }
  0xfd   : > { %v789_v22 = vmax.f32 %v710_v5, 0.0  ;;  %3220 = vmatmul.msk.f32.gmra.mxu0 %vm571_vm0, %v4249_v54  ;;  %v4367_v5 = vld [vmem:[#allocation8] ss:$0 sm:$0xff] }
  0xff   : > { %3236 = vmatmul.msk.f32.gmra.mxu1 %vm825_vm1, %v789_v22 }
 0x100   : > { %2523 = vrot.lane.b32.xlu0 %v4240_v50, %s3917_s26 }
 0x102   : > { %v712_v23 = vpop.f32.mrf.mxu0 }
 0x103   : > { %v713_v25 = vadd.f32 %v4209_v35, %v712_v23 }
 0x105   : > { %v790_v27 = vmax.f32 %v713_v25, 0.0  ;;  %3221 = vmatmul.msk.f32.gmra.mxu0 %vm571_vm0, %v4258_v58 }
 0x107   : > { %3237 = vmatmul.msk.f32.gmra.mxu1 %vm825_vm1, %v790_v27 }
 0x108   : > { %2529 = vrot.lane.b32.xlu0 %v4267_v62, %s3917_s26 }
 0x10a   : > { %v715_v28 = vpop.f32.mrf.mxu0 }
 0x10b   : > { %v716_v29 = vadd.f32 %v4209_v35, %v715_v28 }
 0x10d   : > { %v791_v36 = vmax.f32 %v716_v29, 0.0  ;;  %3222 = vmatmul.msk.f32.gmra.mxu0 %vm571_vm0, %v4267_v62 }
 0x10f   : > { %3238 = vmatmul.msk.f32.gmra.mxu1 %vm825_vm1, %v791_v36 }
 0x110   : > { %2535 = vrot.lane.b32.xlu0 %v4294_v26, %s3917_s26 }
 0x112   : > { %v718_v40 = vpop.f32.mrf.mxu0 }
 0x113   : > { %v719_v41 = vadd.f32 %v4209_v35, %v718_v40 }
 0x115   : > { %v792_v44 = vmax.f32 %v719_v41, 0.0  ;;  %3223 = vmatmul.msk.f32.gmra.mxu0 %vm571_vm0, %v4276_v2 }
 0x117   : > { %3239 = vmatmul.msk.f32.gmra.mxu1 %vm825_vm1, %v792_v44 }
 0x11a   : > { %v721_v49 = vpop.f32.mrf.mxu0 }
 0x11b   : > { %v722_v51 = vadd.f32 %v4209_v35, %v721_v49 }
 0x11d   : > { %v793_v53 = vmax.f32 %v722_v51, 0.0  ;;  %3224 = vmatmul.msk.f32.gmra.mxu0 %vm571_vm0, %v4285_v6 }
 0x11f   : > { %3240 = vmatmul.msk.f32.gmra.mxu1 %vm825_vm1, %v793_v53 }
 0x122   : > { %v724_v57 = vpop.f32.mrf.mxu0 }
 0x123   : > { %v725_v59 = vadd.f32 %v4209_v35, %v724_v57 }
 0x125   : > { %v794_v60 = vmax.f32 %v725_v59, 0.0  ;;  %3225 = vmatmul.msk.f32.gmra.mxu0 %vm571_vm0, %v4294_v26 }
 0x127   : > { %3241 = vmatmul.msk.f32.gmra.mxu1 %vm825_vm1, %v794_v60 }
 0x12a   : > { %v727_v61 = vpop.f32.mrf.mxu0 }
 0x12b   : > { %v728_v63 = vadd.f32 %v4209_v35, %v727_v61 }
 0x12d   : > { %v795_v0 = vmax.f32 %v728_v63, 0.0  ;;  %3226 = vmatmul.msk.f32.gmra.mxu0 %vm571_vm0, %v4303_v31 }
 0x12f   : > { %3242 = vmatmul.msk.f32.gmra.mxu1 %vm825_vm1, %v795_v0 }
 0x132   : > { %v730_v1 = vpop.f32.mrf.mxu0 }
 0x133   : > { %v731_v3 = vadd.f32 %v4209_v35, %v730_v1 }
 0x135   : > { %v796_v4 = vmax.f32 %v731_v3, 0.0  ;;  %3227 = vmatmul.msk.f32.gmra.mxu0 %vm571_vm0, %v4313_v39 }
 0x137   : > { %3243 = vmatmul.msk.f32.gmra.mxu1 %vm825_vm1, %v796_v4 }
 0x13a   : > { %v733_v22 = vpop.f32.mrf.mxu0 }
 0x13b   : > { %v734_v23 = vadd.f32 %v4209_v35, %v733_v22 }
 0x13c   : > { %v939_v25 = vpop.f32.mrf.mxu1 }
 0x13d   : > { %v797_v27 = vmax.f32 %v734_v23, 0.0  ;;  %v940_v28 = vadd.f32 %v4367_v5, %v939_v25 }
 0x13f   : > { %v1035_v29 = vmax.f32 %v940_v28, 0.0  ;;  %3244 = vmatmul.msk.f32.gmra.mxu1 %vm825_vm1, %v797_v27 }
 0x141   : > { %3260 = vmatmul.msk.f32.vlgmr.msra.gmra.mxu2 %vm825_vm1, %v1035_v29  ;;  %v4421_v29 = vpop.permute.xlu0 %2319 }
 0x142   : > { %v736_v36 = vpop.f32.mrf.mxu0 }
 0x143   : > { %v737_v37 = vadd.f32 %v4209_v35, %v736_v36 }
 0x144   : > { %v942_v40 = vpop.f32.mrf.mxu1 }
 0x145   : > { %v798_v41 = vmax.f32 %v737_v37, 0.0  ;;  %v943_v43 = vadd.f32 %v4367_v5, %v942_v40  ;;  %v3324_v37 = vadd.f32 -1e-05, %v4078_v7 }
 0x147   : > { %v1036_v44 = vmax.f32 %v943_v43, 0.0  ;;  %3245 = vmatmul.msk.f32.gmra.mxu1 %vm825_vm1, %v798_v41  ;;  %2669 = vrot.lane.b32.xlu0 %v3324_v37, %s3917_s26 }
 0x149   : > { %3261 = vmatmul.msk.f32.gmra.mxu2 %vm825_vm1, %v1036_v44 }
 0x14a   : > { %v739_v45 = vpop.f32.mrf.mxu0 }
 0x14b   : > { %v740_v47 = vadd.f32 %v4209_v35, %v739_v45 }
 0x14c   : > { %v945_v48 = vpop.f32.mrf.mxu1 }
 0x14d   : > { %v799_v49 = vmax.f32 %v740_v47, 0.0  ;;  %v946_v51 = vadd.f32 %v4367_v5, %v945_v48  ;;  %v4432_v48 = vpop.permute.xlu0 %2325 }
 0x14f   : > { %v1037_v52 = vmax.f32 %v946_v51, 0.0  ;;  %3246 = vmatmul.msk.f32.gmra.mxu1 %vm825_vm1, %v799_v49  ;;  %v3327_v49 = vadd.f32 -1e-05, %v4093_v10 }
 0x151   : > { %3262 = vmatmul.msk.f32.gmra.mxu2 %vm825_vm1, %v1037_v52  ;;  %2675 = vrot.lane.b32.xlu0 %v3327_v49, %s3917_s26  ;;  %v3332_v49 = vadd.f32 -1e-05, %v4145_v18 }
 0x152   : > { %v742_v53 = vpop.f32.mrf.mxu0 }
 0x153   : > { %v743_v55 = vadd.f32 %v4209_v35, %v742_v53  ;;  %v4438_v53 = vpop.permute.xlu1 %2321 }
 0x154   : > { %v948_v56 = vpop.f32.mrf.mxu1 }
 0x155   : > { %v800_v57 = vmax.f32 %v743_v55, 0.0  ;;  %v949_v59 = vadd.f32 %v4367_v5, %v948_v56 }
 0x157   : > { %v1038_v60 = vmax.f32 %v949_v59, 0.0  ;;  %3247 = vmatmul.msk.f32.gmra.mxu1 %vm825_vm1, %v800_v57  ;;  %v4441_v59 = vpop.permute.xlu2 %2317 }
 0x159   : > { %3263 = vmatmul.msk.f32.gmra.mxu2 %vm825_vm1, %v1038_v60 }
 0x15a   : > { %v745_v61 = vpop.f32.mrf.mxu0 }
 0x15b   : > { %v746_v63 = vadd.f32 %v4209_v35, %v745_v61  ;;  %v3326_v61 = vadd.f32 -1e-05, %v4088_v9 }
 0x15c   : > { %v951_v0 = vpop.f32.mrf.mxu1 }
 0x15d   : > { %v801_v1 = vmax.f32 %v746_v63, 0.0  ;;  %v952_v3 = vadd.f32 %v4367_v5, %v951_v0  ;;  %v3330_v63 = vadd.f32 -1e-05, %v4114_v13  ;;  %v4447_v0 = vpop.permute.xlu0 %2331  ;;  %2673 = vrot.lane.b32.xlu1 %v3326_v61, %s3917_s26 }
 0x15f   : > { %v1039_v4 = vmax.f32 %v952_v3, 0.0  ;;  %3248 = vmatmul.msk.f32.gmra.mxu1 %vm825_vm1, %v801_v1  ;;  %2681 = vrot.lane.b32.xlu0 %v3330_v63, %s3917_s26 }
 0x161   : > { %3264 = vmatmul.msk.f32.gmra.mxu2 %vm825_vm1, %v1039_v4 }
 0x162   : > { %v748_v22 = vpop.f32.mrf.mxu0 }
 0x163   : > { %v749_v23 = vadd.f32 %v4209_v35, %v748_v22 }
 0x164   : > { %v954_v25 = vpop.f32.mrf.mxu1 }
 0x165   : > { %v802_v27 = vmax.f32 %v749_v23, 0.0  ;;  %v955_v28 = vadd.f32 %v4367_v5, %v954_v25  ;;  %v4453_v25 = vpop.permute.xlu1 %2329 }
 0x167   : > { %v1040_v36 = vmax.f32 %v955_v28, 0.0  ;;  %3249 = vmatmul.msk.f32.gmra.mxu1 %vm825_vm1, %v802_v27  ;;  %v4456_v27 = vpop.permute.xlu2 %2323  ;;  %v3329_v28 = vadd.f32 -1e-05, %v4109_v12 }
 0x169   : > { %3265 = vmatmul.msk.f32.gmra.mxu2 %vm825_vm1, %v1040_v36  ;;  %v3333_v36 = vadd.f32 -1e-05, %v4128_v15  ;;  %2679 = vrot.lane.b32.xlu1 %v3329_v28, %s3917_s26 }
 0x16a   : > { %v751_v40 = vpop.f32.mrf.mxu0 }
 0x16b   : > { %v752_v41 = vadd.f32 %v4209_v35, %v751_v40  ;;  %2687 = vrot.lane.b32.xlu0 %v3333_v36, %s3917_s26 }
 0x16c   : > { %v957_v43 = vpop.f32.mrf.mxu1 }
 0x16d   : > { %v803_v44 = vmax.f32 %v752_v41, 0.0  ;;  %v958_v45 = vadd.f32 %v4367_v5, %v957_v43  ;;  %v4464_v41 = vpop.permute.xlu0 %2337  ;;  %v4468_v12 = vpop.permute.xlu1 %2335 }
 0x16e   : > { %6121 = vst [vmem:[#allocation22_spill] sm:$0xff] %v4464_v41 }
 0x16f   : > { %v1041_v47 = vmax.f32 %v958_v45, 0.0  ;;  %3250 = vmatmul.msk.f32.gmra.mxu1 %vm825_vm1, %v803_v44  ;;  %6122 = vst [vmem:[#allocation23_spill] sm:$0xff] %v4468_v12 }
 0x171   : > { %3266 = vmatmul.msk.f32.gmra.mxu2 %vm825_vm1, %v1041_v47  ;;  %2685 = vrot.lane.b32.xlu1 %v3332_v49, %s3917_s26  ;;  %v1327_v49 = vld [vmem:[#allocation13 + $0x38] sm:$0xff] }
 0x172   : > { %v754_v51 = vpop.f32.mrf.mxu0  ;;  %1436 = vmatpush.msra.mxu3 %v1327_v49 }
 0x173   : > { %v755_v52 = vadd.f32 %v4209_v35, %v754_v51  ;;  %v3336_v51 = vadd.f32 -1e-05, %v4142_v17 }
 0x174   : > { %v960_v55 = vpop.f32.mrf.mxu1 }
 0x175   : > { %v804_v56 = vmax.f32 %v755_v52, 0.0  ;;  %v961_v57 = vadd.f32 %v4367_v5, %v960_v55  ;;  %v4473_v52 = vpop.permute.xlu2 %2327  ;;  %v3325_v55 = vadd.f32 -1e-05, %v4083_v8  ;;  %2693 = vrot.lane.b32.xlu0 %v3336_v51, %s3917_s26  ;;  %v4481_v63 = vpop.permute.xlu0 %2343  ;;  %v3331_v51 = vadd.f32 -1e-05, %v4125_v14 }
 0x176   : > { %6123 = vst [vmem:[#allocation24_spill] sm:$0xff] %v4481_v63 }
 0x177   : > { %v1042_v60 = vmax.f32 %v961_v57, 0.0  ;;  %3251 = vmatmul.msk.f32.gmra.mxu1 %vm825_vm1, %v804_v56  ;;  %2671 = vrot.lane.b32.xlu2 %v3325_v55, %s3917_s26 }
 0x179   : > { %3267 = vmatmul.msk.f32.gmra.mxu2 %vm825_vm1, %v1042_v60 }
 0x17a   : > { %v757_v1 = vpop.f32.mrf.mxu0 }
 0x17b   : > { %v758_v3 = vadd.f32 %v4209_v35, %v757_v1 }
 0x17c   : > { %v963_v4 = vpop.f32.mrf.mxu1 }
 0x17d   : > { %v805_v22 = vmax.f32 %v758_v3, 0.0  ;;  %v964_v23 = vadd.f32 %v4367_v5, %v963_v4  ;;  %v3335_v3 = vadd.f32 -1e-05, %v4159_v20  ;;  %v3339_v4 = vadd.f32 -1e-05, %v4175_v24  ;;  %v4493_v36 = vpop.permute.xlu2 %2333 }
 0x17e   : > { %6125 = vst [vmem:[#allocation26_spill] sm:$0xff] %v4493_v36 }
 0x17f   : > { %v1043_v9 = vmax.f32 %v964_v23, 0.0  ;;  %3252 = vmatmul.msk.f32.gmra.mxu1 %vm825_vm1, %v805_v22  ;;  %v4487_v22 = vpop.permute.xlu1 %2341  ;;  %v3328_v23 = vadd.f32 -1e-05, %v4098_v11  ;;  %2691 = vrot.lane.b32.xlu1 %v3335_v3, %s3917_s26  ;;  %v1325_v3 = vld [vmem:[#allocation13 + $0x28] sm:$0xff] }
 0x180   : > { %6124 = vst [vmem:[#allocation25_spill] sm:$0xff] %v4487_v22  ;;  %2699 = vrot.lane.b32.xlu0 %v3339_v4, %s3917_s26 }
 0x181   : > { %3268 = vmatmul.msk.f32.gmra.mxu2 %vm825_vm1, %v1043_v9  ;;  %2677 = vrot.lane.b32.xlu2 %v3328_v23, %s3917_s26  ;;  %v1324_v23 = vld [vmem:[#allocation13 + $0x20] sm:$0xff] }
 0x182   : > { %v760_v37 = vpop.f32.mrf.mxu0 }
 0x183   : > { %v761_v40 = vadd.f32 %v4209_v35, %v760_v37 }
 0x184   : > { %v966_v43 = vpop.f32.mrf.mxu1 }
 0x185   : > { %v806_v44 = vmax.f32 %v761_v40, 0.0  ;;  %v967_v45 = vadd.f32 %v4367_v5, %v966_v43 }
 0x187   : > { %v1044_v47 = vmax.f32 %v967_v45, 0.0  ;;  %3253 = vmatmul.msk.f32.gmra.mxu1 %vm825_vm1, %v806_v44  ;;  %v4498_v44 = vpop.permute.xlu0 %2349  ;;  %v3338_v45 = vadd.f32 -1e-05, %v4168_v21  ;;  %v1326_v21 = vld [vmem:[#allocation13 + $0x30] sm:$0xff] }
 0x188   : > { %6126 = vst [vmem:[#allocation27_spill] sm:$0xff] %v4498_v44  ;;  %1437 = vmatpush.msra.mxu3 %v1326_v21 }
 0x189   : > { %3269 = vmatmul.msk.f32.gmra.mxu2 %vm825_vm1, %v1044_v47  ;;  %v3342_v47 = vadd.f32 -1e-05, %v4196_v33  ;;  %2697 = vrot.lane.b32.xlu1 %v3338_v45, %s3917_s26 }
 0x18a   : > { %v763_v56 = vpop.f32.mrf.mxu0  ;;  %2683 = vrot.lane.b32.xlu2 %v3331_v51, %s3917_s26  ;;  %1438 = vmatpush.msra.mxu3 %v1325_v3  ;;  %v3348_v3 = vadd.f32 -1e-05, %v4249_v54 }
 0x18b   : > { %v764_v57 = vadd.f32 %v4209_v35, %v763_v56  ;;  %2705 = vrot.lane.b32.xlu0 %v3342_v47, %s3917_s26 }
 0x18c   : > { %v969_v60 = vpop.f32.mrf.mxu1  ;;  %1439 = vmatpush.msra.mxu3 %v1324_v23 }
 0x18d   : > { %v807_v61 = vmax.f32 %v764_v57, 0.0  ;;  %v970_v18 = vadd.f32 %v4367_v5, %v969_v60  ;;  %v4506_v57 = vpop.permute.xlu1 %2347 }
 0x18e   : > { %6127 = vst [vmem:[#allocation28_spill] sm:$0xff] %v4506_v57 }
 0x18f   : > { %v1045_v1 = vmax.f32 %v970_v18, 0.0  ;;  %3254 = vmatmul.msk.f32.gmra.mxu1 %vm825_vm1, %v807_v61 }
 0x191   : > { %3270 = vmatmul.msk.f32.gmra.mxu2 %vm825_vm1, %v1045_v1  ;;  %v4511_v1 = vpop.permute.xlu2 %2339 }
 0x192   : > { %v766_v9 = vpop.f32.mrf.mxu0  ;;  %6128 = vst [vmem:[#allocation29_spill] sm:$0xff] %v4511_v1 }
 0x193   : > { %v767_v28 = vadd.f32 %v4209_v35, %v766_v9  ;;  %v3341_v9 = vadd.f32 -1e-05, %v4189_v32  ;;  %v1322_v32 = vld [vmem:[#allocation13 + $0x10] sm:$0xff] }
 0x194   : > { %v972_v20 = vpop.f32.mrf.mxu1 }
 0x195   : > { %v808_v37 = vmax.f32 %v767_v28, 0.0  ;;  %v973_v40 = vadd.f32 %v4367_v5, %v972_v20  ;;  %v3345_v28 = vadd.f32 -1e-05, %v4222_v42  ;;  %v4517_v20 = vpop.permute.xlu0 %2355  ;;  %2703 = vrot.lane.b32.xlu1 %v3341_v9, %s3917_s26 }
 0x196   : > { %6129 = vst [vmem:[#allocation30_spill] sm:$0xff] %v4517_v20 }
 0x197   : > { %v1046_v43 = vmax.f32 %v973_v40, 0.0  ;;  %3255 = vmatmul.msk.f32.gmra.mxu1 %vm825_vm1, %v808_v37  ;;  %v1323_v37 = vld [vmem:[#allocation13 + $0x18] sm:$0xff]  ;;  %v3334_v40 = vadd.f32 -1e-05, %v4139_v16  ;;  %2711 = vrot.lane.b32.xlu0 %v3345_v28, %s3917_s26 }
 0x198   : > { %1440 = vmatpush.msra.mxu3 %v1323_v37 }
 0x199   : > { %3271 = vmatmul.msk.f32.gmra.mxu2 %vm825_vm1, %v1046_v43  ;;  %2689 = vrot.lane.b32.xlu2 %v3334_v40, %s3917_s26 }
 0x19a   : > { %v769_v55 = vpop.f32.mrf.mxu0  ;;  %1441 = vmatpush.msra.mxu3 %v1322_v32  ;;  %v3347_v32 = vadd.f32 -1e-05, %v4240_v50 }
 0x19b   : > { %v770_v56 = vadd.f32 %v4209_v35, %v769_v55  ;;  %v4525_v55 = vpop.permute.xlu1 %2353 }
 0x19c   : > { %v975_v60 = vpop.f32.mrf.mxu1  ;;  %6130 = vst [vmem:[#allocation31_spill] sm:$0xff] %v4525_v55 }
 0x19d   : > { %v809_v61 = vmax.f32 %v770_v56, 0.0  ;;  %v976_v18 = vadd.f32 %v4367_v5, %v975_v60  ;;  %v1321_v56 = vld [vmem:[#allocation13 + $0x8] sm:$0xff]  ;;  %v4528_v60 = vpop.permute.xlu2 %2345  ;;  %v4536_v28 = vpop.permute.xlu0 %2361 }
 0x19e   : > { %1442 = vmatpush.msra.mxu3 %v1321_v56  ;;  %6131 = vst [vmem:[#allocation32_spill] sm:$0xff] %v4528_v60 }
 0x19f   : > { %v1047_v4 = vmax.f32 %v976_v18, 0.0  ;;  %3256 = vmatmul.msk.f32.gmra.mxu1 %vm825_vm1, %v809_v61  ;;  %v1320_v61 = vld [vmem:[#allocation13] sm:$0xff]  ;;  %v3344_v18 = vadd.f32 -1e-05, %v4213_v38  ;;  %6132 = vst [vmem:[#allocation33_spill] sm:$0xff] %v4536_v28  ;;  %2717 = vrot.lane.b32.xlu0 %v3348_v3, %s3917_s26 }
 0x1a0   : > { %1443 = vmatpush.msra.mxu3 %v1320_v61 }
 0x1a1   : > { %3272 = vmatmul.msk.f32.gmra.mxu2 %vm825_vm1, %v1047_v4  ;;  %v3337_v4 = vadd.f32 -1e-05, %v4156_v19  ;;  %2709 = vrot.lane.b32.xlu1 %v3344_v18, %s3917_s26 }
 0x1a2   : > { %v772_v43 = vpop.f32.mrf.mxu0 }
 0x1a3   : > { %v773_v45 = vadd.f32 %v4209_v35, %v772_v43  ;;  %2695 = vrot.lane.b32.xlu2 %v3337_v4, %s3917_s26 }
 0x1a4   : > { %v978_v47 = vpop.f32.mrf.mxu1 }
 0x1a5   : > { %v810_v49 = vmax.f32 %v773_v45, 0.0  ;;  %v979_v51 = vadd.f32 %v4367_v5, %v978_v47  ;;  %v4542_v45 = vpop.permute.xlu1 %2359  ;;  %v3351_v47 = vadd.f32 -1e-05, %v4276_v2  ;;  %v4555_v3 = vpop.permute.xlu0 %2367 }
 0x1a6   : > { %6133 = vst [vmem:[#allocation34_spill] sm:$0xff] %v4542_v45 }
 0x1a7   : > { %v1048_v21 = vmax.f32 %v979_v51, 0.0  ;;  %3257 = vmatmul.msk.f32.gmra.mxu1 %vm825_vm1, %v810_v49  ;;  %v4547_v49 = vpop.permute.xlu2 %2351  ;;  %v3340_v51 = vadd.f32 -1e-05, %v4182_v30  ;;  %2723 = vrot.lane.b32.xlu0 %v3351_v47, %s3917_s26  ;;  %6135 = vst [vmem:[#allocation36_spill] sm:$0xff] %v4555_v3  ;;  %v3353_v47 = vadd.f32 -1e-05, %v4294_v26 }
 0x1a8   : > { %6134 = vst [vmem:[#allocation35_spill] sm:$0xff] %v4547_v49 }
 0x1a9   : > { %3273 = vmatmul.msk.f32.gmra.mxu2 %vm825_vm1, %v1048_v21  ;;  %2715 = vrot.lane.b32.xlu1 %v3347_v32, %s3917_s26 }
 0x1aa   : > { %v775_v23 = vpop.f32.mrf.mxu0 }
 0x1ab   : > { %v776_v9 = vadd.f32 %v4209_v35, %v775_v23  ;;  %2701 = vrot.lane.b32.xlu2 %v3340_v51, %s3917_s26  ;;  %v3350_v23 = vadd.f32 -1e-05, %v4267_v62  ;;  %v2446_v51 = vadd.f32 1e-05, %v4083_v8 }
 0x1ac   : > { %v981_v37 = vpop.f32.mrf.mxu1 }
 0x1ad   : > { %v811_v40 = vmax.f32 %v776_v9, 0.0  ;;  %v982_v38 = vadd.f32 %v4367_v5, %v981_v37  ;;  %v3354_v9 = vadd.f32 -1e-05, %v4303_v31  ;;  %v3343_v37 = vadd.f32 -1e-05, %v4203_v34  ;;  %v4570_v32 = vpop.permute.xlu0 %2373 }
 0x1ae   : > { %6138 = vst [vmem:[#allocation39_spill] sm:$0xff] %v4570_v32 }
 0x1af   : > { %v1049_v43 = vmax.f32 %v982_v38, 0.0  ;;  %3258 = vmatmul.msk.f32.gmra.mxu1 %vm825_vm1, %v811_v40  ;;  %v4565_v40 = vpop.permute.xlu2 %2357  ;;  %2729 = vrot.lane.b32.xlu0 %v3354_v9, %s3917_s26 }
 0x1b0   : > { %6137 = vst [vmem:[#allocation38_spill] sm:$0xff] %v4565_v40 }
 0x1b1   : > { %3274 = vmatmul.msk.f32.gmra.mxu2 %vm825_vm1, %v1049_v43  ;;  %2721 = vrot.lane.b32.xlu1 %v3350_v23, %s3917_s26 }
 0x1b2   : > { %v778_v56 = vpop.f32.mrf.mxu0 }
 0x1b3   : > { %v779_v21 = vadd.f32 %v4209_v35, %v778_v56  ;;  %v4561_v35 = vpop.permute.xlu1 %2365  ;;  %2707 = vrot.lane.b32.xlu2 %v3343_v37, %s3917_s26  ;;  %v4575_v56 = vld [vmem:[#allocation11] ss:$0 sm:$0xff]  ;;  %v2449_v37 = vadd.f32 1e-05, %v4098_v11 }
 0x1b4   : > { %v984_v61 = vpop.f32.mrf.mxu1  ;;  %6136 = vst [vmem:[#allocation37_spill] sm:$0xff] %v4561_v35 }
 0x1b5   : > { %v812_v18 = vmax.f32 %v779_v21, 0.0  ;;  %v985_v50 = vadd.f32 %v4367_v5, %v984_v61  ;;  %v3346_v21 = vadd.f32 -1e-05, %v4231_v46 }
 0x1b7   : > { %v1050_v4 = vmax.f32 %v985_v50, 0.0  ;;  %3259 = vmatmul.msk.f32.gmra.mxu1 %vm825_vm1, %v812_v18  ;;  %2831 = vrot.lane.b32.xlu0 %v2446_v51, %s3916_s21 }
 0x1b9   : > { %3275 = vmatmul.msk.f32.gmra.mxu2 %vm825_vm1, %v1050_v4  ;;  %2727 = vrot.lane.b32.xlu1 %v3353_v47, %s3917_s26  ;;  %v4585_v4 = vpop.permute.xlu2 %2363 }
 0x1ba   : > { %6140 = vst [vmem:[#allocation41_spill] sm:$0xff] %v4585_v4 }
 0x1bb   : > { %v4579_v61 = vpop.permute.xlu1 %2371  ;;  %2713 = vrot.lane.b32.xlu2 %v3346_v21, %s3917_s26 }
 0x1bc   : > { %v987_v38 = vpop.f32.mrf.mxu1  ;;  %6139 = vst [vmem:[#allocation40_spill] sm:$0xff] %v4579_v61 }
 0x1bd   : > { %v988_v43 = vadd.f32 %v4367_v5, %v987_v38  ;;  %v2445_v38 = vadd.f32 1e-05, %v4078_v7 }
 0x1bf   : > { %v1051_v62 = vmax.f32 %v988_v43, 0.0  ;;  %v4589_v43 = vpop.permute.xlu0 %2379  ;;  %2837 = vrot.lane.b32.xlu0 %v2449_v37, %s3916_s21 }
 0x1c0   : > { %6141 = vst [vmem:[#allocation42_spill] sm:$0xff] %v4589_v43 }
 0x1c1   : > { %3276 = vmatmul.msk.f32.gmra.mxu2 %vm825_vm1, %v1051_v62  ;;  %v3349_v62 = vadd.f32 -1e-05, %v4258_v58  ;;  %2829 = vrot.lane.b32.xlu1 %v2445_v38, %s3916_s21 }
 0x1c3   : > { %2719 = vrot.lane.b32.xlu2 %v3349_v62, %s3917_s26  ;;  %v4599_v21 = vpop.permute.xlu1 %2377 }
 0x1c4   : > { %v990_v18 = vpop.f32.mrf.mxu1  ;;  %v1192_v50 = vpop.f32.mrf.mxu2  ;;  %6142 = vst [vmem:[#allocation43_spill] sm:$0xff] %v4599_v21 }
 0x1c5   : > { %v991_v26 = vadd.f32 %v4367_v5, %v990_v18  ;;  %v1193_v8 = vadd.f32 %v4575_v56, %v1192_v50 }
 0x1c7   : > { %v1052_v23 = vmax.f32 %v991_v26, 0.0  ;;  %v1288_v9 = vmax.f32 %v1193_v8, 0.0  ;;  %v4601_v26 = vpop.permute.xlu2 %2369  ;;  %v2452_v8 = vadd.f32 1e-05, %v4125_v14  ;;  %v4609_v37 = vpop.permute.xlu0 %2481 }
 0x1c8   : > { %6143 = vst [vmem:[#allocation44_spill] sm:$0xff] %v4601_v26 }
 0x1c9   : > { %3277 = vmatmul.msk.f32.gmra.mxu2 %vm825_vm1, %v1052_v23  ;;  %3292 = vmatmul.msk.f32.vlgmr.msra.gmra.mxu3 %vm825_vm1, %v1288_v9  ;;  %v2448_v23 = vadd.f32 1e-05, %v4093_v10  ;;  %v3352_v9 = vadd.f32 -1e-05, %v4285_v6 }
 0x1ca   : > { %2843 = vrot.lane.b32.xlu0 %v2452_v8, %s3916_s21  ;;  %v3355_v8 = vadd.f32 -1e-05, %v4313_v39  ;;  %v2454_v39 = vadd.f32 1e-05, %v4128_v15 }
 0x1cb   : > { %2835 = vrot.lane.b32.xlu1 %v2448_v23, %s3916_s21  ;;  %2725 = vrot.lane.b32.xlu2 %v3352_v9, %s3917_s26 }
 0x1cc   : > { %v993_v47 = vpop.f32.mrf.mxu1  ;;  %v1195_v51 = vpop.f32.mrf.mxu2 }
 0x1cd   : > { %v994_v11 = vadd.f32 %v4367_v5, %v993_v47  ;;  %v1196_v7 = vadd.f32 %v4575_v56, %v1195_v51 }
 0x1cf   : > { %v1053_v18 = vmax.f32 %v994_v11, 0.0  ;;  %v1289_v50 = vmax.f32 %v1196_v7, 0.0  ;;  %v4615_v11 = vpop.permute.xlu1 %2479  ;;  %v2455_v7 = vadd.f32 1e-05, %v4139_v16  ;;  %v4627_v16 = vpop.permute.xlu0 %2487 }
 0x1d1   : > { %3278 = vmatmul.msk.f32.gmra.mxu2 %vm825_vm1, %v1053_v18  ;;  %3293 = vmatmul.msk.f32.gmra.mxu3 %vm825_vm1, %v1289_v50  ;;  %v2451_v18 = vadd.f32 1e-05, %v4114_v13  ;;  %v4621_v50 = vpop.permute.xlu2 %2375 }
 0x1d2   : > { %6144 = vst [vmem:[#allocation45_spill] sm:$0xff] %v4621_v50  ;;  %2849 = vrot.lane.b32.xlu0 %v2455_v7, %s3916_s21 }
 0x1d3   : > { %2841 = vrot.lane.b32.xlu1 %v2451_v18, %s3916_s21  ;;  %2731 = vrot.lane.b32.xlu2 %v3355_v8, %s3917_s26 }
 0x1d4   : > { %v996_v38 = vpop.f32.mrf.mxu1  ;;  %v1198_v62 = vpop.f32.mrf.mxu2 }
 0x1d5   : > { %v997_v14 = vadd.f32 %v4367_v5, %v996_v38  ;;  %v1199_v10 = vadd.f32 %v4575_v56, %v1198_v62 }
 0x1d7   : > { %v1054_v47 = vmax.f32 %v997_v14, 0.0  ;;  %v1290_v51 = vmax.f32 %v1199_v10, 0.0  ;;  %v2458_v10 = vadd.f32 1e-05, %v4156_v19 }
 0x1d9   : > { %3279 = vmatmul.msk.f32.gmra.mxu2 %vm825_vm1, %v1054_v47  ;;  %3294 = vmatmul.msk.f32.gmra.mxu3 %vm825_vm1, %v1290_v51  ;;  %v4633_v47 = vpop.permute.xlu1 %2485  ;;  %v3595_v51 = vld [vmem:[%s4075_s24 + $0x10] sm:$0xff]  ;;  %v4639_v18 = vpop.permute.xlu2 %2477 }
 0x1da   : > { %v2447_v7 = vadd.f32 1e-05, %v3595_v51  ;;  %2855 = vrot.lane.b32.xlu0 %v2458_v10, %s3916_s21  ;;  %v3596_v10 = vld [vmem:[%s4075_s24 + $0x28] sm:$0xff] }
 0x1db   : > { %2847 = vrot.lane.b32.xlu1 %v2454_v39, %s3916_s21  ;;  %v2450_v39 = vadd.f32 1e-05, %v3596_v10 }
 0x1dc   : > { %v999_v23 = vpop.f32.mrf.mxu1  ;;  %v1201_v9 = vpop.f32.mrf.mxu2  ;;  %2833 = vrot.lane.b32.xlu2 %v2447_v7, %s3916_s21 }
 0x1dd   : > { %v1000_v13 = vadd.f32 %v4367_v5, %v999_v23  ;;  %v1202_v38 = vadd.f32 %v4575_v56, %v1201_v9  ;;  %v4645_v9 = vpop.permute.xlu0 %2493 }
 0x1de   : > { %6145 = vst [vmem:[#allocation46_spill] sm:$0xff] %v4645_v9 }
 0x1df   : > { %v1055_v62 = vmax.f32 %v1000_v13, 0.0  ;;  %v1291_v14 = vmax.f32 %v1202_v38, 0.0 }
 0x1e1   : > { %3280 = vmatmul.msk.f32.gmra.mxu2 %vm825_vm1, %v1055_v62  ;;  %3295 = vmatmul.msk.f32.gmra.mxu3 %vm825_vm1, %v1291_v14  ;;  %v2461_v62 = vadd.f32 1e-05, %v4182_v30  ;;  %v2457_v14 = vadd.f32 1e-05, %v4142_v17  ;;  %v4653_v51 = vpop.permute.xlu1 %2491 }
 0x1e3   : > { %2853 = vrot.lane.b32.xlu1 %v2457_v14, %s3916_s21  ;;  %2861 = vrot.lane.b32.xlu0 %v2461_v62, %s3916_s21  ;;  %v3597_v62 = vld [vmem:[%s4075_s24 + $0x40] sm:$0xff] }
 0x1e4   : > { %v1002_v19 = vpop.f32.mrf.mxu1  ;;  %v1204_v8 = vpop.f32.mrf.mxu2  ;;  %2839 = vrot.lane.b32.xlu2 %v2450_v39, %s3916_s21  ;;  %v2453_v10 = vadd.f32 1e-05, %v3597_v62 }
 0x1e5   : > { %v1003_v15 = vadd.f32 %v4367_v5, %v1002_v19  ;;  %v1205_v23 = vadd.f32 %v4575_v56, %v1204_v8  ;;  %v4659_v8 = vpop.permute.xlu2 %2483  ;;  %v4663_v14 = vpop.permute.xlu0 %2499 }
 0x1e6   : > { %6146 = vst [vmem:[#allocation47_spill] sm:$0xff] %v4663_v14 }
 0x1e7   : > { %v1056_v13 = vmax.f32 %v1003_v15, 0.0  ;;  %v1292_v38 = vmax.f32 %v1205_v23, 0.0 }
 0x1e9   : > { %3281 = vmatmul.msk.f32.gmra.mxu2 %vm825_vm1, %v1056_v13  ;;  %3296 = vmatmul.msk.f32.gmra.mxu3 %vm825_vm1, %v1292_v38  ;;  %v2464_v13 = vadd.f32 1e-05, %v4203_v34  ;;  %v2460_v38 = vadd.f32 1e-05, %v4175_v24  ;;  %v4671_v34 = vpop.permute.xlu1 %2497 }
 0x1ea   : > { %6147 = vst [vmem:[#allocation48_spill] sm:$0xff] %v4671_v34 }
 0x1eb   : > { %2859 = vrot.lane.b32.xlu1 %v2460_v38, %s3916_s21  ;;  %2867 = vrot.lane.b32.xlu0 %v2464_v13, %s3916_s21  ;;  %v2463_v38 = vadd.f32 1e-05, %v4196_v33  ;;  %v3598_v13 = vld [vmem:[%s4075_s24 + $0x58] sm:$0xff] }
 0x1ec   : > { %v1005_v7 = vpop.f32.mrf.mxu1  ;;  %v1207_v19 = vpop.f32.mrf.mxu2  ;;  %2845 = vrot.lane.b32.xlu2 %v2453_v10, %s3916_s21  ;;  %v2456_v62 = vadd.f32 1e-05, %v3598_v13 }
 0x1ed   : > { %v1006_v30 = vadd.f32 %v4367_v5, %v1005_v7  ;;  %v1208_v17 = vadd.f32 %v4575_v56, %v1207_v19  ;;  %v4683_v10 = vpop.permute.xlu0 %2505 }
 0x1ee   : > { %6148 = vst [vmem:[#allocation49_spill] sm:$0xff] %v4683_v10 }
 0x1ef   : > { %v1057_v15 = vmax.f32 %v1006_v30, 0.0  ;;  %v1293_v23 = vmax.f32 %v1208_v17, 0.0 }
 0x1f1   : > { %3282 = vmatmul.msk.f32.gmra.mxu2 %vm825_vm1, %v1057_v15  ;;  %3297 = vmatmul.msk.f32.gmra.mxu3 %vm825_vm1, %v1293_v23  ;;  %v4675_v15 = vpop.permute.xlu2 %2489  ;;  %v2467_v23 = vadd.f32 1e-05, %v4231_v46 }
 0x1f3   : > { %2865 = vrot.lane.b32.xlu1 %v2463_v38, %s3916_s21  ;;  %2873 = vrot.lane.b32.xlu0 %v2467_v23, %s3916_s21  ;;  %v2466_v38 = vadd.f32 1e-05, %v4222_v42  ;;  %v3599_v23 = vld [vmem:[%s4075_s24 + $0x70] sm:$0xff] }
 0x1f4   : > { %v1008_v39 = vpop.f32.mrf.mxu1  ;;  %v1210_v7 = vpop.f32.mrf.mxu2  ;;  %2851 = vrot.lane.b32.xlu2 %v2456_v62, %s3916_s21  ;;  %v2459_v62 = vadd.f32 1e-05, %v3599_v23  ;;  %v2469_v23 = vadd.f32 1e-05, %v4249_v54 }
 0x1f5   : > { %v1009_v24 = vadd.f32 %v4367_v5, %v1008_v39  ;;  %v1211_v19 = vadd.f32 %v4575_v56, %v1210_v7 }
 0x1f7   : > { %v1058_v30 = vmax.f32 %v1009_v24, 0.0  ;;  %v1294_v17 = vmax.f32 %v1211_v19, 0.0  ;;  %v4689_v24 = vpop.permute.xlu1 %2503 }
 0x1f8   : > { %6149 = vst [vmem:[#allocation50_spill] sm:$0xff] %v4689_v24 }
 0x1f9   : > { %3283 = vmatmul.msk.f32.gmra.mxu2 %vm825_vm1, %v1058_v30  ;;  %3298 = vmatmul.msk.f32.gmra.mxu3 %vm825_vm1, %v1294_v17  ;;  %v2470_v17 = vadd.f32 1e-05, %v4258_v58  ;;  %v4693_v13 = vpop.permute.xlu2 %2495  ;;  %v4701_v58 = vpop.permute.xlu0 %2511 }
 0x1fa   : > { %6150 = vst [vmem:[#allocation51_spill] sm:$0xff] %v4693_v13 }
 0x1fb   : > { %2871 = vrot.lane.b32.xlu1 %v2466_v38, %s3916_s21  ;;  %2879 = vrot.lane.b32.xlu0 %v2470_v17, %s3916_s21  ;;  %6151 = vst [vmem:[#allocation52_spill] sm:$0xff] %v4701_v58  ;;  %v3600_v17 = vld [vmem:[%s4075_s24 + $0x88] sm:$0xff] }
 0x1fc   : > { %v1011_v39 = vpop.f32.mrf.mxu1  ;;  %v1213_v7 = vpop.f32.mrf.mxu2  ;;  %2857 = vrot.lane.b32.xlu2 %v2459_v62, %s3916_s21  ;;  %v2462_v38 = vadd.f32 1e-05, %v3600_v17 }
 0x1fd   : > { %v1012_v46 = vadd.f32 %v4367_v5, %v1011_v39  ;;  %v1214_v33 = vadd.f32 %v4575_v56, %v1213_v7 }
 0x1ff   : > { %v1059_v19 = vmax.f32 %v1012_v46, 0.0  ;;  %v1295_v30 = vmax.f32 %v1214_v33, 0.0  ;;  %v4707_v43 = vpop.permute.xlu1 %2509 }
 0x200   : > { %6152 = vst [vmem:[#allocation53_spill] sm:$0xff] %v4707_v43 }
 0x201   : > { %3284 = vmatmul.msk.f32.gmra.mxu2 %vm825_vm1, %v1059_v19  ;;  %3299 = vmatmul.msk.f32.gmra.mxu3 %vm825_vm1, %v1295_v30  ;;  %v2473_v30 = vadd.f32 1e-05, %v4285_v6  ;;  %v4713_v62 = vpop.permute.xlu2 %2501 }
 0x202   : > { %6153 = vst [vmem:[#allocation54_spill] sm:$0xff] %v4713_v62 }
 0x203   : > { %2877 = vrot.lane.b32.xlu1 %v2469_v23, %s3916_s21  ;;  %2885 = vrot.lane.b32.xlu0 %v2473_v30, %s3916_s21  ;;  %v3601_v23 = vld [vmem:[%s4075_s24 + $0xa0] sm:$0xff] }
 0x204   : > { %v1014_v39 = vpop.f32.mrf.mxu1  ;;  %v1216_v7 = vpop.f32.mrf.mxu2  ;;  %2863 = vrot.lane.b32.xlu2 %v2462_v38, %s3916_s21  ;;  %v2465_v30 = vadd.f32 1e-05, %v3601_v23 }
 0x205   : > { %v1015_v42 = vadd.f32 %v4367_v5, %v1014_v39  ;;  %v1217_v46 = vadd.f32 %v4575_v56, %v1216_v7 }
 0x207   : > { %v1060_v33 = vmax.f32 %v1015_v42, 0.0  ;;  %v1296_v19 = vmax.f32 %v1217_v46, 0.0  ;;  %v4719_v42 = vpop.permute.xlu0 %2517  ;;  %v4726_v17 = vpop.permute.xlu1 %2515 }
 0x208   : > { %6154 = vst [vmem:[#allocation55_spill] sm:$0xff] %v4719_v42 }
 0x209   : > { %3285 = vmatmul.msk.f32.gmra.mxu2 %vm825_vm1, %v1060_v33  ;;  %3300 = vmatmul.msk.f32.gmra.mxu3 %vm825_vm1, %v1296_v19  ;;  %v2472_v19 = vadd.f32 1e-05, %v4276_v2  ;;  %6155 = vst [vmem:[#allocation56_spill] sm:$0xff] %v4726_v17 }
 0x20b   : > { %2883 = vrot.lane.b32.xlu1 %v2472_v19, %s3916_s21  ;;  %v3602_v19 = vld [vmem:[%s4075_s24 + $0xb8] sm:$0xff] }
 0x20c   : > { %v1017_v6 = vpop.f32.mrf.mxu1  ;;  %v1219_v39 = vpop.f32.mrf.mxu2  ;;  %2869 = vrot.lane.b32.xlu2 %v2465_v30, %s3916_s21  ;;  %v2468_v23 = vadd.f32 1e-05, %v3602_v19 }
 0x20d   : > { %v1018_v54 = vadd.f32 %v4367_v5, %v1017_v6  ;;  %v1220_v7 = vadd.f32 %v4575_v56, %v1219_v39  ;;  %v4729_v39 = vpop.permute.xlu2 %2507 }
 0x20e   : > { %6156 = vst [vmem:[#allocation57_spill] sm:$0xff] %v4729_v39 }
 0x20f   : > { %v1061_v46 = vmax.f32 %v1018_v54, 0.0  ;;  %v1297_v33 = vmax.f32 %v1220_v7, 0.0  ;;  %v4734_v21 = vpop.permute.xlu0 %2523 }
 0x210   : > { %6157 = vst [vmem:[#allocation58_spill] sm:$0xff] %v4734_v21 }
 0x211   : > { %3286 = vmatmul.msk.f32.gmra.mxu2 %vm825_vm1, %v1061_v46  ;;  %3301 = vmatmul.msk.f32.gmra.mxu3 %vm825_vm1, %v1297_v33  ;;  %v2475_v33 = vadd.f32 1e-05, %v4303_v31 }
 0x213   : > { %2889 = vrot.lane.b32.xlu1 %v2475_v33, %s3916_s21 }
 0x214   : > { %v1020_v38 = vpop.f32.mrf.mxu1  ;;  %v1222_v6 = vpop.f32.mrf.mxu2  ;;  %2875 = vrot.lane.b32.xlu2 %v2468_v23, %s3916_s21 }
 0x215   : > { %v1021_v54 = vadd.f32 %v4367_v5, %v1020_v38  ;;  %v1223_v2 = vadd.f32 %v4575_v56, %v1222_v6  ;;  %v4741_v6 = vpop.permute.xlu1 %2521 }
 0x216   : > { %6158 = vst [vmem:[#allocation59_spill] sm:$0xff] %v4741_v6 }
 0x217   : > { %v1062_v7 = vmax.f32 %v1021_v54, 0.0  ;;  %v1298_v46 = vmax.f32 %v1223_v2, 0.0  ;;  %v4745_v2 = vpop.permute.xlu2 %2513  ;;  %v4750_v19 = vpop.permute.xlu0 %2529 }
 0x218   : > { %6159 = vst [vmem:[#allocation60_spill] sm:$0xff] %v4745_v2 }
 0x219   : > { %3287 = vmatmul.msk.f32.gmra.mxu2 %vm825_vm1, %v1062_v7  ;;  %3302 = vmatmul.msk.f32.gmra.mxu3 %vm825_vm1, %v1298_v46  ;;  %v3603_v46 = vld [vmem:[%s4075_s24 + $0xd0] sm:$0xff]  ;;  %6160 = vst [vmem:[#allocation61_spill] sm:$0xff] %v4750_v19 }
 0x21a   : > { %v2471_v33 = vadd.f32 1e-05, %v3603_v46 }
 0x21c   : > { %v1023_v30 = vpop.f32.mrf.mxu1  ;;  %v1225_v38 = vpop.f32.mrf.mxu2  ;;  %2881 = vrot.lane.b32.xlu2 %v2471_v33, %s3916_s21 }
 0x21d   : > { %v1024_v54 = vadd.f32 %v4367_v5, %v1023_v30  ;;  %v1226_v31 = vadd.f32 %v4575_v56, %v1225_v38  ;;  %v4755_v61 = vpop.permute.xlu1 %2527 }
 0x21e   : > { %6161 = vst [vmem:[#allocation62_spill] sm:$0xff] %v4755_v61 }
 0x21f   : > { %v1063_v7 = vmax.f32 %v1024_v54, 0.0  ;;  %v1299_v50 = vmax.f32 %v1226_v31, 0.0  ;;  %v4763_v39 = vpop.permute.xlu0 %2535 }
 0x220   : > { %6163 = vst [vmem:[#allocation64_spill] sm:$0xff] %v4763_v39 }
 0x221   : > { %3288 = vmatmul.msk.f32.gmra.mxu2 %vm825_vm1, %v1063_v7  ;;  %3303 = vmatmul.msk.f32.gmra.mxu3 %vm825_vm1, %v1299_v50  ;;  %v4757_v7 = vpop.permute.xlu2 %2519  ;;  %v3604_v50 = vld [vmem:[%s4075_s24 + $0xe8] sm:$0xff] }
 0x222   : > { %6162 = vst [vmem:[#allocation63_spill] sm:$0xff] %v4757_v7  ;;  %v2474_v46 = vadd.f32 1e-05, %v3604_v50 }
 0x224   : > { %v1026_v23 = vpop.f32.mrf.mxu1  ;;  %v1228_v32 = vpop.f32.mrf.mxu2  ;;  %2887 = vrot.lane.b32.xlu2 %v2474_v46, %s3916_s21 }
 0x225   : > { %v1027_v30 = vadd.f32 %v4367_v5, %v1026_v23  ;;  %v1229_v38 = vadd.f32 %v4575_v56, %v1228_v32  ;;  %v4767_v26 = vpop.permute.xlu1 %2533 }
 0x226   : > { %6164 = vst [vmem:[#allocation65_spill] sm:$0xff] %v4767_v26 }
 0x227   : > { %v1064_v54 = vmax.f32 %v1027_v30, 0.0  ;;  %v1300_v31 = vmax.f32 %v1229_v38, 0.0  ;;  %v4775_v60 = vpop.permute.xlu0 %2669 }
 0x229   : > { %3289 = vmatmul.msk.f32.gmra.mxu2 %vm825_vm1, %v1064_v54  ;;  %3304 = vmatmul.msk.f32.gmra.mxu3 %vm825_vm1, %v1300_v31  ;;  %v4771_v54 = vpop.permute.xlu2 %2525 }
 0x22a   : > { %6165 = vst [vmem:[#allocation66_spill] sm:$0xff] %v4771_v54 }
 0x22c   : > { %v1029_v33 = vpop.f32.mrf.mxu1  ;;  %v1231_v57 = vpop.f32.mrf.mxu2 }
 0x22d   : > { %v1030_v32 = vadd.f32 %v4367_v5, %v1029_v33  ;;  %v1232_v23 = vadd.f32 %v4575_v56, %v1231_v57 }
 0x22f   : > { %v1065_v30 = vmax.f32 %v1030_v32, 0.0  ;;  %v1301_v38 = vmax.f32 %v1232_v23, 0.0  ;;  %v4779_v32 = vpop.permute.xlu1 %2539  ;;  %v4784_v19 = vpop.permute.xlu0 %2675 }
 0x230   : > { %6166 = vst [vmem:[#allocation67_spill] sm:$0xff] %v4779_v32 }
 0x231   : > { %3290 = vmatmul.msk.f32.gmra.mxu2 %vm825_vm1, %v1065_v30  ;;  %3305 = vmatmul.msk.f32.gmra.mxu3 %vm825_vm1, %v1301_v38  ;;  %v4781_v30 = vpop.permute.xlu2 %2531 }
 0x232   : > { %6167 = vst [vmem:[#allocation68_spill] sm:$0xff] %v4781_v30  ;;  %v4799_v30 = vld [vmem:[#allocation16] ss:$0 sm:$0xff] }
 0x234   : > { %v1032_v31 = vpop.f32.mrf.mxu1  ;;  %v1234_v50 = vpop.f32.mrf.mxu2 }
 0x235   : > { %v1033_v46 = vadd.f32 %v4367_v5, %v1032_v31  ;;  %v1235_v39 = vadd.f32 %v4575_v56, %v1234_v50 }
 0x237   : > { %v1066_v33 = vmax.f32 %v1033_v46, 0.0  ;;  %v1302_v57 = vmax.f32 %v1235_v39, 0.0  ;;  %v4787_v31 = vpop.permute.xlu1 %2673 }
 0x239   : > { %3291 = vmatmul.msk.f32.gmra.mxu2 %vm825_vm1, %v1066_v33  ;;  %3306 = vmatmul.msk.f32.gmra.mxu3 %vm825_vm1, %v1302_v57  ;;  %v4790_v50 = vpop.permute.xlu2 %2537  ;;  %v4793_v33 = vld [vmem:[#allocation14] ss:$0 sm:$0xff]  ;;  %v4795_v57 = vpop.permute.xlu0 %2681 }
 0x23a   : > { %6168 = vst [vmem:[#allocation69_spill] sm:$0xff] %v4790_v50 }
 0x23c   : > { %v1237_v23 = vpop.f32.mrf.mxu2 }
 0x23d   : > { %v1238_v38 = vadd.f32 %v4575_v56, %v1237_v23 }
 0x23f   : > { %v1303_v26 = vmax.f32 %v1238_v38, 0.0  ;;  %v4801_v10 = vpop.permute.xlu1 %2679 }
 0x241   : > { %3307 = vmatmul.msk.f32.gmra.mxu3 %vm825_vm1, %v1303_v26  ;;  %v4803_v50 = vpop.permute.xlu2 %2671 }
 0x244   : > { %v1240_v5 = vpop.f32.mrf.mxu2 }
 0x245   : > { %v1241_v39 = vadd.f32 %v4575_v56, %v1240_v5 }
 0x247   : > { %v1304_v46 = vmax.f32 %v1241_v39, 0.0 }
 0x249   : > { %3308 = vmatmul.msk.f32.gmra.mxu3 %vm825_vm1, %v1304_v46 }
 0x24c   : > { %v1243_v23 = vpop.f32.mrf.mxu2  ;;  %v1445_v38 = vpop.f32.mrf.mxu3 }
 0x24d   : > { %v1244_v32 = vadd.f32 %v4575_v56, %v1243_v23  ;;  %v1446_v26 = vadd.f32 %v4793_v33, %v1445_v38  ;;  %v4808_v23 = vpop.permute.xlu0 %2687 }
 0x24e   : > { %6169 = vst [vmem:[#allocation70_spill] sm:$0xff] %v4808_v23 }
 0x24f   : > { %v1305_v5 = vmax.f32 %v1244_v32, 0.0  ;;  %v1541_v3 = vmax.f32 %v1446_v26, 0.0  ;;  %v4812_v26 = vpop.permute.xlu1 %2685 }
 0x250   : > { %6170 = vst [vmem:[#allocation71_spill] sm:$0xff] %v4812_v26 }
 0x251   : > { %3309 = vmatmul.msk.f32.gmra.mxu3 %vm825_vm1, %v1305_v5  ;;  %v1577_v39 = vmul.f32 %v4799_v30, %v1541_v3  ;;  %v4816_v3 = vpop.permute.xlu2 %2677 }
 0x253   : > { %v1609_v46 = vsel %vm825_vm1, %v1577_v39, 0.0 }
 0x254   : > { %v1246_v61 = vpop.f32.mrf.mxu2  ;;  %v1448_v63 = vpop.f32.mrf.mxu3  ;;  %1610 = vadd.xlane.f32.xlu0 %v1609_v46 }
 0x255   : > { %v1247_v38 = vadd.f32 %v4575_v56, %v1246_v61  ;;  %v1449_v24 = vadd.f32 %v4793_v33, %v1448_v63  ;;  %v4821_v63 = vpop.permute.xlu0 %2693 }
 0x256   : > { %6171 = vst [vmem:[#allocation72_spill] sm:$0xff] %v4821_v63 }
 0x257   : > { %v1306_v35 = vmax.f32 %v1247_v38, 0.0  ;;  %v1542_v32 = vmax.f32 %v1449_v24, 0.0 }
 0x259   : > { %3310 = vmatmul.msk.f32.gmra.mxu3 %vm825_vm1, %v1306_v35  ;;  %v1578_v5 = vmul.f32 %v4799_v30, %v1542_v32  ;;  %v4825_v32 = vpop.permute.xlu1 %2691 }
 0x25a   : > { %6172 = vst [vmem:[#allocation73_spill] sm:$0xff] %v4825_v32 }
 0x25b   : > { %v1612_v39 = vsel %vm825_vm1, %v1578_v5, 0.0 }
 0x25c   : > { %v1249_v54 = vpop.f32.mrf.mxu2  ;;  %v1451_v46 = vpop.f32.mrf.mxu3  ;;  %1613 = vadd.xlane.f32.xlu0 %v1612_v39 }
 0x25d   : > { %v1250_v22 = vadd.f32 %v4575_v56, %v1249_v54  ;;  %v1452_v61 = vadd.f32 %v4793_v33, %v1451_v46  ;;  %v4828_v39 = vpop.permute.xlu2 %2683 }
 0x25e   : > { %6173 = vst [vmem:[#allocation74_spill] sm:$0xff] %v4828_v39 }
 0x25f   : > { %v1307_v24 = vmax.f32 %v1250_v22, 0.0  ;;  %v1543_v38 = vmax.f32 %v1452_v61, 0.0  ;;  %v4832_v61 = vpop.permute.xlu0 %2699 }
 0x260   : > { %6174 = vst [vmem:[#allocation75_spill] sm:$0xff] %v4832_v61 }
 0x261   : > { %3311 = vmatmul.msk.f32.gmra.mxu3 %vm825_vm1, %v1307_v24  ;;  %v1579_v35 = vmul.f32 %v4799_v30, %v1543_v38 }
 0x263   : > { %v1615_v4 = vsel %vm825_vm1, %v1579_v35, 0.0 }
 0x264   : > { %v1252_v5 = vpop.f32.mrf.mxu2  ;;  %v1454_v62 = vpop.f32.mrf.mxu3  ;;  %1616 = vadd.xlane.f32.xlu1 %v1615_v4 }
 0x265   : > { %v1253_v54 = vadd.f32 %v4575_v56, %v1252_v5  ;;  %v1455_v46 = vadd.f32 %v4793_v33, %v1454_v62  ;;  %v4837_v4 = vpop.permute.xlu1 %2697  ;;  %v4841_v62 = vpop.permute.xlu2 %2689 }
 0x266   : > { %6175 = vst [vmem:[#allocation76_spill] sm:$0xff] %v4837_v4 }
 0x267   : > { %v1308_v63 = vmax.f32 %v1253_v54, 0.0  ;;  %v1544_v22 = vmax.f32 %v1455_v46, 0.0  ;;  %6176 = vst [vmem:[#allocation77_spill] sm:$0xff] %v4841_v62 }
 0x269   : > { %3312 = vmatmul.msk.f32.gmra.mxu3 %vm825_vm1, %v1308_v63  ;;  %v1580_v24 = vmul.f32 %v4799_v30, %v1544_v22  ;;  %v4845_v22 = vpop.permute.xlu0 %2705 }
 0x26a   : > { %6177 = vst [vmem:[#allocation78_spill] sm:$0xff] %v4845_v22 }
 0x26b   : > { %v1618_v38 = vsel %vm825_vm1, %v1580_v24, 0.0 }
 0x26c   : > { %v1255_v35 = vpop.f32.mrf.mxu2  ;;  %v1457_v21 = vpop.f32.mrf.mxu3  ;;  %1619 = vadd.xlane.f32.xlu1 %v1618_v38 }
 0x26d   : > { %v1256_v28 = vadd.f32 %v4575_v56, %v1255_v35  ;;  %v1458_v5 = vadd.f32 %v4793_v33, %v1457_v21  ;;  %v4850_v21 = vpop.permute.xlu1 %2703 }
 0x26e   : > { %6178 = vst [vmem:[#allocation79_spill] sm:$0xff] %v4850_v21 }
 0x26f   : > { %v1309_v54 = vmax.f32 %v1256_v28, 0.0  ;;  %v1545_v46 = vmax.f32 %v1458_v5, 0.0  ;;  %v4852_v5 = vpop.permute.xlu2 %2695 }
 0x270   : > { %6179 = vst [vmem:[#allocation80_spill] sm:$0xff] %v4852_v5 }
 0x271   : > { %3313 = vmatmul.msk.f32.gmra.mxu3 %vm825_vm1, %v1309_v54  ;;  %v1581_v63 = vmul.f32 %v4799_v30, %v1545_v46 }
 0x273   : > { %v1621_v24 = vsel %vm825_vm1, %v1581_v63, 0.0 }
 0x274   : > { %v1258_v61 = vpop.f32.mrf.mxu2  ;;  %v1460_v38 = vpop.f32.mrf.mxu3  ;;  %1622 = vadd.xlane.f32.xlu2 %v1621_v24 }
 0x275   : > { %v1259_v4 = vadd.f32 %v4575_v56, %v1258_v61  ;;  %v1461_v35 = vadd.f32 %v4793_v33, %v1460_v38  ;;  %v4857_v24 = vpop.permute.xlu0 %2711 }
 0x276   : > { %6180 = vst [vmem:[#allocation81_spill] sm:$0xff] %v4857_v24 }
 0x277   : > { %v1310_v6 = vmax.f32 %v1259_v4, 0.0  ;;  %v1546_v28 = vmax.f32 %v1461_v35, 0.0  ;;  %v4861_v35 = vpop.permute.xlu1 %2709 }
 0x278   : > { %6181 = vst [vmem:[#allocation82_spill] sm:$0xff] %v4861_v35 }
 0x279   : > { %3314 = vmatmul.msk.f32.gmra.mxu3 %vm825_vm1, %v1310_v6  ;;  %v1582_v54 = vmul.f32 %v4799_v30, %v1546_v28  ;;  %v4865_v28 = vpop.permute.xlu2 %2701 }
 0x27a   : > { %6182 = vst [vmem:[#allocation83_spill] sm:$0xff] %v4865_v28 }
 0x27b   : > { %v1624_v46 = vsel %vm825_vm1, %v1582_v54, 0.0 }
 0x27c   : > { %v1261_v63 = vpop.f32.mrf.mxu2  ;;  %v1463_v32 = vpop.f32.mrf.mxu3  ;;  %1625 = vadd.xlane.f32.xlu2 %v1624_v46 }
 0x27d   : > { %v1262_v61 = vadd.f32 %v4575_v56, %v1261_v63  ;;  %v1464_v38 = vadd.f32 %v4793_v33, %v1463_v32  ;;  %v4870_v32 = vpop.permute.xlu0 %2717 }
 0x27e   : > { %6183 = vst [vmem:[#allocation84_spill] sm:$0xff] %v4870_v32 }
 0x27f   : > { %v1311_v1 = vmax.f32 %v1262_v61, 0.0  ;;  %v1547_v4 = vmax.f32 %v1464_v38, 0.0 }
 0x281   : > { %3315 = vmatmul.msk.f32.gmra.mxu3 %vm825_vm1, %v1311_v1  ;;  %v1583_v6 = vmul.f32 %v4799_v30, %v1547_v4  ;;  %v4874_v4 = vpop.permute.xlu1 %2715 }
 0x282   : > { %6184 = vst [vmem:[#allocation85_spill] sm:$0xff] %v4874_v4 }
 0x283   : > { %v1627_v54 = vsel %vm825_vm1, %v1583_v6, 0.0 }
 0x284   : > { %v1264_v5 = vpop.f32.mrf.mxu2  ;;  %v1466_v46 = vpop.f32.mrf.mxu3  ;;  %1628 = vadd.xlane.f32.xlu0 %v1627_v54 }
 0x285   : > { %v1265_v14 = vadd.f32 %v4575_v56, %v1264_v5  ;;  %v1467_v63 = vadd.f32 %v4793_v33, %v1466_v46  ;;  %v4877_v54 = vpop.permute.xlu2 %2707 }
 0x286   : > { %6185 = vst [vmem:[#allocation86_spill] sm:$0xff] %v4877_v54 }
 0x287   : > { %v1312_v61 = vmax.f32 %v1265_v14, 0.0  ;;  %v1548_v38 = vmax.f32 %v1467_v63, 0.0  ;;  %v4881_v63 = vpop.permute.xlu0 %2723 }
 0x288   : > { %6186 = vst [vmem:[#allocation87_spill] sm:$0xff] %v4881_v63 }
 0x289   : > { %3316 = vmatmul.msk.f32.gmra.mxu3 %vm825_vm1, %v1312_v61  ;;  %v1584_v1 = vmul.f32 %v4799_v30, %v1548_v38 }
 0x28b   : > { %v1630_v24 = vsel %vm825_vm1, %v1584_v1, 0.0 }
 0x28c   : > { %v1267_v6 = vpop.f32.mrf.mxu2  ;;  %v1469_v45 = vpop.f32.mrf.mxu3  ;;  %1631 = vadd.xlane.f32.xlu1 %v1630_v24 }
 0x28d   : > { %v1268_v5 = vadd.f32 %v4575_v56, %v1267_v6  ;;  %v1470_v46 = vadd.f32 %v4793_v33, %v1469_v45  ;;  %v4886_v24 = vpop.permute.xlu1 %2721  ;;  %v4890_v45 = vpop.permute.xlu2 %2713 }
 0x28e   : > { %6187 = vst [vmem:[#allocation88_spill] sm:$0xff] %v4886_v24 }
 0x28f   : > { %v1313_v32 = vmax.f32 %v1268_v5, 0.0  ;;  %v1549_v14 = vmax.f32 %v1470_v46, 0.0  ;;  %6188 = vst [vmem:[#allocation89_spill] sm:$0xff] %v4890_v45 }
 0x291   : > { %3317 = vmatmul.msk.f32.gmra.mxu3 %vm825_vm1, %v1313_v32  ;;  %v1585_v61 = vmul.f32 %v4799_v30, %v1549_v14  ;;  %v4894_v14 = vpop.permute.xlu0 %2729 }
 0x292   : > { %6189 = vst [vmem:[#allocation90_spill] sm:$0xff] %v4894_v14 }
 0x293   : > { %v1633_v38 = vsel %vm825_vm1, %v1585_v61, 0.0 }
 0x294   : > { %v1270_v1 = vpop.f32.mrf.mxu2  ;;  %v1472_v4 = vpop.f32.mrf.mxu3  ;;  %1634 = vadd.xlane.f32.xlu2 %v1633_v38 }
 0x295   : > { %v1271_v7 = vadd.f32 %v4575_v56, %v1270_v1  ;;  %v1473_v6 = vadd.f32 %v4793_v33, %v1472_v4  ;;  %v4899_v4 = vpop.permute.xlu1 %2727 }
 0x296   : > { %6190 = vst [vmem:[#allocation91_spill] sm:$0xff] %v4899_v4 }
 0x297   : > { %v1314_v5 = vmax.f32 %v1271_v7, 0.0  ;;  %v1550_v46 = vmax.f32 %v1473_v6, 0.0  ;;  %v4901_v6 = vpop.permute.xlu2 %2719 }
 0x298   : > { %6191 = vst [vmem:[#allocation92_spill] sm:$0xff] %v4901_v6 }
 0x299   : > { %3318 = vmatmul.msk.f32.gmra.mxu3 %vm825_vm1, %v1314_v5  ;;  %v1586_v32 = vmul.f32 %v4799_v30, %v1550_v46 }
 0x29b   : > { %v1636_v61 = vsel %vm825_vm1, %v1586_v32, 0.0 }
 0x29c   : > { %v1273_v63 = vpop.f32.mrf.mxu2  ;;  %v1475_v38 = vpop.f32.mrf.mxu3  ;;  %1637 = vadd.xlane.f32.xlu0 %v1636_v61 }
 0x29d   : > { %v1274_v24 = vadd.f32 %v4575_v56, %v1273_v63  ;;  %v1476_v1 = vadd.f32 %v4793_v33, %v1475_v38  ;;  %v4908_v38 = vpop.permute.xlu0 %2831 }
 0x29f   : > { %v1315_v45 = vmax.f32 %v1274_v24, 0.0  ;;  %v1551_v7 = vmax.f32 %v1476_v1, 0.0  ;;  %v4910_v1 = vpop.permute.xlu1 %2829 }
 0x2a1   : > { %3319 = vmatmul.msk.f32.gmra.mxu3 %vm825_vm1, %v1315_v45  ;;  %v1587_v5 = vmul.f32 %v4799_v30, %v1551_v7  ;;  %v4914_v7 = vpop.permute.xlu2 %2725 }
 0x2a2   : > { %6192 = vst [vmem:[#allocation93_spill] sm:$0xff] %v4914_v7 }
 0x2a3   : > { %v1639_v46 = vsel %vm825_vm1, %v1587_v5, 0.0 }
 0x2a4   : > { %v1276_v32 = vpop.f32.mrf.mxu2  ;;  %v1478_v14 = vpop.f32.mrf.mxu3  ;;  %1640 = vadd.xlane.f32.xlu1 %v1639_v46 }
 0x2a5   : > { %v1277_v61 = vadd.f32 %v4575_v56, %v1276_v32  ;;  %v1479_v63 = vadd.f32 %v4793_v33, %v1478_v14 }
 0x2a7   : > { %v1316_v4 = vmax.f32 %v1277_v61, 0.0  ;;  %v1552_v24 = vmax.f32 %v1479_v63, 0.0  ;;  %v4919_v63 = vpop.permute.xlu0 %2837 }
 0x2a9   : > { %3320 = vmatmul.msk.f32.gmra.mxu3 %vm825_vm1, %v1316_v4  ;;  %v1588_v45 = vmul.f32 %v4799_v30, %v1552_v24  ;;  %v4923_v24 = vpop.permute.xlu1 %2835 }
 0x2ab   : > { %v1642_v5 = vsel %vm825_vm1, %v1588_v45, 0.0 }
 0x2ac   : > { %v1279_v6 = vpop.f32.mrf.mxu2  ;;  %v1481_v46 = vpop.f32.mrf.mxu3  ;;  %1643 = vadd.xlane.f32.xlu2 %v1642_v5 }
 0x2ad   : > { %v1280_v32 = vadd.f32 %v4575_v56, %v1279_v6  ;;  %v1482_v14 = vadd.f32 %v4793_v33, %v1481_v46  ;;  %v4926_v5 = vpop.permute.xlu2 %2731 }
 0x2ae   : > { %6193 = vst [vmem:[#allocation94_spill] sm:$0xff] %v4926_v5 }
 0x2af   : > { %v1317_v35 = vmax.f32 %v1280_v32, 0.0  ;;  %v1553_v61 = vmax.f32 %v1482_v14, 0.0 }
 0x2b1   : > { %3321 = vmatmul.msk.f32.gmra.mxu3 %vm825_vm1, %v1317_v35  ;;  %v1589_v4 = vmul.f32 %v4799_v30, %v1553_v61  ;;  %v4932_v61 = vpop.permute.xlu0 %2843 }
 0x2b2   : > { %6194 = vst [vmem:[#allocation95_spill] sm:$0xff] %v4932_v61 }
 0x2b3   : > { %v1645_v7 = vsel %vm825_vm1, %v1589_v4, 0.0 }
 0x2b4   : > { %v1282_v45 = vpop.f32.mrf.mxu2  ;;  %v1484_v40 = vpop.f32.mrf.mxu3  ;;  %1646 = vadd.xlane.f32.xlu0 %v1645_v7 }
 0x2b5   : > { %v1283_v6 = vadd.f32 %v4575_v56, %v1282_v45  ;;  %v1485_v46 = vadd.f32 %v4793_v33, %v1484_v40  ;;  %v4937_v45 = vpop.permute.xlu1 %2841  ;;  %v4939_v40 = vpop.permute.xlu2 %2833 }
 0x2b7   : > { %v1318_v32 = vmax.f32 %v1283_v6, 0.0  ;;  %v1554_v14 = vmax.f32 %v1485_v46, 0.0 }
 0x2b9   : > { %3322 = vmatmul.msk.f32.gmra.mxu3 %vm825_vm1, %v1318_v32  ;;  %v1590_v35 = vmul.f32 %v4799_v30, %v1554_v14 }
 0x2bb   : > { %v1648_v42 = vsel %vm825_vm1, %v1590_v35, 0.0  ;;  %v4944_v35 = vpop.permute.xlu0 %2849 }
 0x2bc   : > { %v1285_v4 = vpop.f32.mrf.mxu2  ;;  %v1487_v62 = vpop.f32.mrf.mxu3  ;;  %1649 = vadd.xlane.f32.xlu1 %v1648_v42  ;;  %6195 = vst [vmem:[#allocation96_spill] sm:$0xff] %v4944_v35 }
 0x2bd   : > { %v1286_v7 = vadd.f32 %v4575_v56, %v1285_v4  ;;  %v1488_v5 = vadd.f32 %v4793_v33, %v1487_v62  ;;  %v4947_v62 = vpop.permute.xlu1 %2847  ;;  %v4949_v4 = vpop.permute.xlu2 %2839 }
 0x2be   : > { %6196 = vst [vmem:[#allocation97_spill] sm:$0xff] %v4947_v62 }
 0x2bf   : > { %v1319_v6 = vmax.f32 %v1286_v7, 0.0  ;;  %v1555_v46 = vmax.f32 %v1488_v5, 0.0 }
 0x2c1   : > { %3323 = vmatmul.msk.f32.gmra.mxu3 %vm825_vm1, %v1319_v6  ;;  %v1591_v32 = vmul.f32 %v4799_v30, %v1555_v46 }
 0x2c3   : > { %v1651_v14 = vsel %vm825_vm1, %v1591_v32, 0.0  ;;  %v4954_v32 = vpop.permute.xlu0 %2855 }
 0x2c4   : > { %v1490_v41 = vpop.f32.mrf.mxu3  ;;  %1652 = vadd.xlane.f32.xlu2 %v1651_v14  ;;  %6197 = vst [vmem:[#allocation98_spill] sm:$0xff] %v4954_v32 }
 0x2c5   : > { %v1491_v56 = vadd.f32 %v4793_v33, %v1490_v41  ;;  %v4957_v54 = vpop.permute.xlu1 %2853  ;;  %v4959_v41 = vpop.permute.xlu2 %2845 }
 0x2c6   : > { %6198 = vst [vmem:[#allocation99_spill] sm:$0xff] %v4957_v54 }
 0x2c7   : > { %v1556_v42 = vmax.f32 %v1491_v56, 0.0  ;;  %6199 = vst [vmem:[#allocation100_spill] sm:$0xff] %v4959_v41 }
 0x2c9   : > { %v1592_v7 = vmul.f32 %v4799_v30, %v1556_v42 }
 0x2cb   : > { %v1654_v5 = vsel %vm825_vm1, %v1592_v7, 0.0  ;;  %v4963_v34 = vpop.permute.xlu0 %2861 }
 0x2cc   : > { %v1493_v6 = vpop.f32.mrf.mxu3  ;;  %1655 = vadd.xlane.f32.xlu0 %v1654_v5  ;;  %6200 = vst [vmem:[#allocation101_spill] sm:$0xff] %v4963_v34 }
 0x2cd   : > { %v1494_v46 = vadd.f32 %v4793_v33, %v1493_v6  ;;  %v4969_v32 = vpop.permute.xlu2 %2851 }
 0x2ce   : > { %6202 = vst [vmem:[#allocation103_spill] sm:$0xff] %v4969_v32 }
 0x2cf   : > { %v1557_v35 = vmax.f32 %v1494_v46, 0.0  ;;  %v4967_v46 = vpop.permute.xlu1 %2859 }
 0x2d0   : > { %6201 = vst [vmem:[#allocation102_spill] sm:$0xff] %v4967_v46 }
 0x2d1   : > { %v1593_v14 = vmul.f32 %v4799_v30, %v1557_v35 }
 0x2d3   : > { %v1657_v56 = vsel %vm825_vm1, %v1593_v14, 0.0  ;;  %v4973_v17 = vpop.permute.xlu0 %2867 }
 0x2d4   : > { %v1496_v20 = vpop.f32.mrf.mxu3  ;;  %1658 = vadd.xlane.f32.xlu1 %v1657_v56  ;;  %6203 = vst [vmem:[#allocation104_spill] sm:$0xff] %v4973_v17 }
 0x2d5   : > { %v1497_v42 = vadd.f32 %v4793_v33, %v1496_v20  ;;  %v4979_v46 = vpop.permute.xlu2 %2857 }
 0x2d6   : > { %6205 = vst [vmem:[#allocation106_spill] sm:$0xff] %v4979_v46 }
 0x2d7   : > { %v1558_v7 = vmax.f32 %v1497_v42, 0.0 }
 0x2d9   : > { %v1594_v5 = vmul.f32 %v4799_v30, %v1558_v7 }
 0x2db   : > { %v1660_v6 = vsel %vm825_vm1, %v1594_v5, 0.0  ;;  %v4977_v5 = vpop.permute.xlu1 %2865 }
 0x2dc   : > { %v1499_v35 = vpop.f32.mrf.mxu3  ;;  %1661 = vadd.xlane.f32.xlu2 %v1660_v6  ;;  %6204 = vst [vmem:[#allocation105_spill] sm:$0xff] %v4977_v5 }
 0x2dd   : > { %v1500_v54 = vadd.f32 %v4793_v33, %v1499_v35 }
 0x2df   : > { %v1559_v14 = vmax.f32 %v1500_v54, 0.0  ;;  %v4983_v54 = vpop.permute.xlu0 %2873 }
 0x2e0   : > { %6206 = vst [vmem:[#allocation107_spill] sm:$0xff] %v4983_v54 }
 0x2e1   : > { %v1595_v56 = vmul.f32 %v4799_v30, %v1559_v14 }
 0x2e3   : > { %v1663_v20 = vsel %vm825_vm1, %v1595_v56, 0.0  ;;  %v4986_v62 = vpop.permute.xlu1 %2871 }
 0x2e4   : > { %v1502_v42 = vpop.f32.mrf.mxu3  ;;  %1664 = vadd.xlane.f32.xlu0 %v1663_v20  ;;  %6207 = vst [vmem:[#allocation108_spill] sm:$0xff] %v4986_v62  ;;  %v4988_v20 = vpop.permute.xlu2 %2863 }
 0x2e5   : > { %v1503_v7 = vadd.f32 %v4793_v33, %v1502_v42  ;;  %6208 = vst [vmem:[#allocation109_spill] sm:$0xff] %v4988_v20 }
 0x2e7   : > { %v1560_v6 = vmax.f32 %v1503_v7, 0.0 }
 0x2e9   : > { %v1596_v32 = vmul.f32 %v4799_v30, %v1560_v6 }
 0x2eb   : > { %v1666_v35 = vsel %vm825_vm1, %v1596_v32, 0.0  ;;  %v4993_v32 = vpop.permute.xlu0 %2879  ;;  %v4996_v5 = vpop.permute.xlu1 %2877 }
 0x2ec   : > { %v1505_v14 = vpop.f32.mrf.mxu3  ;;  %1667 = vadd.xlane.f32.xlu1 %v1666_v35  ;;  %6209 = vst [vmem:[#allocation110_spill] sm:$0xff] %v4993_v32 }
 0x2ed   : > { %v1506_v17 = vadd.f32 %v4793_v33, %v1505_v14  ;;  %6210 = vst [vmem:[#allocation111_spill] sm:$0xff] %v4996_v5 }
 0x2ef   : > { %v1561_v56 = vmax.f32 %v1506_v17, 0.0  ;;  %v4998_v17 = vpop.permute.xlu2 %2869 }
 0x2f0   : > { %6211 = vst [vmem:[#allocation112_spill] sm:$0xff] %v4998_v17 }
 0x2f1   : > { %v1597_v42 = vmul.f32 %v4799_v30, %v1561_v56 }
 0x2f3   : > { %v1669_v46 = vsel %vm825_vm1, %v1597_v42, 0.0  ;;  %v5002_v22 = vpop.permute.xlu0 %2885 }
 0x2f4   : > { %v1508_v7 = vpop.f32.mrf.mxu3  ;;  %1670 = vadd.xlane.f32.xlu2 %v1669_v46  ;;  %6212 = vst [vmem:[#allocation113_spill] sm:$0xff] %v5002_v22 }
 0x2f5   : > { %v1509_v6 = vadd.f32 %v4793_v33, %v1508_v7 }
 0x2f7   : > { %v1562_v54 = vmax.f32 %v1509_v6, 0.0  ;;  %v5006_v6 = vpop.permute.xlu1 %2883  ;;  %v5008_v32 = vpop.permute.xlu2 %2875 }
 0x2f8   : > { %6213 = vst [vmem:[#allocation114_spill] sm:$0xff] %v5006_v6 }
 0x2f9   : > { %v1598_v35 = vmul.f32 %v4799_v30, %v1562_v54  ;;  %6214 = vst [vmem:[#allocation115_spill] sm:$0xff] %v5008_v32 }
 0x2fb   : > { %v1672_v14 = vsel %vm825_vm1, %v1598_v35, 0.0  ;;  %v1611_v17 = vpop.xlane.xlu0 %1610 }
 0x2fc   : > { %v1511_v62 = vpop.f32.mrf.mxu3  ;;  %1673 = vadd.xlane.f32.xlu0 %v1672_v14 }
 0x2fd   : > { %v1512_v56 = vadd.f32 %v4793_v33, %v1511_v62 }
 0x2ff   : > { %v1563_v42 = vmax.f32 %v1512_v56, 0.0  ;;  %v5014_v22 = vpop.permute.xlu1 %2889 }
 0x300   : > { %6215 = vst [vmem:[#allocation116_spill] sm:$0xff] %v5014_v22 }
 0x301   : > { %v1599_v46 = vmul.f32 %v4799_v30, %v1563_v42 }
 0x303   : > { %v1675_v7 = vsel %vm825_vm1, %v1599_v46, 0.0  ;;  %v5016_v46 = vpop.permute.xlu2 %2881 }
 0x304   : > { %v1514_v54 = vpop.f32.mrf.mxu3  ;;  %1676 = vadd.xlane.f32.xlu1 %v1675_v7  ;;  %6216 = vst [vmem:[#allocation117_spill] sm:$0xff] %v5016_v46  ;;  %v5018_v7 = vld [vmem:[#allocation2] ss:$0 sm:$0xff] }
 0x305   : > { %v1515_v5 = vadd.f32 %v4793_v33, %v1514_v54  ;;  %v1614_v54 = vpop.xlane.xlu0 %1613 }
 0x307   : > { %v1564_v35 = vmax.f32 %v1515_v5, 0.0  ;;  %v1617_v22 = vpop.xlane.xlu1 %1616 }
 0x309   : > { %v1600_v14 = vmul.f32 %v4799_v30, %v1564_v35 }
 0x30b   : > { %v1678_v62 = vsel %vm825_vm1, %v1600_v14, 0.0  ;;  %v1709_v14 = vadd.f32 %v5018_v7, %v1611_v17  ;;  %v5025_v46 = vpop.permute.xlu2 %2887 }
 0x30c   : > { %v1517_v56 = vpop.f32.mrf.mxu3  ;;  %1679 = vadd.xlane.f32.xlu2 %v1678_v62  ;;  %6217 = vst [vmem:[#allocation118_spill] sm:$0xff] %v5025_v46 }
 0x30d   : > { %v1518_v42 = vadd.f32 %v4793_v33, %v1517_v56  ;;  %v1710_v56 = vadd.f32 %v5018_v7, %v1614_v54  ;;  %v1741_v2 = vsub.f32 0.0, %v1709_v14 }
 0x30f   : > { %v1565_v6 = vmax.f32 %v1518_v42, 0.0  ;;  %v1742_v23 = vsub.f32 0.0, %v1710_v56 }
 0x311   : > { %v1601_v32 = vmul.f32 %v4799_v30, %v1565_v6  ;;  %v1711_v6 = vadd.f32 %v5018_v7, %v1617_v22 }
 0x313   : > { %v1681_v5 = vsel %vm825_vm1, %v1601_v32, 0.0  ;;  %v1743_v13 = vsub.f32 0.0, %v1711_v6 }
 0x314   : > { %v1520_v35 = vpop.f32.mrf.mxu3  ;;  %1682 = vadd.xlane.f32.xlu0 %v1681_v5  ;;  %v1773_v5 = vmul.f32 1.442695, %v1741_v2 }
 0x315   : > { %v1521_v62 = vadd.f32 %v4793_v33, %v1520_v35  ;;  %v1775_v35 = vmul.f32 1.442695, %v1742_v23  ;;  %v1777_v46 = vmul.f32 1.442695, %v1743_v13 }
 0x316   : > { %3467 = vpow2.f32 %v1773_v5 }
 0x317   : > { %v1566_v55 = vmax.f32 %v1521_v62, 0.0  ;;  %v1620_v62 = vpop.xlane.xlu1 %1619  ;;  %3469 = vpow2.f32 %v1775_v35 }
 0x318   : > { %3471 = vpow2.f32 %v1777_v46 }
 0x319   : > { %v1602_v42 = vmul.f32 %v4799_v30, %v1566_v55  ;;  %v1623_v55 = vpop.xlane.xlu2 %1622 }
 0x31a   : > { %v1713_v5 = vadd.f32 %v5018_v7, %v1623_v55 }
 0x31b   : > { %v1684_v32 = vsel %vm825_vm1, %v1602_v42, 0.0  ;;  %v1712_v42 = vadd.f32 %v5018_v7, %v1620_v62 }
 0x31c   : > { %v1523_v20 = vpop.f32.mrf.mxu3  ;;  %1685 = vadd.xlane.f32.xlu1 %v1684_v32  ;;  %v3468_v32 = vpop.eup %3467 }
 0x31d   : > { %v1524_v17 = vadd.f32 %v4793_v33, %v1523_v20  ;;  %v3470_v20 = vpop.eup %3469  ;;  %v1744_v6 = vsub.f32 0.0, %v1712_v42  ;;  %v5037_v35 = vadd.f32 1.0, %v3468_v32 }
 0x31e   : > { %v3472_v62 = vpop.eup %3471 }
 0x31f   : > { %v1567_v54 = vmax.f32 %v1524_v17, 0.0  ;;  %3473 = vrcp.f32 %v5037_v35  ;;  %v1632_v42 = vpop.xlane.xlu1 %1631  ;;  %vm1874_vm3 = vweird.f32 %v5037_v35 }
 0x320   : > { %v1716_v58 = vadd.f32 %v5018_v7, %v1632_v42 }
 0x321   : > { %v1603_v14 = vmul.f32 %v4799_v30, %v1567_v54  ;;  %v5040_v54 = vadd.f32 1.0, %v3470_v20  ;;  %v1626_v12 = vpop.xlane.xlu2 %1625 }
 0x322   : > { %v1714_v32 = vadd.f32 %v5018_v7, %v1626_v12 }
 0x323   : > { %v1687_v56 = vsel %vm825_vm1, %v1603_v14, 0.0  ;;  %3475 = vrcp.f32 %v5040_v54  ;;  %vm1888_vm7 = vweird.f32 %v5040_v54 }
 0x324   : > { %v1526_v22 = vpop.f32.mrf.mxu3  ;;  %1688 = vadd.xlane.f32.xlu2 %v1687_v56  ;;  %v1779_v56 = vmul.f32 1.442695, %v1744_v6 }
 0x325   : > { %v1527_v2 = vadd.f32 %v4793_v33, %v1526_v22  ;;  %v1745_v22 = vsub.f32 0.0, %v1713_v5 }
 0x326   : > { %3477 = vpow2.f32 %v1779_v56 }
 0x327   : > { %v1568_v23 = vmax.f32 %v1527_v2, 0.0  ;;  %v5045_v2 = vadd.f32 1.0, %v3472_v62  ;;  %v1781_v20 = vmul.f32 1.442695, %v1745_v22  ;;  %v5059_v21 = vpop.xlane.xlu1 %1640 }
 0x329   : > { %v1604_v17 = vmul.f32 %v4799_v30, %v1568_v23  ;;  %v1629_v23 = vpop.xlane.xlu0 %1628  ;;  %3479 = vrcp.f32 %v5045_v2  ;;  %vm1902_vm11 = vweird.f32 %v5045_v2 }
 0x32a   : > { %v1715_v6 = vadd.f32 %v5018_v7, %v1629_v23  ;;  %3481 = vpow2.f32 %v1781_v20  ;;  %v1635_v23 = vpop.xlane.xlu2 %1634 }
 0x32b   : > { %v1690_v13 = vsel %vm825_vm1, %v1604_v17, 0.0 }
 0x32c   : > { %v1529_v14 = vpop.f32.mrf.mxu3  ;;  %1691 = vadd.xlane.f32.xlu0 %v1690_v13  ;;  %v5051_v13 = vpop.eup %3473 }
 0x32d   : > { %v1530_v46 = vadd.f32 %v4793_v33, %v1529_v14  ;;  %v1746_v14 = vsub.f32 0.0, %v1714_v32  ;;  %v5055_v12 = vpop.eup %3475  ;;  %v1870_v22 = vmul.f32 %v5051_v13, %v5037_v35  ;;  %vm1875_vm2 = vweird.f32 %v5051_v13 }
 0x32e   : > { %v3478_v56 = vpop.eup %3477  ;;  %v1884_v20 = vmul.f32 %v5055_v12, %v5040_v54  ;;  %vm5100_vm4 = vmor %vm1874_vm3, %vm1875_vm2  ;;  %vm1889_vm6 = vweird.f32 %v5055_v12 }
 0x32f   : > { %v1569_v55 = vmax.f32 %v1530_v46, 0.0  ;;  %v1783_v49 = vmul.f32 1.442695, %v1746_v14  ;;  %v1871_v28 = vsub.f32 1.0, %v1870_v22  ;;  %v1748_v14 = vsub.f32 0.0, %v1716_v58  ;;  %vm5129_vm8 = vmor %vm1888_vm7, %vm1889_vm6 }
 0x331   : > { %v1605_v17 = vmul.f32 %v4799_v30, %v1569_v55  ;;  %v1747_v55 = vsub.f32 0.0, %v1715_v6  ;;  %3483 = vpow2.f32 %v1783_v49  ;;  %v1872_v58 = vmul.f32 %v5051_v13, %v1871_v28 }
 0x332   : > { %v5078_v22 = vpop.xlane.xlu2 %1643  ;;  %v1880_v28 = vand.u32 2147483648, %v5037_v35 }
 0x333   : > { %v1693_v5 = vsel %vm825_vm1, %v1605_v17, 0.0  ;;  %v1785_v44 = vmul.f32 1.442695, %v1747_v55  ;;  %v5080_v55 = vpop.xlane.xlu1 %1649 }
 0x334   : > { %v1532_v46 = vpop.f32.mrf.mxu3  ;;  %1694 = vadd.xlane.f32.xlu1 %v1693_v5  ;;  %v5063_v5 = vpop.eup %3479  ;;  %6218 = vst [vmem:[#allocation119_spill] sm:$0xff] %v5080_v55  ;;  %v1873_v55 = vadd.f32 %v5051_v13, %v1872_v58 }
 0x335   : > { %v1533_v62 = vadd.f32 %v4793_v33, %v1532_v46  ;;  %v5067_v46 = vadd.f32 1.0, %v3478_v56  ;;  %v3482_v34 = vpop.eup %3481  ;;  %v5076_v56 = vpop.xlane.xlu0 %1637  ;;  %vm1903_vm9 = vweird.f32 %v5063_v5 }
 0x336   : > { %v5074_v43 = vadd.f32 1.0, %v3482_v34  ;;  %v1878_v34 = vand.u32 2147483647, %v5037_v35  ;;  %vm5155_vm13 = vmor %vm1902_vm11, %vm1903_vm9 }
 0x337   : > { %v1570_v17 = vmax.f32 %v1533_v62, 0.0  ;;  %v1885_v62 = vsub.f32 1.0, %v1884_v20  ;;  %3485 = vrcp.f32 %v5067_v46  ;;  %vm1916_vm3 = vweird.f32 %v5067_v46 }
 0x338   : > { %3487 = vpow2.f32 %v1785_v44  ;;  %vm5104_vm5 = vcmp.eq.f32.partialorder %v1878_v34, 8.507059e+37  ;;  %v1877_v34 = vsel %vm5100_vm4, %v5051_v13, %v1873_v55  ;;  %v1892_v55 = vand.u32 2147483647, %v5040_v54 }
 0x339   : > { %v1606_v32 = vmul.f32 %v4799_v30, %v1570_v17  ;;  %v1898_v17 = vmul.f32 %v5063_v5, %v5045_v2  ;;  %3489 = vrcp.f32 %v5074_v43  ;;  %v1886_v44 = vmul.f32 %v5055_v12, %v1885_v62 }
 0x33a   : > { %vm1893_vm10 = vcmp.eq.f32.partialorder %v1892_v55, 8.507059e+37  ;;  %vm1930_vm9 = vweird.f32 %v5074_v43 }
 0x33b   : > { %v1696_v6 = vsel %vm825_vm1, %v1606_v32, 0.0  ;;  %v1787_v32 = vmul.f32 1.442695, %v1748_v14  ;;  %v1899_v26 = vsub.f32 1.0, %v1898_v17 }
 0x33c   : > { %v1535_v41 = vpop.f32.mrf.mxu3  ;;  %1697 = vadd.xlane.f32.xlu2 %v1696_v6  ;;  %v3484_v6 = vpop.eup %3483 }
 0x33d   : > { %v1536_v42 = vadd.f32 %v4793_v33, %v1535_v41  ;;  %v1717_v41 = vadd.f32 %v5018_v7, %v1635_v23  ;;  %v5092_v14 = vpop.eup %3485  ;;  %v5095_v17 = vadd.f32 1.0, %v3484_v6  ;;  %3491 = vpow2.f32 %v1787_v32 }
 0x33e   : > { %v1900_v35 = vmul.f32 %v5063_v5, %v1899_v26  ;;  %v1912_v32 = vmul.f32 %v5092_v14, %v5067_v46  ;;  %v1894_v26 = vand.u32 2147483648, %v5040_v54  ;;  %v1908_v54 = vand.u32 2147483648, %v5045_v2 }
 0x33f   : > { %v1571_v49 = vmax.f32 %v1536_v42, 0.0  ;;  %v3488_v42 = vpop.eup %3487  ;;  %3493 = vrcp.f32 %v5095_v17 }
 0x340   : > { %v5118_v9 = vpop.eup %3489  ;;  %v1901_v58 = vadd.f32 %v5063_v5, %v1900_v35  ;;  %v1895_v61 = vor.u32 1.1754944e-38, %v1894_v26  ;;  %v1718_v26 = vadd.f32 %v5018_v7, %v5076_v56  ;;  %v1909_v13 = vor.u32 1.1754944e-38, %v1908_v54  ;;  %v3605_v54 = vld [vmem:[%s4075_s24 + $0xf8] sm:$0xff] }
 0x341   : > { %v1607_v20 = vmul.f32 %v4799_v30, %v1571_v49  ;;  %v1749_v49 = vsub.f32 0.0, %v1717_v41  ;;  %vm1931_vm7 = vweird.f32 %v5118_v9 }
 0x343   : > { %v1699_v36 = vsel %vm825_vm1, %v1607_v20, 0.0  ;;  %v5098_v20 = vpop.xlane.xlu0 %1646 }
 0x344   : > { %v1538_v23 = vpop.f32.mrf.mxu3  ;;  %1700 = vadd.xlane.f32.xlu0 %v1699_v36  ;;  %6219 = vst [vmem:[#allocation120_spill] sm:$0xff] %v5098_v20  ;;  %v1887_v36 = vadd.f32 %v5055_v12, %v1886_v44  ;;  %v5120_v20 = vadd.f32 1.0, %v3488_v42 }
 0x345   : > { %v1539_v62 = vadd.f32 %v4793_v33, %v1538_v23  ;;  %v5113_v33 = vpop.xlane.xlu2 %1652  ;;  %v1881_v23 = vor.u32 1.1754944e-38, %v1880_v28 }
 0x346   : > { %6224 = vst [vmem:[#allocation121_spill] sm:$0xff] %v5113_v33  ;;  %v1789_v33 = vmul.f32 1.442695, %v1749_v49  ;;  %v1891_v42 = vsel %vm5129_vm8, %v5055_v12, %v1887_v36  ;;  %v1913_v49 = vsub.f32 1.0, %v1912_v32  ;;  %3495 = vrcp.f32 %v5120_v20 }
 0x347   : > { %v1572_v41 = vmax.f32 %v1539_v62, 0.0  ;;  %v1659_v6 = vpop.xlane.xlu1 %1658  ;;  %v1882_v28 = vsel %vm5104_vm5, %v1881_v23, %v1877_v34  ;;  %v1906_v12 = vand.u32 2147483647, %v5045_v2  ;;  %v5151_v35 = vsel %vm1893_vm10, %v1895_v61, %v1891_v42  ;;  %vm5234_vm10 = vmor %vm1930_vm9, %vm1931_vm7 }
 0x348   : > { %v1725_v44 = vadd.f32 %v5018_v7, %v1659_v6  ;;  %3497 = vpow2.f32 %v1789_v33  ;;  %vm2573_vm12 = vcmp.gt.f32.partialorder %v1882_v28, %v4639_v18  ;;  %v1905_v2 = vsel %vm5155_vm13, %v5063_v5, %v1901_v58 }
 0x349   : > { %v1608_v62 = vmul.f32 %v4799_v30, %v1572_v41  ;;  %v3492_v30 = vpop.eup %3491  ;;  %v1926_v41 = vmul.f32 %v5118_v9, %v5074_v43  ;;  %v1914_v18 = vmul.f32 %v5092_v14, %v1913_v49  ;;  %vm2413_vm14 = vcmp.lt.f32.partialorder %v1882_v28, %v4441_v59 }
 0x34a   : > { %v1757_v6 = vsub.f32 0.0, %v1725_v44  ;;  %v5148_v36 = vadd.f32 1.0, %v3492_v30  ;;  %v2765_v55 = vsel %vm2573_vm12, %v4775_v60, %v1882_v28  ;;  %vm2574_vm15 = vcmp.gt.f32.partialorder %v5151_v35, %v4615_v11 }
 0x34b   : > { %v1702_v39 = vsel %vm825_vm1, %v1608_v62, 0.0  ;;  %v1927_v33 = vsub.f32 1.0, %v1926_v41  ;;  %v5161_v34 = vpop.xlane.xlu0 %1655  ;;  %vm1907_vm0 = vcmp.eq.f32.partialorder %v1906_v12, 8.507059e+37  ;;  %v1920_v42 = vand.u32 2147483647, %v5067_v46 }
 0x34c   : > { %1703 = vadd.xlane.f32.xlu1 %v1702_v39  ;;  %v5159_v39 = vpop.eup %3493  ;;  %v1805_v23 = vmul.f32 1.442695, %v1757_v6  ;;  %3499 = vrcp.f32 %v5148_v36  ;;  %v1910_v56 = vsel %vm1907_vm0, %v1909_v13, %v1905_v2  ;;  %vm1917_vm1 = vweird.f32 %v5092_v14 }
 0x34d   : > { %v5175_v5 = vpop.eup %3495  ;;  %v1940_v58 = vmul.f32 %v5159_v39, %v5095_v17  ;;  %v1915_v49 = vadd.f32 %v5092_v14, %v1914_v18  ;;  %v1928_v41 = vmul.f32 %v5118_v9, %v1927_v33  ;;  %v1750_v6 = vsub.f32 0.0, %v1718_v26  ;;  %vm5209_vm6 = vmor %vm1916_vm3, %vm1917_vm1 }
 0x34e   : > { %v3498_v30 = vpop.eup %3497  ;;  %3501 = vpow2.f32 %v1805_v23  ;;  %v5186_v61 = vsel %vm2413_vm14, %v4910_v1, %v2765_v55  ;;  %v2476_v12 = vadd.f32 1e-05, %v3605_v54  ;;  %v1922_v32 = vand.u32 2147483648, %v5067_v46 }
 0x34f   : > { %v1662_v44 = vpop.xlane.xlu2 %1661  ;;  %vm2414_vm2 = vcmp.lt.f32.partialorder %v5151_v35, %v4421_v29  ;;  %v2766_v23 = vsel %vm2574_vm15, %v4803_v50, %v5151_v35  ;;  %vm5198_vm4 = vcmp.eq.f32.partialorder %v1920_v42, 8.507059e+37  ;;  %v1941_v59 = vsub.f32 1.0, %v1940_v58 }
 0x350   : > { %v1726_v62 = vadd.f32 %v5018_v7, %v1662_v44  ;;  %v1954_v1 = vmul.f32 %v5175_v5, %v5120_v20  ;;  %v5204_v28 = vadd.f32 1.0, %v3498_v30  ;;  %vm2575_vm5 = vcmp.gt.f32.partialorder %v1910_v56, %v4609_v37 }
 0x351   : > { %v1919_v46 = vsel %vm5209_vm6, %v5092_v14, %v1915_v49  ;;  %v1929_v2 = vadd.f32 %v5118_v9, %v1928_v41  ;;  %v1791_v26 = vmul.f32 1.442695, %v1750_v6  ;;  %v1936_v13 = vand.u32 2147483648, %v5074_v43 }
 0x352   : > { %v1758_v60 = vsub.f32 0.0, %v1726_v62  ;;  %v5218_v18 = vpop.eup %3499  ;;  %v1923_v62 = vor.u32 1.1754944e-38, %v1922_v32  ;;  %vm2415_vm8 = vcmp.lt.f32.partialorder %v1910_v56, %v4438_v53  ;;  %v2767_v42 = vsel %vm2575_vm5, %v4787_v31, %v1910_v56 }
 0x353   : > { %v1934_v14 = vand.u32 2147483647, %v5074_v43  ;;  %v1955_v58 = vsub.f32 1.0, %v1954_v1  ;;  %3503 = vrcp.f32 %v5204_v28  ;;  %v1942_v49 = vmul.f32 %v5159_v39, %v1941_v59 }
 0x354   : > { %v1807_v11 = vmul.f32 1.442695, %v1758_v60  ;;  %v3502_v55 = vpop.eup %3501  ;;  %v5230_v30 = vsel %vm5198_vm4, %v1923_v62, %v1919_v46  ;;  %v1968_v31 = vmul.f32 %v5218_v18, %v5148_v36  ;;  %v1933_v41 = vsel %vm5234_vm10, %v5118_v9, %v1929_v2 }
 0x355   : > { %v5244_v6 = vadd.f32 1.0, %v3502_v55  ;;  %v5250_v54 = vsel %vm2414_vm2, %v4908_v38, %v2766_v23  ;;  %v5255_v32 = vsel %vm2415_vm8, %v4939_v40, %v2767_v42  ;;  %vm2576_vm11 = vcmp.gt.f32.partialorder %v5230_v30, %v4659_v8 }
 0x356   : > { %3505 = vpow2.f32 %v1807_v11  ;;  %vm1935_vm12 = vcmp.eq.f32.partialorder %v1934_v14, 8.507059e+37  ;;  %vm1945_vm13 = vweird.f32 %v5159_v39  ;;  %v1719_v9 = vadd.f32 %v5018_v7, %v5059_v21 }
 0x357   : > { %v1665_v50 = vpop.xlane.xlu0 %1664  ;;  %3507 = vpow2.f32 %v1791_v26  ;;  %v1943_v29 = vadd.f32 %v5159_v39, %v1942_v49  ;;  %v1956_v38 = vmul.f32 %v5175_v5, %v1955_v58  ;;  %v1969_v35 = vsub.f32 1.0, %v1968_v31 }
 0x358   : > { %v1727_v37 = vadd.f32 %v5018_v7, %v1665_v50  ;;  %2891 = vrot.lane.b32.xlu0 %v2476_v12, %s3916_s21  ;;  %v1937_v12 = vor.u32 1.1754944e-38, %v1936_v13  ;;  %vm2416_vm14 = vcmp.lt.f32.partialorder %v5230_v30, %v4456_v27  ;;  %vm1944_vm15 = vweird.f32 %v5095_v17 }
 0x359   : > { %v5269_v40 = vpop.eup %3503  ;;  %3509 = vrcp.f32 %v5244_v6  ;;  %v1948_v56 = vand.u32 2147483647, %v5095_v17  ;;  %v1950_v59 = vand.u32 2147483648, %v5095_v17  ;;  %v2768_v44 = vsel %vm2576_vm11, %v4784_v19, %v5230_v30  ;;  %vm5284_vm1 = vmor %vm1944_vm15, %vm1945_vm13 }
 0x35a   : > { %v1759_v43 = vsub.f32 0.0, %v1727_v37  ;;  %v5262_v33 = vsel %vm1935_vm12, %v1937_v12, %v1933_v41  ;;  %v1962_v50 = vand.u32 2147483647, %v5120_v20  ;;  %v1964_v17 = vand.u32 2147483648, %v5120_v20 }
 0x35b   : > { %vm2577_vm0 = vcmp.gt.f32.partialorder %v5262_v33, %v4633_v47  ;;  %v1751_v2 = vsub.f32 0.0, %v1719_v9  ;;  %v1947_v8 = vsel %vm5284_vm1, %v5159_v39, %v1943_v29  ;;  %v1957_v19 = vadd.f32 %v5175_v5, %v1956_v38 }
 0x35c   : > { %v1809_v23 = vmul.f32 1.442695, %v1759_v43  ;;  %v3506_v1 = vpop.eup %3505  ;;  %vm1959_vm2 = vweird.f32 %v5175_v5  ;;  %v1982_v26 = vmul.f32 %v5269_v40, %v5204_v28  ;;  %v1970_v62 = vmul.f32 %v5218_v18, %v1969_v35 }
 0x35d   : > { %v3508_v46 = vpop.eup %3507  ;;  %v5298_v13 = vadd.f32 1.0, %v3506_v1  ;;  %vm1949_vm3 = vcmp.eq.f32.partialorder %v1948_v56, 8.507059e+37  ;;  %v1951_v55 = vor.u32 1.1754944e-38, %v1950_v59  ;;  %vm1958_vm4 = vweird.f32 %v5120_v20 }
 0x35e   : > { %3511 = vpow2.f32 %v1809_v23  ;;  %v5301_v42 = vadd.f32 1.0, %v3508_v46  ;;  %vm2417_vm5 = vcmp.lt.f32.partialorder %v5262_v33, %v4432_v48  ;;  %v2769_v39 = vsel %vm2577_vm0, %v4816_v3, %v5262_v33  ;;  %vm5311_vm6 = vmor %vm1958_vm4, %vm1959_vm2 }
 0x35f   : > { %v1668_v53 = vpop.xlane.xlu1 %1667  ;;  %vm5315_vm7 = vcmp.eq.f32.partialorder %v1962_v50, 8.507059e+37  ;;  %v5319_v20 = vpop.eup %3509  ;;  %v1952_v60 = vsel %vm1949_vm3, %v1951_v55, %v1947_v8  ;;  %v1961_v49 = vsel %vm5311_vm6, %v5175_v5, %v1957_v19  ;;  %v1965_v31 = vor.u32 1.1754944e-38, %v1964_v17 }
 0x360   : > { %v1728_v21 = vadd.f32 %v5018_v7, %v1668_v53  ;;  %v1983_v43 = vsub.f32 1.0, %v1982_v26  ;;  %v1971_v41 = vadd.f32 %v5218_v18, %v1970_v62  ;;  %vm1973_vm8 = vweird.f32 %v5218_v18 }
 0x361   : > { %3513 = vrcp.f32 %v5298_v13  ;;  %vm1972_vm9 = vweird.f32 %v5148_v36  ;;  %v1978_v9 = vand.u32 2147483648, %v5148_v36  ;;  %v2094_v5 = vmul.f32 %v5319_v20, %v5244_v6 }
 0x362   : > { %v1760_v37 = vsub.f32 0.0, %v1728_v21  ;;  %3515 = vrcp.f32 %v5301_v42  ;;  %v1966_v38 = vsel %vm5315_vm7, %v1965_v31, %v1961_v49  ;;  %v1976_v35 = vand.u32 2147483647, %v5148_v36  ;;  %vm5345_vm11 = vmor %vm1972_vm9, %vm1973_vm8 }
 0x363   : > { %v1720_v23 = vadd.f32 %v5018_v7, %v5078_v22  ;;  %v5342_v53 = vsel %vm2416_vm14, %v4923_v24, %v2768_v44  ;;  %vm2578_vm10 = vcmp.gt.f32.partialorder %v1952_v60, %v4627_v16  ;;  %v1975_v36 = vsel %vm5345_vm11, %v5218_v18, %v1971_v41 }
 0x364   : > { %v1811_v47 = vmul.f32 1.442695, %v1760_v37  ;;  %v3512_v29 = vpop.eup %3511  ;;  %v1984_v22 = vmul.f32 %v5269_v40, %v1983_v43  ;;  %v5359_v27 = vsel %vm2417_vm5, %v4919_v63, %v2769_v39  ;;  %vm2579_vm12 = vcmp.gt.f32.partialorder %v1966_v38, %v4675_v15 }
 0x365   : > { %2957 = vxpose.xlu2.b32.start [1/16] (narrow) %v5186_v61, 8  ;;  %v1793_v61 = vmul.f32 1.442695, %v1751_v2  ;;  %v5353_v59 = vadd.f32 1.0, %v3512_v29  ;;  %v1979_v16 = vor.u32 1.1754944e-38, %v1978_v9  ;;  %v2095_v24 = vsub.f32 1.0, %v2094_v5 }
 0x366   : > { %vm2418_vm13 = vcmp.lt.f32.partialorder %v1952_v60, %v4473_v52  ;;  %v2770_v18 = vsel %vm2578_vm10, %v4801_v10, %v1952_v60  ;;  %vm1977_vm14 = vcmp.eq.f32.partialorder %v1976_v35, 8.507059e+37  ;;  %v1752_v1 = vsub.f32 0.0, %v1720_v23  ;;  %v6251_v23 = vld [vmem:[#allocation46_spill] sm:$0xff] }
 0x367   : > { %v1671_v3 = vpop.xlane.xlu2 %1670  ;;  %3517 = vpow2.f32 %v1793_v61  ;;  %v5365_v30 = vpop.eup %3513  ;;  %vm2419_vm15 = vcmp.lt.f32.partialorder %v1966_v38, %v4453_v25  ;;  %v1980_v44 = vsel %vm1977_vm14, %v1979_v16, %v1975_v36  ;;  %v1990_v48 = vand.u32 2147483647, %v5204_v28  ;;  %v6247_v25 = vld [vmem:[#allocation74_spill] sm:$0xff] }
 0x368   : > { %v1729_v12 = vadd.f32 %v5018_v7, %v1671_v3  ;;  %3519 = vpow2.f32 %v1811_v47  ;;  %v5369_v63 = vpop.eup %3515  ;;  %v2771_v11 = vsel %vm2579_vm12, %v4795_v57, %v1966_v38  ;;  %vm1987_vm0 = vweird.f32 %v5269_v40  ;;  %v6248_v3 = vld [vmem:[#allocation120_spill] sm:$0xff] }
 0x369   : > { %3521 = vrcp.f32 %v5353_v59  ;;  %v5379_v17 = vsel %vm2418_vm13, %v4949_v4, %v2770_v18  ;;  %v1992_v46 = vand.u32 2147483648, %v5204_v28  ;;  %v2108_v57 = vmul.f32 %v5365_v30, %v5298_v13 }
 0x36a   : > { %v1761_v56 = vsub.f32 0.0, %v1729_v12  ;;  %v2096_v8 = vmul.f32 %v5319_v20, %v2095_v24  ;;  %vm2580_vm1 = vcmp.gt.f32.partialorder %v1980_v44, %v4653_v51  ;;  %vm1986_vm2 = vweird.f32 %v5204_v28 }
 0x36b   : > { %v1996_v19 = vmul.f32 %v5369_v63, %v5301_v42  ;;  %v1795_v26 = vmul.f32 1.442695, %v1752_v1  ;;  %v5392_v52 = vsel %vm2419_vm15, %v4937_v45, %v2771_v11  ;;  %vm5394_vm3 = vmor %vm1986_vm2, %vm1987_vm0  ;;  %vm5398_vm4 = vcmp.eq.f32.partialorder %v1990_v48, 8.507059e+37  ;;  %v6253_v48 = vld [vmem:[#allocation26_spill] sm:$0xff] }
 0x36c   : > { %v1813_v15 = vmul.f32 1.442695, %v1761_v56  ;;  %vm2420_vm5 = vcmp.lt.f32.partialorder %v1980_v44, %v4447_v0  ;;  %v2772_v45 = vsel %vm2580_vm1, %v6247_v25, %v1980_v44  ;;  %v1993_v39 = vor.u32 1.1754944e-38, %v1992_v46  ;;  %v6252_v56 = vld [vmem:[#allocation95_spill] sm:$0xff]  ;;  %v6260_v25 = vld [vmem:[#allocation100_spill] sm:$0xff] }
 0x36d   : > { %2958 = vxpose.xlu2.b32.cont [2/16] (narrow) %v5250_v54, 8  ;;  %v1985_v54 = vadd.f32 %v5269_v40, %v1984_v22  ;;  %v3518_v10 = vpop.eup %3517  ;;  %v2109_v14 = vsub.f32 1.0, %v2108_v57  ;;  %v2097_v58 = vadd.f32 %v5319_v20, %v2096_v8  ;;  %vm2099_vm6 = vweird.f32 %v5319_v20 }
 0x36e   : > { %v3520_v2 = vpop.eup %3519  ;;  %v5402_v51 = vadd.f32 1.0, %v3518_v10  ;;  %3523 = vpow2.f32 %v1813_v15  ;;  %v2006_v61 = vand.u32 2147483648, %v5301_v42  ;;  %v1997_v49 = vsub.f32 1.0, %v1996_v19  ;;  %v6254_v15 = vld [vmem:[#allocation71_spill] sm:$0xff] }
 0x36f   : > { %v1674_v33 = vpop.xlane.xlu0 %1673  ;;  %v1989_v62 = vsel %vm5394_vm3, %v5269_v40, %v1985_v54  ;;  %v5407_v55 = vadd.f32 1.0, %v3520_v2  ;;  %v5415_v60 = vpop.eup %3521  ;;  %3525 = vpow2.f32 %v1795_v26  ;;  %v2104_v40 = vand.u32 2147483648, %v5244_v6  ;;  %v6257_v26 = vld [vmem:[#allocation53_spill] sm:$0xff]  ;;  %v6271_v10 = vld [vmem:[#allocation79_spill] sm:$0xff] }
 0x370   : > { %v1730_v50 = vadd.f32 %v5018_v7, %v1674_v33  ;;  %v1994_v31 = vsel %vm5398_vm4, %v1993_v39, %v1989_v62  ;;  %3527 = vrcp.f32 %v5402_v51  ;;  %vm2098_vm7 = vweird.f32 %v5244_v6 }
 0x371   : > { %v1721_v41 = vadd.f32 %v5018_v7, %v6248_v3  ;;  %3529 = vrcp.f32 %v5407_v55  ;;  %vm5429_vm8 = vmor %vm2098_vm7, %vm2099_vm6  ;;  %v2004_v29 = vand.u32 2147483647, %v5301_v42  ;;  %v2122_v38 = vmul.f32 %v5415_v60, %v5353_v59 }
 0x372   : > { %v1762_v28 = vsub.f32 0.0, %v1730_v50  ;;  %v2110_v35 = vmul.f32 %v5365_v30, %v2109_v14  ;;  %vm2581_vm9 = vcmp.gt.f32.partialorder %v1994_v31, %v6251_v23  ;;  %vm2000_vm10 = vweird.f32 %v5301_v42  ;;  %v6266_v42 = vld [vmem:[#allocation101_spill] sm:$0xff] }
 0x373   : > { %v2105_v21 = vor.u32 1.1754944e-38, %v2104_v40  ;;  %v5445_v36 = vsel %vm2420_vm5, %v6252_v56, %v2772_v45  ;;  %v1998_v22 = vmul.f32 %v5369_v63, %v1997_v49  ;;  %v2007_v16 = vor.u32 1.1754944e-38, %v2006_v61  ;;  %v6261_v40 = vld [vmem:[#allocation27_spill] sm:$0xff] }
 0x374   : > { %v1815_v43 = vmul.f32 1.442695, %v1762_v28  ;;  %v3524_v5 = vpop.eup %3523  ;;  %vm2001_vm12 = vweird.f32 %v5369_v63  ;;  %vm2421_vm13 = vcmp.lt.f32.partialorder %v1994_v31, %v6253_v48  ;;  %v2773_v33 = vsel %vm2581_vm9, %v6254_v15, %v1994_v31 }
 0x375   : > { %2959 = vxpose.xlu2.b32.cont [3/16] (narrow) %v5255_v32, 8  ;;  %v2102_v32 = vand.u32 2147483647, %v5244_v6  ;;  %v2101_v6 = vsel %vm5429_vm8, %v5319_v20, %v2097_v58  ;;  %v3526_v20 = vpop.eup %3525  ;;  %v5449_v18 = vadd.f32 1.0, %v3524_v5  ;;  %v1753_v0 = vsub.f32 0.0, %v1721_v41  ;;  %vm5500_vm4 = vmor %vm2000_vm10, %vm2001_vm12 }
 0x376   : > { %3531 = vpow2.f32 %v1815_v43  ;;  %v5453_v11 = vpop.eup %3527  ;;  %v2123_v44 = vsub.f32 1.0, %v2122_v38  ;;  %v2111_v54 = vadd.f32 %v5365_v30, %v2110_v35  ;;  %vm2113_vm14 = vweird.f32 %v5365_v30  ;;  %v6262_v43 = vld [vmem:[#allocation83_spill] sm:$0xff] }
 0x377   : > { %v1677_v47 = vpop.xlane.xlu1 %1676  ;;  %vm2103_vm11 = vcmp.eq.f32.partialorder %v2102_v32, 8.507059e+37  ;;  %vm5458_vm15 = vcmp.eq.f32.partialorder %v2004_v29, 8.507059e+37  ;;  %v5462_v50 = vpop.eup %3529  ;;  %v2118_v46 = vand.u32 2147483648, %v5298_v13  ;;  %v1999_v2 = vadd.f32 %v5369_v63, %v1998_v22 }
 0x378   : > { %v1731_v12 = vadd.f32 %v5018_v7, %v1677_v47  ;;  %v2106_v1 = vsel %vm2103_vm11, %v2105_v21, %v2101_v6  ;;  %v2018_v57 = vand.u32 2147483647, %v5402_v51  ;;  %v2020_v8 = vand.u32 2147483648, %v5402_v51 }
 0x379   : > { %vm2589_vm0 = vcmp.gt.f32.partialorder %v2106_v1, %v6257_v26  ;;  %vm2112_vm1 = vweird.f32 %v5298_v13  ;;  %v2116_v4 = vand.u32 2147483647, %v5298_v13  ;;  %v2010_v37 = vmul.f32 %v5453_v11, %v5402_v51 }
 0x37a   : > { %v1763_v24 = vsub.f32 0.0, %v1731_v12  ;;  %3533 = vrcp.f32 %v5449_v18  ;;  %vm5477_vm2 = vmor %vm2112_vm1, %vm2113_vm14  ;;  %v5484_v45 = vsel %vm2421_vm13, %v6260_v25, %v2773_v33  ;;  %v1797_v13 = vmul.f32 1.442695, %v1753_v0  ;;  %v6265_v12 = vld [vmem:[#allocation119_spill] sm:$0xff]  ;;  %v6276_v25 = vld [vmem:[#allocation109_spill] sm:$0xff] }
 0x37b   : > { %v2136_v14 = vmul.f32 %v5462_v50, %v5407_v55  ;;  %v2115_v58 = vsel %vm5477_vm2, %v5365_v30, %v2111_v54  ;;  %v2124_v61 = vmul.f32 %v5415_v60, %v2123_v44  ;;  %v5492_v49 = vadd.f32 1.0, %v3526_v20  ;;  %v6270_v54 = vld [vmem:[#allocation35_spill] sm:$0xff] }
 0x37c   : > { %v1817_v19 = vmul.f32 1.442695, %v1763_v24  ;;  %v3532_v39 = vpop.eup %3531  ;;  %vm2429_vm3 = vcmp.lt.f32.partialorder %v2106_v1, %v6261_v40  ;;  %v2781_v47 = vsel %vm2589_vm0, %v6262_v43, %v2106_v1  ;;  %v2119_v31 = vor.u32 1.1754944e-38, %v2118_v46  ;;  %v6267_v24 = vld [vmem:[#allocation52_spill] sm:$0xff] }
 0x37d   : > { %2960 = vxpose.xlu2.b32.cont [4/16] (narrow) %v5342_v53, 8  ;;  %vm2117_vm5 = vcmp.eq.f32.partialorder %v2116_v4, 8.507059e+37  ;;  %v2003_v30 = vsel %vm5500_vm4, %v5369_v63, %v1999_v2  ;;  %v2011_v41 = vsub.f32 1.0, %v2010_v37  ;;  %v1722_v9 = vadd.f32 %v5018_v7, %v6265_v12 }
 0x37e   : > { %3535 = vpow2.f32 %v1817_v19  ;;  %v5509_v29 = vadd.f32 1.0, %v3532_v39  ;;  %v2120_v5 = vsel %vm2117_vm5, %v2119_v31, %v2115_v58  ;;  %v2137_v38 = vsub.f32 1.0, %v2136_v14 }
 0x37f   : > { %v1680_v53 = vpop.xlane.xlu2 %1679  ;;  %v2941_v6 = vsel %vm2429_vm3, %v6266_v42, %v2781_v47  ;;  %v2125_v35 = vadd.f32 %v5415_v60, %v2124_v61  ;;  %vm2127_vm6 = vweird.f32 %v5415_v60  ;;  %3537 = vrcp.f32 %v5492_v49  ;;  %v6277_v61 = vld [vmem:[#allocation70_spill] sm:$0xff] }
 0x380   : > { %v1732_v28 = vadd.f32 %v5018_v7, %v1680_v53  ;;  %v5515_v23 = vpop.eup %3533  ;;  %v2132_v63 = vand.u32 2147483648, %v5353_v59  ;;  %v5521_v21 = vsel %vm5458_vm15, %v2007_v16, %v2003_v30  ;;  %vm2014_vm7 = vweird.f32 %v5402_v51  ;;  %v6274_v53 = vld [vmem:[#allocation23_spill] sm:$0xff] }
 0x381   : > { %vm2590_vm8 = vcmp.gt.f32.partialorder %v2120_v5, %v6267_v24  ;;  %vm2126_vm9 = vweird.f32 %v5353_v59  ;;  %v2130_v20 = vand.u32 2147483647, %v5353_v59  ;;  %v1754_v1 = vsub.f32 0.0, %v1722_v9 }
 0x382   : > { %v1764_v3 = vsub.f32 0.0, %v1732_v28  ;;  %3539 = vrcp.f32 %v5509_v29  ;;  %vm5533_vm10 = vmor %vm2126_vm9, %vm2127_vm6  ;;  %v2012_v15 = vmul.f32 %v5453_v11, %v2011_v41  ;;  %v2150_v0 = vmul.f32 %v5515_v23, %v5449_v18 }
 0x383   : > { %3541 = vpow2.f32 %v1797_v13  ;;  %v2129_v59 = vsel %vm5533_vm10, %v5415_v60, %v2125_v35  ;;  %v2138_v44 = vmul.f32 %v5462_v50, %v2137_v38  ;;  %vm2430_vm11 = vcmp.lt.f32.partialorder %v2120_v5, %v6270_v54  ;;  %v6275_v60 = vld [vmem:[#allocation51_spill] sm:$0xff] }
 0x384   : > { %v1819_v56 = vmul.f32 1.442695, %v1764_v3  ;;  %v3536_v33 = vpop.eup %3535  ;;  %v2782_v46 = vsel %vm2590_vm8, %v6271_v10, %v2120_v5  ;;  %v2133_v2 = vor.u32 1.1754944e-38, %v2132_v63  ;;  %vm2015_vm12 = vweird.f32 %v5453_v11  ;;  %v6278_v3 = vld [vmem:[#allocation60_spill] sm:$0xff]  ;;  %v6283_v63 = vld [vmem:[#allocation31_spill] sm:$0xff] }
 0x385   : > { %2961 = vxpose.xlu2.b32.cont [5/16] (narrow) %v5359_v27, 8  ;;  %v5524_v27 = vor.u32 1.1754944e-38, %v2020_v8  ;;  %vm5547_vm13 = vcmp.eq.f32.partialorder %v2018_v57, 8.507059e+37  ;;  %vm2131_vm14 = vcmp.eq.f32.partialorder %v2130_v20, 8.507059e+37  ;;  %vm2422_vm15 = vcmp.lt.f32.partialorder %v5521_v21, %v6274_v53  ;;  %v5555_v26 = vpop.eup %3537  ;;  %vm5580_vm4 = vmor %vm2014_vm7, %vm2015_vm12 }
 0x386   : > { %2989 = vxpose.xlu1.b32.start [1/16] (narrow) %v2941_v6, 8  ;;  %3543 = vpow2.f32 %v1819_v56  ;;  %vm2582_vm0 = vcmp.gt.f32.partialorder %v5521_v21, %v6275_v60  ;;  %v1799_v4 = vmul.f32 1.442695, %v1754_v1  ;;  %v5557_v37 = vadd.f32 1.0, %v3536_v33  ;;  %v6284_v56 = vld [vmem:[#allocation78_spill] sm:$0xff]  ;;  %v6285_v1 = vld [vmem:[#allocation121_spill] sm:$0xff] }
 0x387   : > { %v1683_v22 = vpop.xlane.xlu0 %1682  ;;  %v2134_v28 = vsel %vm2131_vm14, %v2133_v2, %v2129_v59  ;;  %v2013_v57 = vadd.f32 %v5453_v11, %v2012_v15  ;;  %v2151_v62 = vsub.f32 1.0, %v2150_v0  ;;  %v2942_v39 = vsel %vm2430_vm11, %v6276_v25, %v2782_v46  ;;  %v6286_v0 = vld [vmem:[#allocation105_spill] sm:$0xff] }
 0x388   : > { %v1733_v48 = vadd.f32 %v5018_v7, %v1683_v22  ;;  %v2139_v13 = vadd.f32 %v5462_v50, %v2138_v44  ;;  %vm2141_vm1 = vweird.f32 %v5462_v50  ;;  %v5566_v14 = vpop.eup %3539  ;;  %v2146_v58 = vand.u32 2147483648, %v5407_v55 }
 0x389   : > { %v2774_v40 = vsel %vm2582_vm0, %v6277_v61, %v5521_v21  ;;  %v2032_v43 = vand.u32 2147483647, %v5492_v49  ;;  %v3542_v47 = vpop.eup %3541  ;;  %vm2591_vm2 = vcmp.gt.f32.partialorder %v2134_v28, %v6278_v3  ;;  %vm2140_vm3 = vweird.f32 %v5407_v55  ;;  %v6292_v61 = vld [vmem:[#allocation30_spill] sm:$0xff] }
 0x38a   : > { %v1765_v19 = vsub.f32 0.0, %v1733_v48  ;;  %v2144_v30 = vand.u32 2147483647, %v5407_v55  ;;  %v2024_v12 = vmul.f32 %v5555_v26, %v5492_v49  ;;  %3545 = vrcp.f32 %v5557_v37  ;;  %vm5590_vm5 = vmor %vm2140_vm3, %vm2141_vm1 }
 0x38b   : > { %v2017_v51 = vsel %vm5580_vm4, %v5453_v11, %v2013_v57  ;;  %3547 = vpow2.f32 %v1799_v4  ;;  %v2164_v38 = vmul.f32 %v5566_v14, %v5509_v29  ;;  %v2143_v42 = vsel %vm5590_vm5, %v5462_v50, %v2139_v13  ;;  %v6291_v57 = vld [vmem:[#allocation48_spill] sm:$0xff] }
 0x38c   : > { %v1821_v31 = vmul.f32 1.442695, %v1765_v19  ;;  %v3544_v55 = vpop.eup %3543  ;;  %v2152_v6 = vmul.f32 %v5515_v23, %v2151_v62  ;;  %v5603_v35 = vadd.f32 1.0, %v3542_v47  ;;  %vm2431_vm6 = vcmp.lt.f32.partialorder %v2134_v28, %v6283_v63  ;;  %v6288_v19 = vld [vmem:[#allocation56_spill] sm:$0xff] }
 0x38d   : > { %2962 = vxpose.xlu2.b32.cont [6/16] (narrow) %v5379_v17, 8  ;;  %v2034_v17 = vand.u32 2147483648, %v5492_v49  ;;  %v2783_v22 = vsel %vm2591_vm2, %v6284_v56, %v2134_v28  ;;  %v2147_v11 = vor.u32 1.1754944e-38, %v2146_v58  ;;  %vm2145_vm7 = vcmp.eq.f32.partialorder %v2144_v30, 8.507059e+37  ;;  %v5639_v28 = vld [vmem:[#allocation2] ss:$0 sm:$0xff] }
 0x38e   : > { %2990 = vxpose.xlu1.b32.cont [2/16] (narrow) %v2942_v39, 8  ;;  %3549 = vpow2.f32 %v1821_v31  ;;  %v5612_v20 = vsel %vm5547_vm13, %v5524_v27, %v2017_v51  ;;  %v2025_v50 = vsub.f32 1.0, %v2024_v12  ;;  %v1723_v48 = vadd.f32 %v5018_v7, %v6285_v1 }
 0x38f   : > { %v1686_v32 = vpop.xlane.xlu1 %1685  ;;  %v5616_v16 = vadd.f32 1.0, %v3544_v55  ;;  %v2148_v15 = vsel %vm2145_vm7, %v2147_v11, %v2143_v42  ;;  %v2165_v33 = vsub.f32 1.0, %v2164_v38  ;;  %v2943_v59 = vsel %vm2431_vm6, %v6286_v0, %v2783_v22  ;;  %v6296_v55 = vld [vmem:[#allocation104_spill] sm:$0xff] }
 0x390   : > { %v1734_v9 = vadd.f32 %v5018_v7, %v1686_v32  ;;  %v2153_v44 = vadd.f32 %v5515_v23, %v2152_v6  ;;  %vm2155_vm8 = vweird.f32 %v5515_v23  ;;  %v5622_v54 = vpop.eup %3545  ;;  %3551 = vrcp.f32 %v5603_v35  ;;  %v6287_v7 = vld [vmem:[#allocation97_spill] sm:$0xff]  ;;  %v6294_v32 = vld [vmem:[#allocation22_spill] sm:$0xff] }
 0x391   : > { %v2160_v27 = vand.u32 2147483648, %v5449_v18  ;;  %v5630_v10 = vsel %vm2422_vm15, %v6287_v7, %v2774_v40  ;;  %v3548_v46 = vpop.eup %3547  ;;  %vm2592_vm9 = vcmp.gt.f32.partialorder %v2148_v15, %v6288_v19  ;;  %vm2154_vm10 = vweird.f32 %v5449_v18  ;;  %v6293_v40 = vld [vmem:[#allocation86_spill] sm:$0xff] }
 0x392   : > { %v1766_v24 = vsub.f32 0.0, %v1734_v9  ;;  %v2158_v60 = vand.u32 2147483647, %v5449_v18  ;;  %vm2029_vm11 = vweird.f32 %v5555_v26  ;;  %v1755_v4 = vsub.f32 0.0, %v1723_v48  ;;  %vm5644_vm12 = vmor %vm2154_vm10, %vm2155_vm8 }
 0x393   : > { %3553 = vrcp.f32 %v5616_v16  ;;  %vm2583_vm13 = vcmp.gt.f32.partialorder %v5612_v20, %v6291_v57  ;;  %v2178_v18 = vmul.f32 %v5622_v54, %v5557_v37  ;;  %v2157_v25 = vsel %vm5644_vm12, %v5515_v23, %v2153_v44  ;;  %v6295_v23 = vld [vmem:[#allocation77_spill] sm:$0xff]  ;;  %v6302_v44 = vld [vmem:[#allocation38_spill] sm:$0xff] }
 0x394   : > { %v1823_v2 = vmul.f32 1.442695, %v1766_v24  ;;  %v3550_v62 = vpop.eup %3549  ;;  %v2166_v39 = vmul.f32 %v5566_v14, %v2165_v33  ;;  %v2026_v13 = vmul.f32 %v5555_v26, %v2025_v50  ;;  %vm2028_vm14 = vweird.f32 %v5492_v49  ;;  %v6299_v24 = vld [vmem:[#allocation55_spill] sm:$0xff] }
 0x395   : > { %2963 = vxpose.xlu2.b32.cont [7/16] (narrow) %v5392_v52, 8  ;;  %v5632_v52 = vor.u32 1.1754944e-38, %v2034_v17  ;;  %v5658_v58 = vadd.f32 1.0, %v3548_v46  ;;  %vm2432_vm15 = vcmp.lt.f32.partialorder %v2148_v15, %v6292_v61  ;;  %v2784_v17 = vsel %vm2592_vm9, %v6293_v40, %v2148_v15  ;;  %vm5715_vm8 = vmor %vm2028_vm14, %vm2029_vm11 }
 0x396   : > { %2991 = vxpose.xlu1.b32.cont [3/16] (narrow) %v2943_v59, 8  ;;  %v2161_v47 = vor.u32 1.1754944e-38, %v2160_v27  ;;  %3555 = vpow2.f32 %v1823_v2  ;;  %vm2159_vm0 = vcmp.eq.f32.partialorder %v2158_v60, 8.507059e+37  ;;  %vm2423_vm1 = vcmp.lt.f32.partialorder %v5612_v20, %v6294_v32  ;;  %v5668_v30 = vpop.eup %3551  ;;  %v6303_v27 = vld [vmem:[#allocation82_spill] sm:$0xff]  ;;  %v6319_v2 = vld [vmem:[#allocation59_spill] sm:$0xff] }
 0x397   : > { %v1689_v8 = vpop.xlane.xlu2 %1688  ;;  %v2775_v3 = vsel %vm2583_vm13, %v6295_v23, %v5612_v20  ;;  %v1801_v41 = vmul.f32 1.442695, %v1755_v4  ;;  %v1724_v12 = vadd.f32 %v5639_v28, %v5161_v34  ;;  %v5672_v9 = vadd.f32 1.0, %v3550_v62  ;;  %v6306_v62 = vld [vmem:[#allocation112_spill] sm:$0xff]  ;;  %v6308_v23 = vld [vmem:[#allocation63_spill] sm:$0xff] }
 0x398   : > { %v1735_v21 = vadd.f32 %v5639_v28, %v1689_v8  ;;  %v2162_v5 = vsel %vm2159_vm0, %v2161_v47, %v2157_v25  ;;  %v2179_v51 = vsub.f32 1.0, %v2178_v18  ;;  %v2944_v38 = vsel %vm2432_vm15, %v6296_v55, %v2784_v17 }
 0x399   : > { %v2167_v42 = vadd.f32 %v5566_v14, %v2166_v39  ;;  %vm2169_vm2 = vweird.f32 %v5566_v14  ;;  %vm5680_vm3 = vcmp.eq.f32.partialorder %v2032_v43, 8.507059e+37  ;;  %v5684_v63 = vpop.eup %3553  ;;  %3557 = vrcp.f32 %v5658_v58 }
 0x39a   : > { %v1767_v31 = vsub.f32 0.0, %v1735_v21  ;;  %v2174_v34 = vand.u32 2147483648, %v5509_v29  ;;  %v2046_v56 = vand.u32 2147483647, %v5603_v35  ;;  %vm2593_vm4 = vcmp.gt.f32.partialorder %v2162_v5, %v6299_v24 }
 0x39b   : > { %vm2168_vm5 = vweird.f32 %v5509_v29  ;;  %v2172_v43 = vand.u32 2147483647, %v5509_v29  ;;  %v2038_v50 = vmul.f32 %v5668_v30, %v5603_v35  ;;  %v1756_v1 = vsub.f32 0.0, %v1724_v12 }
 0x39c   : > { %v1825_v22 = vmul.f32 1.442695, %v1767_v31  ;;  %3559 = vrcp.f32 %v5672_v9  ;;  %vm5699_vm6 = vmor %vm2168_vm5, %vm2169_vm2  ;;  %v3556_v33 = vpop.eup %3555  ;;  %v2192_v0 = vmul.f32 %v5684_v63, %v5616_v16  ;;  %v2180_v59 = vmul.f32 %v5622_v54, %v2179_v51 }
 0x39d   : > { %2964 = vxpose.xlu2.b32.cont [8/16] (narrow) %v5445_v36, 8  ;;  %v2027_v36 = vadd.f32 %v5555_v26, %v2026_v13  ;;  %3561 = vpow2.f32 %v1801_v41  ;;  %v2171_v29 = vsel %vm5699_vm6, %v5566_v14, %v2167_v42  ;;  %vm2433_vm7 = vcmp.lt.f32.partialorder %v2162_v5, %v6302_v44  ;;  %v6312_v42 = vld [vmem:[#allocation81_spill] sm:$0xff] }
 0x39e   : > { %2992 = vxpose.xlu1.b32.cont [4/16] (narrow) %v2944_v38, 8  ;;  %v2785_v7 = vsel %vm2593_vm4, %v6303_v27, %v2162_v5  ;;  %v2175_v46 = vor.u32 1.1754944e-38, %v2174_v34  ;;  %v2048_v8 = vand.u32 2147483648, %v5603_v35  ;;  %3563 = vpow2.f32 %v1825_v22  ;;  %v6311_v38 = vld [vmem:[#allocation34_spill] sm:$0xff]  ;;  %v6313_v22 = vld [vmem:[#allocation47_spill] sm:$0xff] }
 0x39f   : > { %v1692_v11 = vpop.xlane.xlu0 %1691  ;;  %vm2173_vm9 = vcmp.eq.f32.partialorder %v2172_v43, 8.507059e+37  ;;  %v2031_v14 = vsel %vm5715_vm8, %v5555_v26, %v2027_v36  ;;  %v5723_v60 = vpop.eup %3557  ;;  %v2039_v4 = vsub.f32 1.0, %v2038_v50  ;;  %v1803_v21 = vmul.f32 1.442695, %v1756_v1  ;;  %v6307_v26 = vld [vmem:[#allocation96_spill] sm:$0xff]  ;;  %v6314_v43 = vld [vmem:[#allocation29_spill] sm:$0xff] }
 0x3a0   : > { %v1736_v48 = vadd.f32 %v5639_v28, %v1692_v11  ;;  %v5725_v53 = vadd.f32 1.0, %v3556_v33  ;;  %v2176_v49 = vsel %vm2173_vm9, %v2175_v46, %v2171_v29  ;;  %v2193_v57 = vsub.f32 1.0, %v2192_v0  ;;  %v6315_v1 = vld [vmem:[#allocation108_spill] sm:$0xff]  ;;  %v6318_v29 = vld [vmem:[#allocation73_spill] sm:$0xff] }
 0x3a1   : > { %v2945_v18 = vsel %vm2433_vm7, %v6306_v62, %v2785_v7  ;;  %v2181_v25 = vadd.f32 %v5622_v54, %v2180_v59  ;;  %vm2183_vm10 = vweird.f32 %v5622_v54  ;;  %v5739_v13 = vsel %vm2423_vm1, %v6307_v26, %v2775_v3  ;;  %v6323_v26 = vld [vmem:[#allocation89_spill] sm:$0xff] }
 0x3a2   : > { %v1768_v19 = vsub.f32 0.0, %v1736_v48  ;;  %v5733_v39 = vpop.eup %3559  ;;  %v2188_v61 = vand.u32 2147483648, %v5557_v37  ;;  %v5747_v40 = vor.u32 1.1754944e-38, %v2048_v8  ;;  %vm2594_vm11 = vcmp.gt.f32.partialorder %v2176_v49, %v6308_v23 }
 0x3a3   : > { %v3562_v17 = vpop.eup %3561  ;;  %vm2182_vm12 = vweird.f32 %v5557_v37  ;;  %v2186_v20 = vand.u32 2147483647, %v5557_v37  ;;  %vm2043_vm13 = vweird.f32 %v5668_v30  ;;  %v2052_v32 = vmul.f32 %v5723_v60, %v5658_v58 }
 0x3a4   : > { %v1827_v47 = vmul.f32 1.442695, %v1768_v19  ;;  %3565 = vrcp.f32 %v5725_v53  ;;  %vm5759_vm14 = vmor %vm2182_vm12, %vm2183_vm10  ;;  %v2040_v41 = vmul.f32 %v5668_v30, %v2039_v4  ;;  %v3564_v12 = vpop.eup %3563  ;;  %v2206_v37 = vmul.f32 %v5733_v39, %v5672_v9  ;;  %v6340_v19 = vld [vmem:[#allocation115_spill] sm:$0xff] }
 0x3a5   : > { %2965 = vxpose.xlu2.b32.cont [9/16] (narrow) %v5484_v45, 8  ;;  %v5745_v45 = vsel %vm5680_vm3, %v5632_v52, %v2031_v14  ;;  %3567 = vpow2.f32 %v1803_v21  ;;  %v2185_v5 = vsel %vm5759_vm14, %v5622_v54, %v2181_v25  ;;  %v2194_v51 = vmul.f32 %v5684_v63, %v2193_v57  ;;  %v6322_v25 = vld [vmem:[#allocation33_spill] sm:$0xff] }
 0x3a6   : > { %2993 = vxpose.xlu1.b32.cont [5/16] (narrow) %v2945_v18, 8  ;;  %vm2042_vm15 = vweird.f32 %v5603_v35  ;;  %v5771_v55 = vadd.f32 1.0, %v3562_v17  ;;  %vm2434_vm0 = vcmp.lt.f32.partialorder %v2176_v49, %v6311_v38  ;;  %v2786_v6 = vsel %vm2594_vm11, %v6312_v42, %v2176_v49 }
 0x3a7   : > { %v1695_v31 = vpop.xlane.xlu1 %1694  ;;  %v2189_v34 = vor.u32 1.1754944e-38, %v2188_v61  ;;  %3569 = vpow2.f32 %v1827_v47  ;;  %vm2187_vm1 = vcmp.eq.f32.partialorder %v2186_v20, 8.507059e+37  ;;  %vm2584_vm2 = vcmp.gt.f32.partialorder %v5745_v45, %v6313_v22  ;;  %vm5831_vm11 = vmor %vm2042_vm15, %vm2043_vm13 }
 0x3a8   : > { %v1737_v52 = vadd.f32 %v5639_v28, %v1695_v31  ;;  %v2053_v54 = vsub.f32 1.0, %v2052_v32  ;;  %v5779_v11 = vadd.f32 1.0, %v3564_v12  ;;  %vm2424_vm3 = vcmp.lt.f32.partialorder %v5745_v45, %v6314_v43  ;;  %v6326_v32 = vld [vmem:[#allocation103_spill] sm:$0xff] }
 0x3a9   : > { %v2190_v24 = vsel %vm2187_vm1, %v2189_v34, %v2185_v5  ;;  %v2207_v50 = vsub.f32 1.0, %v2206_v37  ;;  %v2946_v48 = vsel %vm2434_vm0, %v6315_v1, %v2786_v6  ;;  %v2195_v15 = vadd.f32 %v5684_v63, %v2194_v51  ;;  %v6330_v6 = vld [vmem:[#allocation58_spill] sm:$0xff] }
 0x3aa   : > { %v1769_v36 = vsub.f32 0.0, %v1737_v52  ;;  %vm2197_vm4 = vweird.f32 %v5684_v63  ;;  %vm5789_vm5 = vcmp.eq.f32.partialorder %v2046_v56, 8.507059e+37  ;;  %v5793_v0 = vpop.eup %3565  ;;  %3571 = vrcp.f32 %v5771_v55 }
 0x3ab   : > { %v2202_v59 = vand.u32 2147483648, %v5616_v16  ;;  %v2041_v44 = vadd.f32 %v5668_v30, %v2040_v41  ;;  %v3568_v27 = vpop.eup %3567  ;;  %vm2595_vm6 = vcmp.gt.f32.partialorder %v2190_v24, %v6319_v2  ;;  %vm2196_vm7 = vweird.f32 %v5616_v16  ;;  %v6327_v41 = vld [vmem:[#allocation107_spill] sm:$0xff]  ;;  %v6339_v2 = vld [vmem:[#allocation72_spill] sm:$0xff] }
 0x3ac   : > { %v1829_v7 = vmul.f32 1.442695, %v1769_v36  ;;  %v2200_v56 = vand.u32 2147483647, %v5616_v16  ;;  %3573 = vrcp.f32 %v5779_v11  ;;  %vm5807_vm8 = vmor %vm2196_vm7, %vm2197_vm4  ;;  %v2060_v14 = vand.u32 2147483647, %v5658_v58 }
 0x3ad   : > { %2966 = vxpose.xlu2.b32.cont [10/16] (narrow) %v5630_v10, 8  ;;  %v2776_v10 = vsel %vm2584_vm2, %v6318_v29, %v5745_v45  ;;  %v2062_v4 = vand.u32 2147483648, %v5658_v58  ;;  %v3570_v21 = vpop.eup %3569  ;;  %v2220_v49 = vmul.f32 %v5793_v0, %v5725_v53  ;;  %v2199_v16 = vsel %vm5807_vm8, %v5684_v63, %v2195_v15  ;;  %v6335_v15 = vld [vmem:[#allocation85_spill] sm:$0xff] }
 0x3ae   : > { %2994 = vxpose.xlu1.b32.cont [6/16] (narrow) %v2946_v48, 8  ;;  %v2208_v57 = vmul.f32 %v5733_v39, %v2207_v50  ;;  %v2054_v62 = vmul.f32 %v5723_v60, %v2053_v54  ;;  %vm2056_vm9 = vweird.f32 %v5658_v58  ;;  %v5821_v18 = vadd.f32 1.0, %v3568_v27  ;;  %v6333_v50 = vld [vmem:[#allocation54_spill] sm:$0xff]  ;;  %v6334_v48 = vld [vmem:[#allocation41_spill] sm:$0xff] }
 0x3af   : > { %v1698_v46 = vpop.xlane.xlu2 %1697  ;;  %vm2435_vm10 = vcmp.lt.f32.partialorder %v2190_v24, %v6322_v25  ;;  %v2787_v61 = vsel %vm2595_vm6, %v6323_v26, %v2190_v24  ;;  %v2203_v17 = vor.u32 1.1754944e-38, %v2202_v59  ;;  %3575 = vpow2.f32 %v1829_v7  ;;  %v6336_v29 = vld [vmem:[#allocation25_spill] sm:$0xff]  ;;  %v6341_v26 = vld [vmem:[#allocation66_spill] sm:$0xff] }
 0x3b0   : > { %v1738_v8 = vadd.f32 %v5639_v28, %v1698_v46  ;;  %vm2201_vm12 = vcmp.eq.f32.partialorder %v2200_v56, 8.507059e+37  ;;  %v2045_v31 = vsel %vm5831_vm11, %v5668_v30, %v2041_v44  ;;  %v5838_v23 = vpop.eup %3571  ;;  %v5840_v20 = vadd.f32 1.0, %v3570_v21 }
 0x3b1   : > { %v2936_v35 = vsel %vm2424_vm3, %v6326_v32, %v2776_v10  ;;  %v2204_v52 = vsel %vm2201_vm12, %v2203_v17, %v2199_v16  ;;  %vm2057_vm13 = vweird.f32 %v5723_v60  ;;  %v2221_v3 = vsub.f32 1.0, %v2220_v49 }
 0x3b2   : > { %v1770_v47 = vsub.f32 0.0, %v1738_v8  ;;  %v2947_v12 = vsel %vm2435_vm10, %v6327_v41, %v2787_v61  ;;  %v2209_v37 = vadd.f32 %v5733_v39, %v2208_v57  ;;  %vm2211_vm14 = vweird.f32 %v5733_v39  ;;  %v5855_v5 = vpop.eup %3573  ;;  %vm5890_vm6 = vmor %vm2056_vm9, %vm2057_vm13  ;;  %v6345_v41 = vld [vmem:[#allocation37_spill] sm:$0xff] }
 0x3b3   : > { %vm5851_vm15 = vcmp.eq.f32.partialorder %v2060_v14, 8.507059e+37  ;;  %3577 = vrcp.f32 %v5821_v18  ;;  %v2050_v45 = vsel %vm5789_vm5, %v5747_v40, %v2045_v31  ;;  %v2055_v51 = vadd.f32 %v5723_v60, %v2054_v62 }
 0x3b4   : > { %v1831_v38 = vmul.f32 1.442695, %v1770_v47  ;;  %vm2596_vm0 = vcmp.gt.f32.partialorder %v2204_v52, %v6330_v6  ;;  %vm2210_vm1 = vweird.f32 %v5672_v9  ;;  %v2214_v34 = vand.u32 2147483647, %v5672_v9  ;;  %v6363_v47 = vld [vmem:[#allocation61_spill] sm:$0xff] }
 0x3b5   : > { %2967 = vxpose.xlu2.b32.cont [11/16] (narrow) %v5739_v13, 8  ;;  %v2216_v13 = vand.u32 2147483648, %v5672_v9  ;;  %v2066_v36 = vmul.f32 %v5838_v23, %v5771_v55  ;;  %3579 = vrcp.f32 %v5840_v20  ;;  %vm5872_vm2 = vmor %vm2210_vm1, %vm2211_vm14  ;;  %v2063_v54 = vor.u32 1.1754944e-38, %v2062_v4  ;;  %v3576_v24 = vpop.eup %3575 }
 0x3b6   : > { %2995 = vxpose.xlu1.b32.cont [7/16] (narrow) %v2947_v12, 8  ;;  %v2234_v43 = vmul.f32 %v5855_v5, %v5779_v11  ;;  %vm2585_vm3 = vcmp.gt.f32.partialorder %v2050_v45, %v6333_v50  ;;  %v2213_v9 = vsel %vm5872_vm2, %v5733_v39, %v2209_v37  ;;  %v2222_v1 = vmul.f32 %v5793_v0, %v2221_v3  ;;  %v6346_v12 = vld [vmem:[#allocation84_spill] sm:$0xff] }
 0x3b7   : > { %v1701_v42 = vpop.xlane.xlu0 %1700  ;;  %vm2436_vm4 = vcmp.lt.f32.partialorder %v2204_v52, %v6334_v48  ;;  %v2788_v33 = vsel %vm2596_vm0, %v6335_v15, %v2204_v52  ;;  %vm2425_vm5 = vcmp.lt.f32.partialorder %v2050_v45, %v6336_v29  ;;  %v2217_v10 = vor.u32 1.1754944e-38, %v2216_v13 }
 0x3b8   : > { %v1739_v22 = vadd.f32 %v5639_v28, %v1701_v42  ;;  %3581 = vpow2.f32 %v1831_v38  ;;  %vm2215_vm7 = vcmp.eq.f32.partialorder %v2214_v34, 8.507059e+37  ;;  %v2059_v39 = vsel %vm5890_vm6, %v5723_v60, %v2055_v51  ;;  %v6347_v51 = vld [vmem:[#allocation50_spill] sm:$0xff]  ;;  %v6348_v34 = vld [vmem:[#allocation111_spill] sm:$0xff] }
 0x3b9   : > { %v5897_v27 = vpop.eup %3577  ;;  %v2067_v7 = vsub.f32 1.0, %v2066_v36  ;;  %v5899_v46 = vadd.f32 1.0, %v3576_v24  ;;  %v2777_v56 = vsel %vm2585_vm3, %v6339_v2, %v2050_v45  ;;  %v2218_v8 = vsel %vm2215_vm7, %v2217_v10, %v2213_v9  ;;  %v6352_v9 = vld [vmem:[#allocation62_spill] sm:$0xff]  ;;  %v6359_v2 = vld [vmem:[#allocation92_spill] sm:$0xff]  ;;  %v6372_v24 = vld [vmem:[#allocation57_spill] sm:$0xff] }
 0x3ba   : > { %v1771_v44 = vsub.f32 0.0, %v1739_v22  ;;  %v2235_v58 = vsub.f32 1.0, %v2234_v43  ;;  %v2948_v14 = vsel %vm2436_vm4, %v6340_v19, %v2788_v33  ;;  %v2223_v4 = vadd.f32 %v5793_v0, %v2222_v1  ;;  %v6360_v19 = vld [vmem:[#allocation98_spill] sm:$0xff]  ;;  %v6374_v1 = vld [vmem:[#allocation28_spill] sm:$0xff] }
 0x3bb   : > { %vm2225_vm8 = vweird.f32 %v5793_v0  ;;  %v5907_v21 = vpop.eup %3579  ;;  %v5911_v60 = vsel %vm5851_vm15, %v2063_v54, %v2059_v39  ;;  %v2230_v49 = vand.u32 2147483648, %v5725_v53  ;;  %v2074_v16 = vand.u32 2147483647, %v5771_v55  ;;  %v6349_v54 = vld [vmem:[#allocation24_spill] sm:$0xff] }
 0x3bc   : > { %v2076_v57 = vand.u32 2147483648, %v5771_v55  ;;  %v1833_v62 = vmul.f32 1.442695, %v1771_v44  ;;  %vm2597_vm9 = vcmp.gt.f32.partialorder %v2218_v8, %v6341_v26  ;;  %vm2224_vm10 = vweird.f32 %v5725_v53 }
 0x3bd   : > { %2968 = vxpose.xlu2.b32.cont [12/16] (narrow) %v2936_v35, 8  ;;  %v2228_v61 = vand.u32 2147483647, %v5725_v53  ;;  %v2080_v17 = vmul.f32 %v5897_v27, %v5821_v18  ;;  %3583 = vrcp.f32 %v5899_v46  ;;  %vm5925_vm11 = vmor %vm2224_vm10, %vm2225_vm8  ;;  %v2068_v31 = vmul.f32 %v5838_v23, %v2067_v7  ;;  %v6344_v53 = vld [vmem:[#allocation99_spill] sm:$0xff] }
 0x3be   : > { %2996 = vxpose.xlu1.b32.cont [8/16] (narrow) %v2948_v14, 8  ;;  %v3582_v32 = vpop.eup %3581  ;;  %v2248_v35 = vmul.f32 %v5907_v21, %v5840_v20  ;;  %v2937_v52 = vsel %vm2425_vm5, %v6344_v53, %v2777_v56  ;;  %v2236_v3 = vmul.f32 %v5855_v5, %v2235_v58  ;;  %vm2437_vm12 = vcmp.lt.f32.partialorder %v2218_v8, %v6345_v41 }
 0x3bf   : > { %v1704_v25 = vpop.xlane.xlu1 %1703  ;;  %v2789_v37 = vsel %vm2597_vm9, %v6346_v12, %v2218_v8  ;;  %v2231_v30 = vor.u32 1.1754944e-38, %v2230_v49  ;;  %vm2071_vm13 = vweird.f32 %v5838_v23  ;;  %3585 = vpow2.f32 %v1833_v62  ;;  %v6361_v62 = vld [vmem:[#allocation110_spill] sm:$0xff] }
 0x3c0   : > { %v1740_v63 = vadd.f32 %v5639_v28, %v1704_v25  ;;  %v2227_v28 = vsel %vm5925_vm11, %v5793_v0, %v2223_v4  ;;  %vm2586_vm14 = vcmp.gt.f32.partialorder %v5911_v60, %v6347_v51  ;;  %vm2229_vm15 = vcmp.eq.f32.partialorder %v2228_v61, 8.507059e+37  ;;  %v6362_v61 = vld [vmem:[#allocation49_spill] sm:$0xff] }
 0x3c1   : > { %v2081_v45 = vsub.f32 1.0, %v2080_v17  ;;  %v5944_v38 = vadd.f32 1.0, %v3582_v32  ;;  %v2232_v42 = vsel %vm2229_vm15, %v2231_v30, %v2227_v28  ;;  %v2069_v0 = vadd.f32 %v5838_v23, %v2068_v31  ;;  %v6369_v30 = vld [vmem:[#allocation88_spill] sm:$0xff] }
 0x3c2   : > { %v1772_v13 = vsub.f32 0.0, %v1740_v63  ;;  %v2249_v6 = vsub.f32 1.0, %v2248_v35  ;;  %v2949_v36 = vsel %vm2437_vm12, %v6348_v34, %v2789_v37  ;;  %v2237_v22 = vadd.f32 %v5855_v5, %v2236_v3  ;;  %v6366_v35 = vld [vmem:[#allocation32_spill] sm:$0xff] }
 0x3c3   : > { %vm2239_vm0 = vweird.f32 %v5855_v5  ;;  %v5950_v40 = vpop.eup %3583  ;;  %vm2426_vm1 = vcmp.lt.f32.partialorder %v5911_v60, %v6349_v54  ;;  %vm2070_vm2 = vweird.f32 %v5771_v55  ;;  %vm5955_vm3 = vcmp.eq.f32.partialorder %v2074_v16, 8.507059e+37  ;;  %v6355_v55 = vld [vmem:[#allocation80_spill] sm:$0xff] }
 0x3c4   : > { %v2244_v43 = vand.u32 2147483648, %v5779_v11  ;;  %v1835_v50 = vmul.f32 1.442695, %v1772_v13  ;;  %vm2598_vm4 = vcmp.gt.f32.partialorder %v2232_v42, %v6352_v9  ;;  %vm5963_vm5 = vmor %vm2070_vm2, %vm2071_vm13  ;;  %vm2238_vm6 = vweird.f32 %v5779_v11  ;;  %v6367_v3 = vld [vmem:[#allocation76_spill] sm:$0xff] }
 0x3c5   : > { %2969 = vxpose.xlu2.b32.cont [13/16] (narrow) %v2937_v52, 8  ;;  %v2242_v48 = vand.u32 2147483647, %v5779_v11  ;;  %3587 = vrcp.f32 %v5944_v38  ;;  %v2778_v15 = vsel %vm2586_vm14, %v6355_v55, %v5911_v60  ;;  %v2073_v33 = vsel %vm5963_vm5, %v5838_v23, %v2069_v0  ;;  %vm5980_vm7 = vmor %vm2238_vm6, %vm2239_vm0  ;;  %v3586_v10 = vpop.eup %3585  ;;  %v6358_v23 = vld [vmem:[#allocation36_spill] sm:$0xff]  ;;  %v6375_v55 = vld [vmem:[#allocation75_spill] sm:$0xff] }
 0x3c6   : > { %2997 = vxpose.xlu1.b32.cont [9/16] (narrow) %v2949_v36, 8  ;;  %v2082_v11 = vmul.f32 %v5897_v27, %v2081_v45  ;;  %v2262_v59 = vmul.f32 %v5950_v40, %v5899_v46  ;;  %v2077_v44 = vor.u32 1.1754944e-38, %v2076_v57  ;;  %v2241_v39 = vsel %vm5980_vm7, %v5855_v5, %v2237_v22  ;;  %v6368_v37 = vld [vmem:[#allocation44_spill] sm:$0xff] }
 0x3c7   : > { %v2250_v7 = vmul.f32 %v5907_v21, %v2249_v6  ;;  %vm2438_vm8 = vcmp.lt.f32.partialorder %v2232_v42, %v6358_v23  ;;  %v2790_v56 = vsel %vm2598_vm4, %v6359_v2, %v2232_v42  ;;  %v2245_v8 = vor.u32 1.1754944e-38, %v2244_v43  ;;  %v6370_v42 = vld [vmem:[#allocation106_spill] sm:$0xff] }
 0x3c8   : > { %v2090_v58 = vand.u32 2147483648, %v5821_v18  ;;  %3589 = vpow2.f32 %v1835_v50  ;;  %v2938_v14 = vsel %vm2426_vm1, %v6360_v19, %v2778_v15  ;;  %v2078_v4 = vsel %vm5955_vm3, %v2077_v44, %v2073_v33  ;;  %v6373_v50 = vld [vmem:[#allocation68_spill] sm:$0xff]  ;;  %v6379_v2 = vld [vmem:[#allocation114_spill] sm:$0xff]  ;;  %v6380_v19 = vld [vmem:[#allocation65_spill] sm:$0xff] }
 0x3c9   : > { %vm2243_vm9 = vcmp.eq.f32.partialorder %v2242_v48, 8.507059e+37  ;;  %v6000_v5 = vadd.f32 1.0, %v3586_v10  ;;  %v2083_v16 = vadd.f32 %v5897_v27, %v2082_v11  ;;  %vm2085_vm10 = vweird.f32 %v5897_v27  ;;  %v6376_v11 = vld [vmem:[#allocation40_spill] sm:$0xff]  ;;  %v6377_v10 = vld [vmem:[#allocation87_spill] sm:$0xff] }
 0x3ca   : > { %v2246_v49 = vsel %vm2243_vm9, %v2245_v8, %v2241_v39  ;;  %v2263_v57 = vsub.f32 1.0, %v2262_v59  ;;  %v2950_v25 = vsel %vm2438_vm8, %v6361_v62, %v2790_v56  ;;  %v2251_v26 = vadd.f32 %v5907_v21, %v2250_v7  ;;  %v6382_v62 = vld [vmem:[#allocation93_spill] sm:$0xff] }
 0x3cb   : > { %vm2253_vm11 = vweird.f32 %v5907_v21  ;;  %v6007_v60 = vpop.eup %3587  ;;  %vm2587_vm12 = vcmp.gt.f32.partialorder %v2078_v4, %v6362_v61  ;;  %vm2084_vm13 = vweird.f32 %v5821_v18  ;;  %v2088_v17 = vand.u32 2147483647, %v5821_v18 }
 0x3cc   : > { %v2258_v63 = vand.u32 2147483648, %v5840_v20  ;;  %vm2599_vm14 = vcmp.gt.f32.partialorder %v2246_v49, %v6363_v47  ;;  %vm6014_vm15 = vmor %vm2084_vm13, %vm2085_vm10  ;;  %vm2252_vm0 = vweird.f32 %v5840_v20  ;;  %v2256_v32 = vand.u32 2147483647, %v5840_v20 }
 0x3cd   : > { %2970 = vxpose.xlu2.b32.cont [14/16] (narrow) %v2938_v14, 8  ;;  %3591 = vrcp.f32 %v6000_v5  ;;  %vm2427_vm1 = vcmp.lt.f32.partialorder %v2078_v4, %v6366_v35  ;;  %v2087_v18 = vsel %vm6014_vm15, %v5897_v27, %v2083_v16  ;;  %v2091_v53 = vor.u32 1.1754944e-38, %v2090_v58  ;;  %vm2254_vm2 = vmor %vm2252_vm0, %vm2253_vm11 }
 0x3ce   : > { %2998 = vxpose.xlu1.b32.cont [10/16] (narrow) %v2950_v25, 8  ;;  %v3590_v52 = vpop.eup %3589  ;;  %v2276_v28 = vmul.f32 %v6007_v60, %v5944_v38  ;;  %v2779_v41 = vsel %vm2587_vm12, %v6367_v3, %v2078_v4  ;;  %v2255_v20 = vsel %vm2254_vm2, %v5907_v21, %v2251_v26  ;;  %v2264_v12 = vmul.f32 %v5950_v40, %v2263_v57  ;;  %v6371_v21 = vld [vmem:[#allocation117_spill] sm:$0xff]  ;;  %v6381_v57 = vld [vmem:[#allocation39_spill] sm:$0xff] }
 0x3cf   : > { %vm2439_vm3 = vcmp.lt.f32.partialorder %v2246_v49, %v6368_v37  ;;  %v2791_v13 = vsel %vm2599_vm14, %v6369_v30, %v2246_v49  ;;  %vm2089_vm4 = vcmp.eq.f32.partialorder %v2088_v17, 8.507059e+37  ;;  %v2259_v27 = vor.u32 1.1754944e-38, %v2258_v63  ;;  %v6383_v63 = vld [vmem:[#allocation113_spill] sm:$0xff] }
 0x3d0   : > { %v2092_v51 = vsel %vm2089_vm4, %v2091_v53, %v2087_v18  ;;  %vm2257_vm5 = vcmp.eq.f32.partialorder %v2256_v32, 8.507059e+37  ;;  %v6034_v45 = vadd.f32 1.0, %v3590_v52  ;;  %v2939_v0 = vsel %vm2427_vm1, %v6370_v42, %v2779_v41  ;;  %v6384_v32 = vld [vmem:[#allocation64_spill] sm:$0xff]  ;;  %v6385_v53 = vld [vmem:[#allocation45_spill] sm:$0xff]  ;;  %v6386_v52 = vld [vmem:[#allocation91_spill] sm:$0xff] }
 0x3d1   : > { %v2260_v6 = vsel %vm2257_vm5, %v2259_v27, %v2255_v20  ;;  %v2277_v34 = vsub.f32 1.0, %v2276_v28  ;;  %v2951_v36 = vsel %vm2439_vm3, %v6371_v21, %v2791_v13  ;;  %v2265_v22 = vadd.f32 %v5950_v40, %v2264_v12  ;;  %v6387_v20 = vld [vmem:[#allocation118_spill] sm:$0xff]  ;;  %v6388_v13 = vld [vmem:[#allocation69_spill] sm:$0xff]  ;;  %v6391_v21 = vld [vmem:[#allocation116_spill] sm:$0xff] }
 0x3d2   : > { %vm2267_vm6 = vweird.f32 %v5950_v40  ;;  %vm2588_vm7 = vcmp.gt.f32.partialorder %v2092_v51, %v6372_v24  ;;  %v2272_v43 = vand.u32 2147483648, %v5899_v46  ;;  %vm2600_vm8 = vcmp.gt.f32.partialorder %v2260_v6, %v6373_v50  ;;  %v6390_v42 = vld [vmem:[#allocation90_spill] sm:$0xff] }
 0x3d3   : > { %v3592_v54 = vpop.eup %3591  ;;  %vm2266_vm9 = vweird.f32 %v5899_v46  ;;  %v2270_v9 = vand.u32 2147483647, %v5899_v46  ;;  %3593 = vrcp.f32 %v6034_v45  ;;  %vm2428_vm10 = vcmp.lt.f32.partialorder %v2092_v51, %v6374_v1  ;;  %v6378_v46 = vld [vmem:[#allocation102_spill] sm:$0xff] }
 0x3d4   : > { %vm2268_vm11 = vmor %vm2266_vm9, %vm2267_vm6  ;;  %v2290_v48 = vmul.f32 %v3592_v54, %v6000_v5  ;;  %v2780_v15 = vsel %vm2588_vm7, %v6375_v55, %v2092_v51  ;;  %v2278_v29 = vmul.f32 %v6007_v60, %v2277_v34  ;;  %vm2440_vm12 = vcmp.lt.f32.partialorder %v2260_v6, %v6376_v11  ;;  %v6389_v51 = vld [vmem:[#allocation43_spill] sm:$0xff]  ;;  %v6393_v24 = vld [vmem:[#allocation42_spill] sm:$0xff] }
 0x3d5   : > { %2971 = vxpose.xlu2.b32.cont [15/16] (narrow) %v2939_v0, 8  ;;  %v2269_v33 = vsel %vm2268_vm11, %v5950_v40, %v2265_v22  ;;  %v2792_v59 = vsel %vm2600_vm8, %v6377_v10, %v2260_v6  ;;  %v2273_v44 = vor.u32 1.1754944e-38, %v2272_v43  ;;  %vm2271_vm13 = vcmp.eq.f32.partialorder %v2270_v9, 8.507059e+37  ;;  %v6392_v22 = vld [vmem:[#allocation67_spill] sm:$0xff]  ;;  %v6394_v43 = vld [vmem:[#allocation94_spill] sm:$0xff] }
 0x3d6   : > { %2999 = vxpose.xlu1.b32.cont [11/16] (narrow) %v2951_v36, 8  ;;  %v2940_v39 = vsel %vm2428_vm10, %v6378_v46, %v2780_v15  ;;  %v2291_v23 = vsub.f32 1.0, %v2290_v48  ;;  %v2952_v56 = vsel %vm2440_vm12, %v6379_v2, %v2792_v59  ;;  %v2279_v8 = vadd.f32 %v6007_v60, %v2278_v29 }
 0x3d7   : > { %v2274_v7 = vsel %vm2271_vm13, %v2273_v44, %v2269_v33  ;;  %vm2281_vm14 = vweird.f32 %v6007_v60  ;;  %v2286_v58 = vand.u32 2147483648, %v5944_v38  ;;  %vm2280_vm0 = vweird.f32 %v5944_v38 }
 0x3d8   : > { %vm2601_vm15 = vcmp.gt.f32.partialorder %v2274_v7, %v6380_v19  ;;  %v2284_v14 = vand.u32 2147483647, %v5944_v38  ;;  %vm2282_vm1 = vmor %vm2280_vm0, %vm2281_vm14  ;;  %v2292_v16 = vmul.f32 %v3592_v54, %v2291_v23  ;;  %vm2441_vm2 = vcmp.lt.f32.partialorder %v2274_v7, %v6381_v57 }
 0x3d9   : > { %v3594_v40 = vpop.eup %3593  ;;  %v2283_v49 = vsel %vm2282_vm1, %v6007_v60, %v2279_v8  ;;  %v2793_v25 = vsel %vm2601_vm15, %v6382_v62, %v2274_v7  ;;  %v2287_v26 = vor.u32 1.1754944e-38, %v2286_v58  ;;  %vm2295_vm4 = vweird.f32 %v3592_v54 }
 0x3da   : > { %v2304_v4 = vmul.f32 %v3594_v40, %v6034_v45  ;;  %vm2285_vm3 = vcmp.eq.f32.partialorder %v2284_v14, 8.507059e+37  ;;  %v2953_v47 = vsel %vm2441_vm2, %v6383_v63, %v2793_v25  ;;  %v2293_v31 = vadd.f32 %v3592_v54, %v2292_v16 }
 0x3db   : > { %v2288_v61 = vsel %vm2285_vm3, %v2287_v26, %v2283_v49  ;;  %v2300_v38 = vand.u32 2147483648, %v6000_v5  ;;  %vm2294_vm6 = vweird.f32 %v6000_v5  ;;  %v2298_v60 = vand.u32 2147483647, %v6000_v5 }
 0x3dc   : > { %v2305_v17 = vsub.f32 1.0, %v2304_v4  ;;  %vm2602_vm5 = vcmp.gt.f32.partialorder %v2288_v61, %v6384_v32  ;;  %vm2296_vm7 = vmor %vm2294_vm6, %vm2295_vm4  ;;  %vm2442_vm8 = vcmp.lt.f32.partialorder %v2288_v61, %v6385_v53  ;;  %vm2309_vm10 = vweird.f32 %v3594_v40 }
 0x3dd   : > { %2972 = vxpose.xlu2.b32.end [16/16] (narrow) %v2940_v39, 8  ;;  %v2297_v35 = vsel %vm2296_vm7, %v3592_v54, %v2293_v31  ;;  %v2794_v28 = vsel %vm2602_vm5, %v6386_v52, %v2288_v61  ;;  %v2301_v3 = vor.u32 1.1754944e-38, %v2300_v38  ;;  %vm2299_vm9 = vcmp.eq.f32.partialorder %v2298_v60, 8.507059e+37  ;;  %v2892_v54 = vpop.permute.xlu0 %2891 }
 0x3de   : > { %3000 = vxpose.xlu1.b32.cont [12/16] (narrow) %v2952_v56, 8  ;;  %v2306_v18 = vmul.f32 %v3594_v40, %v2305_v17  ;;  %v2954_v12 = vsel %vm2442_vm8, %v6387_v20, %v2794_v28  ;;  %v2314_v30 = vand.u32 2147483648, %v6034_v45  ;;  %vm2308_vm12 = vweird.f32 %v6034_v45 }
 0x3df   : > { %v2302_v41 = vsel %vm2299_vm9, %v2301_v3, %v2297_v35  ;;  %v2312_v5 = vand.u32 2147483647, %v6034_v45  ;;  %vm2310_vm13 = vmor %vm2308_vm12, %vm2309_vm10  ;;  %v3027_v9 = vlaneseq  ;;  %vm3024_vm2 = vcmask 1040384  }
 0x3e0   : > { %v2307_v37 = vadd.f32 %v3594_v40, %v2306_v18  ;;  %vm2603_vm11 = vcmp.gt.f32.partialorder %v2302_v41, %v6388_v13  ;;  %vm2443_vm14 = vcmp.lt.f32.partialorder %v2302_v41, %v6389_v51  ;;  %v2315_v6 = vor.u32 1.1754944e-38, %v2314_v30 }
 0x3e1   : > { %v2795_v0 = vsel %vm2603_vm11, %v6390_v42, %v2302_v41  ;;  %vm2313_vm15 = vcmp.eq.f32.partialorder %v2312_v5, 8.507059e+37  ;;  %vm3029_vm3 = vcmp.lt.s32.totalorder %v3027_v9, 256 }
 0x3e2   : > { %v2311_v27 = vsel %vm2310_vm13, %v3594_v40, %v2307_v37  ;;  %v2955_v36 = vsel %vm2443_vm14, %v6391_v21, %v2795_v0 }
 0x3e3   : > { %v2316_v34 = vsel %vm2313_vm15, %v2315_v6, %v2311_v27 }
 0x3e4   : > { %vm2604_vm0 = vcmp.gt.f32.partialorder %v2316_v34, %v6392_v22  ;;  %vm2444_vm1 = vcmp.lt.f32.partialorder %v2316_v34, %v6393_v24 }
 0x3e5   : > { %v2796_v45 = vsel %vm2604_vm0, %v6394_v43, %v2316_v34 }
 0x3e6   : > { %3001 = vxpose.xlu1.b32.cont [13/16] (narrow) %v2953_v47, 8  ;;  %v2956_v50 = vsel %vm2444_vm1, %v2892_v54, %v2796_v45 }
 0x3ee   : > { %3002 = vxpose.xlu1.b32.cont [14/16] (narrow) %v2954_v12, 8 }
 0x3f6   : > { %3003 = vxpose.xlu1.b32.cont [15/16] (narrow) %v2955_v36, 8 }
 0x3fe   : > { %3004 = vxpose.xlu1.b32.end [16/16] (narrow) %v2956_v50, 8  ;;  %v2973_v48 = vpop.trf.xlu2 }
 0x42a   : > { %v3005_v1 = vpop.trf.xlu1 }
 0x42b   : > { %v3023_v55 = vrot.slane %v3005_v1, 7 }
 0x42d   : > { %v3025_v15 = vsel %vm3024_vm2, %v2973_v48, %v3023_v55 }
 0x42e   : > { %3031 = vst.msk [vmem:[%s527_s10] sm:$0x3] %vm3029_vm3, %v3025_v15 }
 0x42f PF: > { %s28_s19 = sadd.s32 1, %s3903_s19  }
 0x430   : > { %p25_p8 = scmp.ge.s32.totalorder %s28_s19, 4  }
 0x432   :  { %27 = sbr.rel (!%p25_p8) target bundleno = 8 (0x8), region = 131 }
 0x437   :  { %3052 = vsyncpa [#allocation4], 1 }
 0x438   :  { %3054 = vsyncpa [#allocation4 + $0x1], 1 }
 0x439   :  { %3055 = vsyncpa [#allocation6], 1 }
 0x43a   :  { %3056 = vsyncpa [#allocation9], 1 }
 0x43b   :  { %3057 = vsyncpa [#allocation12], 1 }
 0x43c   :  { %3058 = vsyncpa [#allocation15], 1 }

// kernel: custom-call.8
= control target key start
LH: loop header
LB: loop body
LE: loop exit
PB: predicated region body
PF: predicated region fallthrough
CT: control target
= control target key end

     0   :  { %5 = vsyncpa [#allocation3], 0  ;;  %s887_s0 = inlined_call_operand.vmem [shape: f32[512,5,5], index: 0, kind: input, shape index: {}]   ;;  %s888_s1 = inlined_call_operand.vmem [shape: f32[512,5,5], index: 1, kind: output, shape index: {0}]   ;;  %s889_s2 = inlined_call_operand.hbm [shape: s32[512,5], index: 2, kind: output, shape index: {1}]   ;;  %s890_s3 = inlined_call_operand.vmem [shape: s32[512,5], index: 3, kind: output, shape index: {2}]  }
   0x1   :  { %7 = vsyncpa [#allocation3 + $0x1], 0  ;;  %s713_s12 = smov 0   ;;  %s715_s13 = smov 0  }
   0x2   :  { %s717_s14 = smov 0   ;;  %s719_s15 = smov 0  }
   0x3 LB: > { %s734_s16 = sadd.s32 4294967295, %s686_s15   ;;  %s549_s17 = sadd.s32 4294967294, %s686_s15   ;;  %s686_s15 = sphi %s719_s15, %s896_s15   ;;  %s682_s14 = sphi %s717_s14, %s895_s14   ;;  %s678_s13 = sphi %s715_s13, %s894_s13   ;;  %s674_s12 = sphi %s713_s12, %s893_s12  }
   0x4   : > { %s738_s18 = sadd.s32 1, %s686_s15   ;;  %s17_s19 = sshrl.u32 %s686_s15, 3 }
   0x5   : > { %s18_s20 = sshrl.u32 %s738_s18, 3  ;;  %s22_s21 = sadd.s32 1, %s682_s14 }
   0x6   : > { %s19_s22 = ssub.s32 %s17_s19, %s18_s20  ;;  %p32_p0 = scmp.ne.s32.totalorder %s682_s14, %s678_s13 }
   0x7   : > { %p20_p1 = scmp.eq.s32.totalorder %s19_s22, 0  ;;  %p33_p2 = scmp.eq.s32.totalorder %s734_s16, 511 }
   0x8   : > { %p38_p3 = scmp.ne.s32.totalorder %s678_s13, %s674_s12  ;;  %p39_p4 = scmp.eq.s32.totalorder %s549_s17, 511 }
   0x9   : > { %s749_s23 = scalar_select %p20_p1, %s682_s14, %s22_s21  }
   0xa   : > { %p751_p5 = por %p33_p2, %p32_p0  ;;  %p755_p6 = por %p39_p4, %p38_p3 }
   0xb   : > { %p551_p7 = scmp.ge.s32.totalorder %s686_s15, 512 }
   0xc   : > { %s85_s26 = sand.u32 (!%p551_p7), 1, %s686_s15   ;;  %s553_s27 = sshll.u32 (!%p551_p7), %s686_s15, 3 }
   0xd   : > { %83 = sbr.rel (%p551_p7) target bundleno = 20 (0x14), region = 16  ;;  %s552_s28 = sshll.u32 (!%p551_p7), %s85_s26, 3 }
   0xe   : > { %s89_s4 = scalar_lea.vmem (!%p551_p7), %s887_s0, %s553_s27  ;;  %s87_s5 = scalar_lea.vmem (!%p551_p7), [#allocation0], %s552_s28 }
  0x12   : > { %v118_v0 = vld [vmem:[%s89_s4] sm:$0xff] }
  0x13   : > { %119 = vst [vmem:[%s87_s5] sm:$0xff] %v118_v0 }
  0x14 PF: > { %p554_p8 = scmp.ge.s32.totalorder %s686_s15, 1  ;;  %p124_p9 = scmp.lt.s32.totalorder %s686_s15, 513 }
  0x16   : > { %p125_p10 = pnand %p554_p8, %p124_p9 }
  0x18   : > { %128 = sbr.rel (%p125_p10) target bundleno = 468 (0x1d4), region = 54 }
  0x1d   : > { %s131_s6 = sand.u32 1, %s734_s16   ;;  %s146_s7 = sand.u32 1, %s678_s13   ;;  %v164_v1 = vlaneseq  ;;  %v692_v4 = vmov 0  }
  0x1e   : > { %s555_s8 = sshll.u32 %s131_s6, 3  ;;  %s771_s9 = sshll.u32 %s146_s7, 3 }
  0x1f   : > { %v774_v2 = vshrl.u32 %v164_v1, 7  ;;  %s133_s10 = scalar_lea.vmem [#allocation0], %s555_s8  ;;  %s776_s11 = scalar_lea.vmem [#allocation1], %s555_s8 }
  0x20   : > { %v157_v3 = vld [vmem:[%s133_s10] sm:$0xff]  ;;  %s159_s17 = sand.u32 7, %s734_s16   ;;  %s148_s19 = scalar_lea.vmem [#allocation2], %s771_s9 }
  0x21   : > { %158 = vst [vmem:[%s776_s11] sm:$0xff] %v157_v3  ;;  %s783_s20 = scalar_lea.vmem %s148_s19, %s159_s17 [#allocation2]  ;;  %s154_s21 = scalar_lea.vmem [#allocation4], %s771_s9 }
  0x22   : > { %s788_s22 = scalar_lea.vmem %s154_s21, %s159_s17 [#allocation4]  ;;  %168 = vst [vmem:[#allocation5] sm:$0xff] %v774_v2  ;;  %s792_s26 = smov 0  }
  0x23   : > { %163 = vst [vmem:[%s783_s20] sm:$0x1] %v692_v4 }
  0x24 LB: >> { %vm184_vm0 = vcmp.lt.s32.totalorder %v774_v2, 5  ;;  %v800_v7 = vstv %s690_s26  ;;  %s225_s27 = ssub.s32 128, %s690_s26  ;;  %s237_s28 = scalar_lea.vmem %s776_s11, %s690_s26 [#allocation1]  ;;  %v231_v38 = vand.u32 127, %v164_v1  ;;  %s690_s26 = sphi %s792_s26, %s174_s26  }
  0x25   : >> { %vm183_vm1 = vcmp.ge.s32.totalorder %v774_v2, %v800_v7  ;;  %s243_s4 = scalar_lea.vmem [#allocation5], %s690_s26  ;;  %vm263_vm14 = vcmp.gt.s32.totalorder %v774_v2, %v800_v7  ;;  %s174_s26 = sadd.s32 1, %s690_s26  }
  0x26   : >> { %vm185_vm3 = vmand %vm183_vm1, %vm184_vm0  ;;  %vm232_vm12 = vcmp.eq.s32.totalorder %v231_v38, %v800_v7  ;;  %p171_p11 = scmp.ge.s32.totalorder %s174_s26, 5  }
  0x27   : > { %s387_s6 = sshrl.u32 (%p171_p11), %s734_s16, 3 }
  0x28   : >> { %v179_v5 = vld [vmem:[%s776_s11] sm:$0xff]  ;;  %v239_v39 = vld [vmem:[%s237_s28] ss:$0 sm:$0xff]  ;;  %s836_s8 = sshll.u32 (%p171_p11), %s387_s6, 3  ;;  %s640_s6 = scalar_lea.hbm (%p171_p11), %s889_s2, 512 }
  0x29   : >> { %v180_v6 = vand.u32 2147483647, %v179_v5  ;;  %v245_v43 = vld [vmem:[%s243_s4] ss:$0 sm:$0xff] }
  0x2a   : >> { %v234_v41 = vld [vmem:[%s783_s20] ss:$0 sm:$0xff] }
  0x2b   : >> { %vm559_vm2 = vcmp.gt.f32.partialorder %v180_v6, -inf }
  0x2c   : >> { %vm187_vm4 = vmand %vm185_vm3, %vm559_vm2 }
  0x2d   : >> { %v188_v8 = vsel %vm187_vm4, %v774_v2, %v800_v7  ;;  %v189_v9 = vsel %vm187_vm4, %v180_v6, -inf  ;;  %vm280_vm4 = vmand %vm263_vm14, %vm232_vm12 }
  0x2e   : >> { %v190_v10 = vrot.slane %v189_v9, 1  ;;  %v191_v11 = vrot.slane %v188_v8, 1 }
  0x30   : >> { %vm192_vm5 = vcmp.ge.f32.partialorder %v190_v10, %v189_v9  ;;  %v195_v12 = vrot.slane %v190_v10, 1  ;;  %v196_v13 = vrot.slane %v191_v11, 1 }
  0x31   : >> { %v193_v14 = vsel %vm192_vm5, %v190_v10, %v189_v9  ;;  %v194_v15 = vsel %vm192_vm5, %v191_v11, %v188_v8  ;;  %vm255_vm5 = vcmp.gt.s32.totalorder %v231_v38, %v800_v7 }
  0x32   : >> { %vm197_vm6 = vcmp.ge.f32.partialorder %v195_v12, %v193_v14  ;;  %v200_v16 = vrot.slane %v195_v12, 1  ;;  %v201_v17 = vrot.slane %v196_v13, 1 }
  0x33   : >> { %v198_v18 = vsel %vm197_vm6, %v195_v12, %v193_v14  ;;  %v199_v19 = vsel %vm197_vm6, %v196_v13, %v194_v15 }
  0x34   : >> { %vm202_vm7 = vcmp.ge.f32.partialorder %v200_v16, %v198_v18  ;;  %v205_v20 = vrot.slane %v200_v16, 1  ;;  %v206_v21 = vrot.slane %v201_v17, 1 }
  0x35   : >> { %v203_v22 = vsel %vm202_vm7, %v200_v16, %v198_v18  ;;  %v204_v23 = vsel %vm202_vm7, %v201_v17, %v199_v19 }
  0x36   : >> { %vm207_vm8 = vcmp.ge.f32.partialorder %v205_v20, %v203_v22  ;;  %v210_v24 = vrot.slane %v205_v20, 1  ;;  %v211_v25 = vrot.slane %v206_v21, 1 }
  0x37   : >> { %v208_v26 = vsel %vm207_vm8, %v205_v20, %v203_v22  ;;  %v209_v27 = vsel %vm207_vm8, %v206_v21, %v204_v23 }
  0x38   : >> { %vm212_vm9 = vcmp.ge.f32.partialorder %v210_v24, %v208_v26  ;;  %v215_v28 = vrot.slane %v210_v24, 1  ;;  %v216_v29 = vrot.slane %v211_v25, 1 }
  0x39   : >> { %v213_v30 = vsel %vm212_vm9, %v210_v24, %v208_v26  ;;  %v214_v31 = vsel %vm212_vm9, %v211_v25, %v209_v27 }
  0x3a   : >> { %vm217_vm10 = vcmp.ge.f32.partialorder %v215_v28, %v213_v30  ;;  %v220_v32 = vrot.slane %v215_v28, 1  ;;  %v221_v33 = vrot.slane %v216_v29, 1 }
  0x3b   : >> { %v218_v34 = vsel %vm217_vm10, %v215_v28, %v213_v30  ;;  %v219_v35 = vsel %vm217_vm10, %v216_v29, %v214_v31 }
  0x3c   : >> { %vm222_vm11 = vcmp.ge.f32.partialorder %v220_v32, %v218_v34 }
  0x3d   : >> { %v224_v36 = vsel %vm222_vm11, %v221_v33, %v219_v35 }
  0x3e   : >> { %226 = vrot.lane.b32.xlu0 %v224_v36, %s225_s27  ;;  %s391_s27 = scalar_lea.hbm (%p171_p11), %s889_s2, %s836_s8 }
  0xb0   : >> { %v227_v37 = vpop.permute.xlu0 %226 }
  0xb1   : >> { %568 = vpush %v227_v37 }
  0xe2   : >> { %s569_s29 = spop %568 }
  0xe3   : >> { %v233_v40 = vstv %s569_s29  ;;  %s238_s30 = scalar_lea.vmem %s776_s11, %s569_s29 [#allocation1]  ;;  %s244_s5 = scalar_lea.vmem [#allocation5], %s569_s29 }
  0xe4   : >> { %v240_v42 = vld [vmem:[%s238_s30] ss:$0 sm:$0xff]  ;;  %v235_v45 = vsel %vm232_vm12, %v233_v40, %v234_v41  ;;  %s395_s29 = sshll.u32 (%p171_p11), %s391_s27, 4  ;;  %s396_s29 = int_to_ptr.hbm [resolvable:$true] %s395_s29 }
  0xe5   : >> { %v246_v44 = vld [vmem:[%s244_s5] ss:$0 sm:$0xff]  ;;  %241 = vst [vmem:[%s238_s30] sm:$0x1] %v239_v39  ;;  %vm249_vm13 = vcmp.ne.f32.partialorder %v240_v42, 0.0  ;;  %v256_v61 = vsel %vm255_vm5, %v240_v42, 0.0  ;;  %s634_s26 = sshra.s32 (%p171_p11), %s396_s29, 4  ;;  %s635_s26 = int_to_ptr.hbm [resolvable:$true] %s634_s26 }
  0xe6   : >> { %242 = vst [vmem:[%s237_s28] sm:$0x1] %v240_v42  ;;  %vm250_vm15 = vmand %vm232_vm12, %vm249_vm13  ;;  %s393_s28 = sshll.u32 (%p171_p11), %s148_s19, 4  ;;  %s636_s30 = scalar_lea.hbm (%p171_p11), %s635_s26, 8  ;;  %s394_s28 = int_to_ptr.vmem [resolvable:$true] %s393_s28 }
  0xe7   : >> { %247 = vst [vmem:[%s244_s5] sm:$0x1] %v245_v43  ;;  %v251_v46 = vsel %vm250_vm15, %v240_v42, 1.0  ;;  %p637_p12 = scmp.ne.s32.totalorder (%p171_p11), %s635_s26, %s636_s30  ;;  %p641_p1 = scmp.lt.s32.totalorder (%p171_p11), %s635_s26, %s889_s2 }
  0xe8   : >> { %248 = vst [vmem:[%s243_s4] sm:$0x1] %v246_v44  ;;  %v264_v47 = vsel %vm263_vm14, %v251_v46, 1.0  ;;  %p642_p2 = scmp.lt.s32.totalorder (%p171_p11), %s640_s6, %s636_s30 }
  0xe9   : >> { %618 = vrcp.f32 %v264_v47  ;;  %236 = vst [vmem:[%s783_s20] sm:$0x1] %v235_v45  ;;  %v276_v51 = vand.u32 2147483648, %v264_v47  ;;  %v274_v53 = vand.u32 2147483647, %v264_v47  ;;  %vm270_vm1 = vweird.f32 %v264_v47  ;;  %s341_s20 = scalar_lea.sflag (%p171_p11), [#allocation3], %s146_s7  ;;  %p638_p13 = pnand (%p171_p11), %p637_p12, %p751_p5 }
  0xea   : > { %p643_p3 = por (%p171_p11), %p642_p2, %p641_p1 }
  0xeb   : >> { %v277_v55 = vor.u32 1.1754944e-38, %v276_v51  ;;  %vm275_vm3 = vcmp.eq.f32.partialorder %v274_v53, 8.507059e+37  ;;  %p639_p0 = pneg (%p171_p11), %p638_p13 }
  0xed   : >> { %v260_v57 = vld [vmem:[%s776_s11] sm:$0xff]  ;;  %p644_p4 = pnand (%p171_p11), %p643_p3, %p639_p0 }
  0xef   : >> { %v619_v48 = vpop.eup %618  ;;  %v287_v3 = vld [vmem:[#allocation5] sm:$0xff] (%p171_p11) }
  0xf0   : >> { %v266_v49 = vmul.f32 %v619_v48, %v264_v47  ;;  %vm271_vm0 = vweird.f32 %v619_v48 }
  0xf1   : >> { %vm272_vm2 = vmor %vm270_vm1, %vm271_vm0 }
  0xf2   : >> { %v267_v50 = vsub.f32 1.0, %v266_v49 }
  0xf4   : >> { %v268_v52 = vmul.f32 %v619_v48, %v267_v50 }
  0xf6   : >> { %v269_v54 = vadd.f32 %v619_v48, %v268_v52 }
  0xf8   : >> { %v273_v56 = vsel %vm272_vm2, %v619_v48, %v269_v54 }
  0xf9   : >> { %v278_v58 = vsel %vm275_vm3, %v277_v55, %v273_v56 }
  0xfa   : >> { %v279_v59 = vmul.f32 %v278_v58, %v260_v57 }
  0xfc   : >> { %v281_v60 = vsel %vm280_vm4, %v279_v59, 0.0 }
  0xfd   : >> { %282 = vadd.xlane.f32.xlu0 %v281_v60 }
 0x126   : > { %303 = vxpose.xlu0.b32.start.end [1/1] (short) (narrow) (%p171_p11), %v287_v3, 8 }
 0x170   : >> { %v283_v62 = vpop.xlane.xlu0 %282 }
 0x171   : >> { %v284_v63 = vmul.f32 %v283_v62, %v256_v61  ;;  %173 = sbr.rel (!%p171_p11) target bundleno = 36 (0x24), region = 214 }
 0x173   : >> { %v285_v0 = vsub.f32 %v279_v59, %v284_v63 }
 0x175   : >> { %286 = vst [vmem:[%s776_s11] sm:$0xff] %v285_v0 }
 0x176   : > { %647 = shalt.err (!%p644_p4)
}
 0x177   : > { %570 = dma.vmem_to_hbm [thread:$0]  (%p751_p5), %s394_s28, 128, %s396_s29, %s341_s20  }
 0x178   : > { %s563_s7 = sshll.u32 %s734_s16, 3  ;;  %s404_s5 = scalar_lea.vmem (%p751_p5), %s890_s3, %s836_s8 }
 0x179   : > { %s350_s4 = scalar_lea.vmem %s888_s1, %s563_s7 }
 0x17c   : > { %v379_v1 = vld [vmem:[%s776_s11] sm:$0xff] }
 0x17d   : > { %380 = vst [vmem:[%s350_s4] sm:$0xff] %v379_v1 }
 0x1c7   : > { %401 = sbr.rel (!%p751_p5) target bundleno = 468 (0x1d4), region = 104 }
 0x1ca   : > { %v319_v2 = vpop.trf.xlu0 }
 0x1cb   : > { %335 = vst [vmem:[%s788_s22] sm:$0x1] %v319_v2 }
 0x1d2   : > { %v433_v4 = vld [vmem:[%s154_s21] sm:$0xff] }
 0x1d3   : > { %434 = vst [vmem:[%s404_s5] sm:$0xff] %v433_v4 }
 0x1d4 PF: > { %p576_p7 = scmp.ge.s32.totalorder %s686_s15, 2  ;;  %s450_s16 = sand.u32 1, %s674_s12  }
 0x1d5   : > { %s451_s24 = scalar_lea.sflag [#allocation3], %s450_s16 }
 0x1d6   : > { %p573_p8 = pnand %p576_p7, %p755_p6 }
 0x1d8   : > { %p574_p9 = pneg %p573_p8 }
 0x1da   : > { %669 = dma.done.wait (%p574_p9), %s451_s24, 128  }
 0x1db   : > { %671 = vsyncadd (%p574_p9), %s451_s24, 4294967168  ;;  %p10_p5 = scmp.ge.s32.totalorder %s738_s18, 514   ;;  %s893_s12 = smov %s678_s13 }
 0x1dc   : > { %s894_s13 = smov %s682_s14  ;;  %s895_s14 = smov %s749_s23 }
 0x1dd   : > { %s896_s15 = smov %s738_s18  ;;  %12 = sbr.rel (!%p10_p5) target bundleno = 3 (0x3), region = 225 }
 0x1e2   :  { %464 = vsyncpa [#allocation3], 1 }
 0x1e3   :  { %466 = vsyncpa [#allocation3 + $0x1], 1 }

// kernel: custom-call.10
= control target key start
LH: loop header
LB: loop body
LE: loop exit
PB: predicated region body
PF: predicated region fallthrough
CT: control target
= control target key end

     0   :  { %s628_s6 = smov 0   ;;  %s630_s7 = smov 0   ;;  %s727_s0 = inlined_call_operand.vmem [shape: f32[512,1,5,5], index: 0, kind: input, shape index: {}]   ;;  %s728_s1 = inlined_call_operand.vmem [shape: f32[512,1,5,5], index: 1, kind: output, shape index: {}]  }
   0x1   :  { %s632_s8 = smov 0  }
   0x2 LB: > { %s471_s9 = sadd.s32 4294967295, %s598_s8   ;;  %s22_s10 = sadd.s32 1, %s594_s7  ;;  %s598_s8 = sphi %s632_s8, %s7_s8   ;;  %s594_s7 = sphi %s630_s7, %s730_s7   ;;  %s590_s6 = sphi %s628_s6, %s729_s6  }
   0x3   : > { %p23_p0 = scmp.ge.s32.totalorder %s22_s10, 4  ;;  %p473_p1 = scmp.ge.s32.totalorder %s598_s8, 4 }
   0x4   : > { %s49_s11 = sand.u32 (!%p473_p1), 1, %s598_s8   ;;  %s474_s12 = sshll.u32 (!%p473_p1), %s594_s7, 3 }
   0x5   : > { %s732_s10 = smov (%p23_p0, %s22_s10), 0  ;;  %47 = sbr.rel (%p473_p1) target bundleno = 16 (0x10), region = 16 }
   0x6   : > { %s496_s13 = smul.u32 (!%p473_p1), 40, %s49_s11  ;;  %s59_s16 = scalar_lea.vmem (!%p473_p1), %s727_s0, %s474_s12 }
   0x8   : > { %s51_s17 = scalar_lea.vmem (!%p473_p1), [#allocation0], %s496_s13 }
   0xa   : > { %v96_v0 = vld [vmem:[%s59_s16] sm:$0xff] }
   0xb   : > { %v98_v1 = vld [vmem:[%s59_s16 + $0x20] sm:$0xff]  ;;  %97 = vst [vmem:[%s51_s17] sm:$0xff] %v96_v0 }
   0xc   : > { %v100_v2 = vld [vmem:[%s59_s16 + $0x40] sm:$0xff]  ;;  %99 = vst [vmem:[%s51_s17 + $0x8] sm:$0xff] %v98_v1 }
   0xd   : > { %v102_v3 = vld [vmem:[%s59_s16 + $0x60] sm:$0xff]  ;;  %101 = vst [vmem:[%s51_s17 + $0x10] sm:$0xff] %v100_v2 }
   0xe   : > { %v104_v4 = vld [vmem:[%s59_s16 + $0x80] sm:$0xff]  ;;  %103 = vst [vmem:[%s51_s17 + $0x18] sm:$0xff] %v102_v3 }
   0xf   : > { %105 = vst [vmem:[%s51_s17 + $0x20] sm:$0xff] %v104_v4 }
  0x10 PF: > { %p475_p2 = scmp.ge.s32.totalorder %s598_s8, 1  ;;  %p110_p3 = scmp.lt.s32.totalorder %s598_s8, 5 }
  0x12   : > { %p111_p4 = pnand %p475_p2, %p110_p3 }
  0x14   : > { %114 = sbr.rel (%p111_p4) target bundleno = 205 (0xcd), region = 54 }
  0x19   : > { %s117_s18 = sand.u32 1, %s471_s9   ;;  %s659_s22 = smov 0  }
  0x1a   : > { %s497_s19 = smul.u32 40, %s117_s18 }
  0x1c   : > { %s655_s20 = scalar_lea.vmem [#allocation0], %s497_s19  ;;  %s657_s21 = scalar_lea.vmem [#allocation1], %s497_s19 }
  0x1d LB: >> { %s665_s23 = sshll.u32 %s602_s22, 3  ;;  %s138_s26 = scalar_lea.vmem [#allocation3], %s602_s22  ;;  %v144_v6 = vlaneseq  ;;  %v147_v8 = vstv %s602_s22  ;;  %s602_s22 = sphi %s659_s22, %s133_s22  }
  0x1e   : >> { %s135_s24 = sadd.s32 %s602_s22, %s665_s23  ;;  %s141_s27 = scalar_lea.vmem %s655_s20, %s665_s23 [#allocation0] }
  0x1f   : >> { %s136_s25 = scalar_lea.vmem %s655_s20, %s135_s24 [#allocation0]  ;;  %v145_v7 = vshrl.u32 %v144_v6, 7  ;;  %v143_v14 = vld [vmem:[%s141_s27] sm:$0xff]  ;;  %s142_s28 = scalar_lea.vmem [#allocation2], %s665_s23 }
  0x20   : >> { %v137_v5 = vld [vmem:[%s136_s25] ss:$0 sm:$0xff]  ;;  %s133_s22 = sadd.s32 1, %s602_s22  }
  0x21   : >> { %139 = vst [vmem:[%s138_s26] sm:$0x1] %v137_v5  ;;  %556 = vrcp.f32 %v137_v5  ;;  %vm148_vm0 = vcmp.ge.s32.totalorder %v147_v8, %v145_v7  ;;  %vm149_vm1 = vcmp.lt.s32.totalorder %v145_v7, 5  ;;  %v163_v11 = vand.u32 2147483648, %v137_v5  ;;  %p130_p5 = scmp.ge.s32.totalorder %s133_s22, 5  }
  0x22   : >> { %vm157_vm2 = vweird.f32 %v137_v5  ;;  %v161_v13 = vand.u32 2147483647, %v137_v5  ;;  %vm150_vm4 = vmand %vm148_vm0, %vm149_vm1  ;;  %s604_s29 = smov (%p130_p5), 0  }
  0x23   : >> { %v164_v16 = vor.u32 1.1754944e-38, %v163_v11  ;;  %v151_v18 = vsel %vm150_vm4, %v143_v14, 0.0 }
  0x24   : >> { %vm162_vm6 = vcmp.eq.f32.partialorder %v161_v13, 8.507059e+37 }
  0x27   : >> { %v557_v9 = vpop.eup %556 }
  0x28   : >> { %v153_v10 = vmul.f32 %v557_v9, %v137_v5  ;;  %vm158_vm3 = vweird.f32 %v557_v9 }
  0x29   : >> { %vm159_vm5 = vmor %vm157_vm2, %vm158_vm3 }
  0x2a   : >> { %v154_v12 = vsub.f32 1.0, %v153_v10 }
  0x2c   : >> { %v155_v15 = vmul.f32 %v557_v9, %v154_v12 }
  0x2e   : >> { %v156_v17 = vadd.f32 %v557_v9, %v155_v15 }
  0x30   : >> { %v160_v19 = vsel %vm159_vm5, %v557_v9, %v156_v17 }
  0x31   : >> { %v165_v20 = vsel %vm162_vm6, %v164_v16, %v160_v19 }
  0x32   : >> { %v166_v21 = vmul.f32 %v165_v20, %v151_v18  ;;  %132 = sbr.rel (!%p130_p5) target bundleno = 29 (0x1d), region = 167 }
  0x34   : >> { %v167_v22 = vxor.u32 2147483648, %v166_v21 }
  0x36   : >> { %168 = vst [vmem:[%s142_s28] sm:$0xff] %v167_v22 }
  0x37 LB: >> { %v175_v23 = vstv %s606_s29  ;;  %s478_s30 = sshll.u32 %s606_s29, 3  ;;  %v616_v24 = vmov 0.0   ;;  %s174_s29 = sadd.s32 1, %s606_s29   ;;  %s606_s29 = sphi %s604_s29, %s174_s29  }
  0x38   : >> { %vm179_vm7 = vcmp.eq.s32.totalorder %v175_v23, %v145_v7  ;;  %s181_s2 = scalar_lea.vmem %s657_s21, %s478_s30 [#allocation1]  ;;  %p171_p6 = scmp.ge.s32.totalorder %s174_s29, 5  }
  0x39   : >> { %v182_v25 = vsel %vm179_vm7, -1.0, %v616_v24  ;;  %v617_v26 = vmov (%p171_p6), 1.0   ;;  %s680_s3 = smov (%p171_p6), 1  }
  0x3a   : >> { %183 = vst [vmem:[%s181_s2] sm:$0xff] %v182_v25  ;;  %173 = sbr.rel (!%p171_p6) target bundleno = 55 (0x37), region = 178 }
  0x3b   : > { %184 = vst [vmem:[%s657_s21] sm:$0x1] (%p171_p6), %v617_v26 }
  0x3f LB: >> { %s479_s4 = sshll.u32 %s610_s3, 3  ;;  %s689_s9 = scalar_lea.vmem %s657_s21, %s610_s3 [#allocation1]  ;;  %s610_s3 = sphi %s680_s3, %s190_s3  }
  0x40   : >> { %s192_s5 = scalar_lea.vmem [#allocation2], %s479_s4  ;;  %s190_s3 = sadd.s32 1, %s610_s3  }
  0x41   : >> { %v193_v28 = vld [vmem:[%s192_s5] sm:$0xff]  ;;  %p187_p7 = scmp.ge.s32.totalorder %s190_s3, 5  }
  0x42   : >> { %v194_v27 = vld [vmem:[%s657_s21] sm:$0xff]  ;;  %s703_s11 = smov (%p187_p7), 0  }
  0x43   : >> { %v195_v29 = vmul.f32 %v194_v27, %v193_v28 }
  0x45   : >> { %v197_v30 = vrot.slane %v195_v29, 4 }
  0x47   : >> { %v198_v31 = vadd.f32 %v197_v30, %v195_v29 }
  0x49   : >> { %v199_v32 = vrot.slane %v198_v31, 2 }
  0x4b   : >> { %v200_v33 = vadd.f32 %v199_v32, %v198_v31 }
  0x4d   : >> { %v201_v34 = vrot.slane %v200_v33, 1 }
  0x4f   : >> { %v202_v35 = vadd.f32 %v201_v34, %v200_v33 }
  0x51   : >> { %203 = vst [vmem:[%s689_s9] sm:$0x1] %v202_v35 }
  0x58   : >> { %v481_v36 = vld [vmem:[%s657_s21 + $0x8] sm:$0xff] }
  0x59   : >> { %v209_v37 = vmul.f32 %v481_v36, %v193_v28 }
  0x5b   : >> { %v212_v38 = vrot.slane %v209_v37, 4 }
  0x5d   : >> { %v213_v39 = vadd.f32 %v212_v38, %v209_v37 }
  0x5f   : >> { %v214_v40 = vrot.slane %v213_v39, 2 }
  0x61   : >> { %v215_v41 = vadd.f32 %v214_v40, %v213_v39 }
  0x63   : >> { %v216_v42 = vrot.slane %v215_v41, 1 }
  0x65   : >> { %v217_v43 = vadd.f32 %v216_v42, %v215_v41 }
  0x67   : >> { %482 = vst [vmem:[%s689_s9 + $0x8] sm:$0x1] %v217_v43 }
  0x6e   : >> { %v484_v44 = vld [vmem:[%s657_s21 + $0x10] sm:$0xff] }
  0x6f   : >> { %v224_v45 = vmul.f32 %v484_v44, %v193_v28 }
  0x71   : >> { %v227_v46 = vrot.slane %v224_v45, 4 }
  0x73   : >> { %v228_v47 = vadd.f32 %v227_v46, %v224_v45 }
  0x75   : >> { %v229_v48 = vrot.slane %v228_v47, 2 }
  0x77   : >> { %v230_v49 = vadd.f32 %v229_v48, %v228_v47 }
  0x79   : >> { %v231_v50 = vrot.slane %v230_v49, 1 }
  0x7b   : >> { %v232_v51 = vadd.f32 %v231_v50, %v230_v49 }
  0x7d   : >> { %485 = vst [vmem:[%s689_s9 + $0x10] sm:$0x1] %v232_v51 }
  0x84   : >> { %v487_v52 = vld [vmem:[%s657_s21 + $0x18] sm:$0xff] }
  0x85   : >> { %v239_v53 = vmul.f32 %v487_v52, %v193_v28 }
  0x87   : >> { %v242_v54 = vrot.slane %v239_v53, 4 }
  0x89   : >> { %v243_v55 = vadd.f32 %v242_v54, %v239_v53 }
  0x8b   : >> { %v244_v56 = vrot.slane %v243_v55, 2 }
  0x8d   : >> { %v245_v57 = vadd.f32 %v244_v56, %v243_v55 }
  0x8f   : >> { %v246_v58 = vrot.slane %v245_v57, 1 }
  0x91   : >> { %v247_v59 = vadd.f32 %v246_v58, %v245_v57 }
  0x93   : >> { %488 = vst [vmem:[%s689_s9 + $0x18] sm:$0x1] %v247_v59 }
  0x9a   : >> { %v490_v60 = vld [vmem:[%s657_s21 + $0x20] sm:$0xff] }
  0x9b   : >> { %v254_v61 = vmul.f32 %v490_v60, %v193_v28 }
  0x9d   : >> { %v257_v62 = vrot.slane %v254_v61, 4 }
  0x9f   : >> { %v258_v63 = vadd.f32 %v257_v62, %v254_v61 }
  0xa1   : >> { %v259_v0 = vrot.slane %v258_v63, 2 }
  0xa3   : >> { %v260_v1 = vadd.f32 %v259_v0, %v258_v63 }
  0xa5   : >> { %v261_v2 = vrot.slane %v260_v1, 1  ;;  %189 = sbr.rel (!%p187_p7) target bundleno = 63 (0x3f), region = 189 }
  0xa7   : >> { %v262_v3 = vadd.f32 %v261_v2, %v260_v1 }
  0xa9   : >> { %491 = vst [vmem:[%s689_s9 + $0x20] sm:$0x1] %v262_v3 }
  0xaa LB: >> { %s270_s12 = scalar_lea.vmem [#allocation3], %s614_s11  ;;  %s492_s13 = sshll.u32 %s614_s11, 3  ;;  %s614_s11 = sphi %s703_s11, %s269_s11  }
  0xab   : >> { %v271_v4 = vld [vmem:[%s270_s12] ss:$0 sm:$0xff]  ;;  %s273_s14 = scalar_lea.vmem %s657_s21, %s492_s13 [#allocation1]  ;;  %s269_s11 = sadd.s32 1, %s614_s11  }
  0xac   : >> { %558 = vrcp.f32 %v271_v4  ;;  %v286_v7 = vand.u32 2147483648, %v271_v4  ;;  %vm280_vm8 = vweird.f32 %v271_v4  ;;  %v284_v9 = vand.u32 2147483647, %v271_v4  ;;  %p266_p8 = scmp.ge.s32.totalorder %s269_s11, 5  }
  0xad   : > { %s493_s15 = sshll.u32 (%p266_p8), %s590_s6, 3 }
  0xae   : >> { %v287_v11 = vor.u32 1.1754944e-38, %v286_v7  ;;  %vm285_vm11 = vcmp.eq.f32.partialorder %v284_v9, 8.507059e+37  ;;  %s304_s18 = scalar_lea.vmem (%p266_p8), %s728_s1, %s493_s15 }
  0xb0   : >> { %v274_v13 = vld [vmem:[%s273_s14] sm:$0xff] }
  0xb2   : >> { %v559_v5 = vpop.eup %558 }
  0xb3   : >> { %v276_v6 = vmul.f32 %v559_v5, %v271_v4  ;;  %vm281_vm9 = vweird.f32 %v559_v5 }
  0xb4   : >> { %vm282_vm10 = vmor %vm280_vm8, %vm281_vm9 }
  0xb5   : >> { %v277_v8 = vsub.f32 1.0, %v276_v6 }
  0xb7   : >> { %v278_v10 = vmul.f32 %v559_v5, %v277_v8 }
  0xb9   : >> { %v279_v12 = vadd.f32 %v559_v5, %v278_v10 }
  0xbb   : >> { %v283_v14 = vsel %vm282_vm10, %v559_v5, %v279_v12 }
  0xbc   : >> { %v288_v15 = vsel %vm285_vm11, %v287_v11, %v283_v14  ;;  %268 = sbr.rel (!%p266_p8) target bundleno = 170 (0xaa), region = 200 }
  0xbd   : >> { %v289_v16 = vmul.f32 %v288_v15, %v274_v13 }
  0xbf   : >> { %v291_v17 = vsel %vm280_vm8, %v274_v13, %v289_v16 }
  0xc0   : >> { %292 = vst [vmem:[%s273_s14] sm:$0xff] %v291_v17 }
  0xc7   : > { %v341_v18 = vld [vmem:[%s657_s21] sm:$0xff]  ;;  %v343_v19 = vld [vmem:[%s657_s21 + $0x8] sm:$0xff]  ;;  %v345_v20 = vld [vmem:[%s657_s21 + $0x10] sm:$0xff] }
  0xc8   : > { %342 = vst [vmem:[%s304_s18] sm:$0xff] %v341_v18  ;;  %v347_v21 = vld [vmem:[%s657_s21 + $0x18] sm:$0xff]  ;;  %v349_v22 = vld [vmem:[%s657_s21 + $0x20] sm:$0xff] }
  0xc9   : > { %344 = vst [vmem:[%s304_s18 + $0x20] sm:$0xff] %v343_v19 }
  0xca   : > { %346 = vst [vmem:[%s304_s18 + $0x40] sm:$0xff] %v345_v20 }
  0xcb   : > { %348 = vst [vmem:[%s304_s18 + $0x60] sm:$0xff] %v347_v21 }
  0xcc   : > { %350 = vst [vmem:[%s304_s18 + $0x80] sm:$0xff] %v349_v22 }
  0xcd PF: > { %s7_s8 = sadd.s32 1, %s598_s8   ;;  %s729_s6 = smov %s594_s7 }
  0xce   : > { %p4_p9 = scmp.ge.s32.totalorder %s7_s8, 6   ;;  %s730_s7 = smov %s732_s10 }
  0xd0   :  { %6 = sbr.rel (!%p4_p9) target bundleno = 2 (0x2), region = 211 }

// kernel: custom-call.9
= control target key start
LH: loop header
LB: loop body
LE: loop exit
PB: predicated region body
PF: predicated region fallthrough
CT: control target
= control target key end

     0   :  { %s631_s6 = smov 0   ;;  %s633_s7 = smov 0   ;;  %s729_s0 = inlined_call_operand.vmem [shape: f32[512,1,5,5], index: 0, kind: input, shape index: {}]   ;;  %s730_s1 = inlined_call_operand.vmem [shape: f32[512,1,5,5], index: 1, kind: output, shape index: {}]  }
   0x1   :  { %s635_s8 = smov 0  }
   0x2 LB: > { %s473_s9 = sadd.s32 4294967295, %s601_s8   ;;  %s22_s10 = sadd.s32 1, %s597_s7  ;;  %s601_s8 = sphi %s635_s8, %s7_s8   ;;  %s597_s7 = sphi %s633_s7, %s732_s7   ;;  %s593_s6 = sphi %s631_s6, %s731_s6  }
   0x3   : > { %p23_p0 = scmp.ge.s32.totalorder %s22_s10, 4  ;;  %p475_p1 = scmp.ge.s32.totalorder %s601_s8, 4 }
   0x4   : > { %s49_s11 = sand.u32 (!%p475_p1), 1, %s601_s8   ;;  %s476_s12 = sshll.u32 (!%p475_p1), %s597_s7, 3 }
   0x5   : > { %s734_s10 = smov (%p23_p0, %s22_s10), 0  ;;  %47 = sbr.rel (%p475_p1) target bundleno = 16 (0x10), region = 16 }
   0x6   : > { %s499_s13 = smul.u32 (!%p475_p1), 40, %s49_s11  ;;  %s59_s16 = scalar_lea.vmem (!%p475_p1), %s729_s0, %s476_s12 }
   0x8   : > { %s51_s17 = scalar_lea.vmem (!%p475_p1), [#allocation0], %s499_s13 }
   0xa   : > { %v96_v0 = vld [vmem:[%s59_s16] sm:$0xff] }
   0xb   : > { %v98_v1 = vld [vmem:[%s59_s16 + $0x20] sm:$0xff]  ;;  %97 = vst [vmem:[%s51_s17] sm:$0xff] %v96_v0 }
   0xc   : > { %v100_v2 = vld [vmem:[%s59_s16 + $0x40] sm:$0xff]  ;;  %99 = vst [vmem:[%s51_s17 + $0x8] sm:$0xff] %v98_v1 }
   0xd   : > { %v102_v3 = vld [vmem:[%s59_s16 + $0x60] sm:$0xff]  ;;  %101 = vst [vmem:[%s51_s17 + $0x10] sm:$0xff] %v100_v2 }
   0xe   : > { %v104_v4 = vld [vmem:[%s59_s16 + $0x80] sm:$0xff]  ;;  %103 = vst [vmem:[%s51_s17 + $0x18] sm:$0xff] %v102_v3 }
   0xf   : > { %105 = vst [vmem:[%s51_s17 + $0x20] sm:$0xff] %v104_v4 }
  0x10 PF: > { %p477_p2 = scmp.ge.s32.totalorder %s601_s8, 1  ;;  %p110_p3 = scmp.lt.s32.totalorder %s601_s8, 5 }
  0x12   : > { %p111_p4 = pnand %p477_p2, %p110_p3 }
  0x14   : > { %114 = sbr.rel (%p111_p4) target bundleno = 205 (0xcd), region = 54 }
  0x19   : > { %s117_s18 = sand.u32 1, %s473_s9   ;;  %s662_s22 = smov 0  }
  0x1a   : > { %s500_s19 = smul.u32 40, %s117_s18 }
  0x1c   : > { %s658_s20 = scalar_lea.vmem [#allocation0], %s500_s19  ;;  %s660_s21 = scalar_lea.vmem [#allocation1], %s500_s19 }
  0x1d LB: >> { %s668_s23 = sshll.u32 %s605_s22, 3  ;;  %s138_s26 = scalar_lea.vmem [#allocation3], %s605_s22  ;;  %v144_v6 = vlaneseq  ;;  %v147_v8 = vstv %s605_s22  ;;  %s605_s22 = sphi %s662_s22, %s133_s22  }
  0x1e   : >> { %s135_s24 = sadd.s32 %s605_s22, %s668_s23  ;;  %s141_s27 = scalar_lea.vmem %s658_s20, %s668_s23 [#allocation0] }
  0x1f   : >> { %s136_s25 = scalar_lea.vmem %s658_s20, %s135_s24 [#allocation0]  ;;  %v145_v7 = vshrl.u32 %v144_v6, 7  ;;  %v143_v14 = vld [vmem:[%s141_s27] sm:$0xff]  ;;  %s142_s28 = scalar_lea.vmem [#allocation2], %s668_s23 }
  0x20   : >> { %v137_v5 = vld [vmem:[%s136_s25] ss:$0 sm:$0xff]  ;;  %s133_s22 = sadd.s32 1, %s605_s22  }
  0x21   : >> { %139 = vst [vmem:[%s138_s26] sm:$0x1] %v137_v5  ;;  %559 = vrcp.f32 %v137_v5  ;;  %vm148_vm0 = vcmp.le.s32.totalorder %v147_v8, %v145_v7  ;;  %vm149_vm1 = vcmp.lt.s32.totalorder %v145_v7, 5  ;;  %v163_v11 = vand.u32 2147483648, %v137_v5  ;;  %p130_p5 = scmp.ge.s32.totalorder %s133_s22, 5  }
  0x22   : >> { %vm157_vm2 = vweird.f32 %v137_v5  ;;  %v161_v13 = vand.u32 2147483647, %v137_v5  ;;  %vm150_vm4 = vmand %vm148_vm0, %vm149_vm1  ;;  %s607_s29 = smov (%p130_p5), 0  }
  0x23   : >> { %v164_v16 = vor.u32 1.1754944e-38, %v163_v11  ;;  %v151_v18 = vsel %vm150_vm4, %v143_v14, 0.0 }
  0x24   : >> { %vm162_vm6 = vcmp.eq.f32.partialorder %v161_v13, 8.507059e+37 }
  0x27   : >> { %v560_v9 = vpop.eup %559 }
  0x28   : >> { %v153_v10 = vmul.f32 %v560_v9, %v137_v5  ;;  %vm158_vm3 = vweird.f32 %v560_v9 }
  0x29   : >> { %vm159_vm5 = vmor %vm157_vm2, %vm158_vm3 }
  0x2a   : >> { %v154_v12 = vsub.f32 1.0, %v153_v10 }
  0x2c   : >> { %v155_v15 = vmul.f32 %v560_v9, %v154_v12 }
  0x2e   : >> { %v156_v17 = vadd.f32 %v560_v9, %v155_v15 }
  0x30   : >> { %v160_v19 = vsel %vm159_vm5, %v560_v9, %v156_v17 }
  0x31   : >> { %v165_v20 = vsel %vm162_vm6, %v164_v16, %v160_v19 }
  0x32   : >> { %v166_v21 = vmul.f32 %v165_v20, %v151_v18  ;;  %132 = sbr.rel (!%p130_p5) target bundleno = 29 (0x1d), region = 168 }
  0x34   : >> { %v167_v22 = vxor.u32 2147483648, %v166_v21 }
  0x36   : >> { %168 = vst [vmem:[%s142_s28] sm:$0xff] %v167_v22 }
  0x37 LB: >> { %v175_v23 = vstv %s609_s29  ;;  %s480_s30 = sshll.u32 %s609_s29, 3  ;;  %v619_v24 = vmov 0.0   ;;  %s174_s29 = sadd.s32 1, %s609_s29   ;;  %s609_s29 = sphi %s607_s29, %s174_s29  }
  0x38   : >> { %vm179_vm7 = vcmp.eq.s32.totalorder %v175_v23, %v145_v7  ;;  %s181_s2 = scalar_lea.vmem %s660_s21, %s480_s30 [#allocation1]  ;;  %p171_p6 = scmp.ge.s32.totalorder %s174_s29, 5  }
  0x39   : >> { %v182_v25 = vsel %vm179_vm7, -1.0, %v619_v24  ;;  %v620_v26 = vmov (%p171_p6), 1.0   ;;  %s683_s3 = smov (%p171_p6), 1  }
  0x3a   : >> { %183 = vst [vmem:[%s181_s2] sm:$0xff] %v182_v25  ;;  %173 = sbr.rel (!%p171_p6) target bundleno = 55 (0x37), region = 179 }
  0x3b   : > { %481 = vst [vmem:[%s660_s21 + $0x24] sm:$0x1] (%p171_p6), %v620_v26 }
  0x3f LB: >> { %s192_s4 = ssub.s32 4, %s613_s3  ;;  %s191_s3 = sadd.s32 1, %s613_s3   ;;  %s613_s3 = sphi %s683_s3, %s191_s3  }
  0x40   : >> { %s482_s5 = sshll.u32 %s192_s4, 3  ;;  %s691_s11 = scalar_lea.vmem %s660_s21, %s192_s4 [#allocation1] }
  0x41   : >> { %v196_v27 = vld [vmem:[%s660_s21] sm:$0xff]  ;;  %s194_s9 = scalar_lea.vmem [#allocation2], %s482_s5  ;;  %p188_p7 = scmp.ge.s32.totalorder %s191_s3, 5  }
  0x42   : >> { %v195_v28 = vld [vmem:[%s194_s9] sm:$0xff]  ;;  %s705_s12 = smov (%p188_p7), 0  }
  0x43   : >> { %v197_v29 = vmul.f32 %v196_v27, %v195_v28 }
  0x45   : >> { %v199_v30 = vrot.slane %v197_v29, 4 }
  0x47   : >> { %v200_v31 = vadd.f32 %v199_v30, %v197_v29 }
  0x49   : >> { %v201_v32 = vrot.slane %v200_v31, 2 }
  0x4b   : >> { %v202_v33 = vadd.f32 %v201_v32, %v200_v31 }
  0x4d   : >> { %v203_v34 = vrot.slane %v202_v33, 1 }
  0x4f   : >> { %v204_v35 = vadd.f32 %v203_v34, %v202_v33 }
  0x51   : >> { %205 = vst [vmem:[%s691_s11] sm:$0x1] %v204_v35 }
  0x58   : >> { %v484_v36 = vld [vmem:[%s660_s21 + $0x8] sm:$0xff] }
  0x59   : >> { %v211_v37 = vmul.f32 %v484_v36, %v195_v28 }
  0x5b   : >> { %v214_v38 = vrot.slane %v211_v37, 4 }
  0x5d   : >> { %v215_v39 = vadd.f32 %v214_v38, %v211_v37 }
  0x5f   : >> { %v216_v40 = vrot.slane %v215_v39, 2 }
  0x61   : >> { %v217_v41 = vadd.f32 %v216_v40, %v215_v39 }
  0x63   : >> { %v218_v42 = vrot.slane %v217_v41, 1 }
  0x65   : >> { %v219_v43 = vadd.f32 %v218_v42, %v217_v41 }
  0x67   : >> { %485 = vst [vmem:[%s691_s11 + $0x8] sm:$0x1] %v219_v43 }
  0x6e   : >> { %v487_v44 = vld [vmem:[%s660_s21 + $0x10] sm:$0xff] }
  0x6f   : >> { %v226_v45 = vmul.f32 %v487_v44, %v195_v28 }
  0x71   : >> { %v229_v46 = vrot.slane %v226_v45, 4 }
  0x73   : >> { %v230_v47 = vadd.f32 %v229_v46, %v226_v45 }
  0x75   : >> { %v231_v48 = vrot.slane %v230_v47, 2 }
  0x77   : >> { %v232_v49 = vadd.f32 %v231_v48, %v230_v47 }
  0x79   : >> { %v233_v50 = vrot.slane %v232_v49, 1 }
  0x7b   : >> { %v234_v51 = vadd.f32 %v233_v50, %v232_v49 }
  0x7d   : >> { %488 = vst [vmem:[%s691_s11 + $0x10] sm:$0x1] %v234_v51 }
  0x84   : >> { %v490_v52 = vld [vmem:[%s660_s21 + $0x18] sm:$0xff] }
  0x85   : >> { %v241_v53 = vmul.f32 %v490_v52, %v195_v28 }
  0x87   : >> { %v244_v54 = vrot.slane %v241_v53, 4 }
  0x89   : >> { %v245_v55 = vadd.f32 %v244_v54, %v241_v53 }
  0x8b   : >> { %v246_v56 = vrot.slane %v245_v55, 2 }
  0x8d   : >> { %v247_v57 = vadd.f32 %v246_v56, %v245_v55 }
  0x8f   : >> { %v248_v58 = vrot.slane %v247_v57, 1 }
  0x91   : >> { %v249_v59 = vadd.f32 %v248_v58, %v247_v57 }
  0x93   : >> { %491 = vst [vmem:[%s691_s11 + $0x18] sm:$0x1] %v249_v59 }
  0x9a   : >> { %v493_v60 = vld [vmem:[%s660_s21 + $0x20] sm:$0xff] }
  0x9b   : >> { %v256_v61 = vmul.f32 %v493_v60, %v195_v28 }
  0x9d   : >> { %v259_v62 = vrot.slane %v256_v61, 4 }
  0x9f   : >> { %v260_v63 = vadd.f32 %v259_v62, %v256_v61 }
  0xa1   : >> { %v261_v0 = vrot.slane %v260_v63, 2 }
  0xa3   : >> { %v262_v1 = vadd.f32 %v261_v0, %v260_v63 }
  0xa5   : >> { %v263_v2 = vrot.slane %v262_v1, 1  ;;  %190 = sbr.rel (!%p188_p7) target bundleno = 63 (0x3f), region = 190 }
  0xa7   : >> { %v264_v3 = vadd.f32 %v263_v2, %v262_v1 }
  0xa9   : >> { %494 = vst [vmem:[%s691_s11 + $0x20] sm:$0x1] %v264_v3 }
  0xaa LB: >> { %s272_s13 = scalar_lea.vmem [#allocation3], %s617_s12  ;;  %s495_s14 = sshll.u32 %s617_s12, 3  ;;  %s617_s12 = sphi %s705_s12, %s271_s12  }
  0xab   : >> { %v273_v4 = vld [vmem:[%s272_s13] ss:$0 sm:$0xff]  ;;  %s275_s15 = scalar_lea.vmem %s660_s21, %s495_s14 [#allocation1]  ;;  %s271_s12 = sadd.s32 1, %s617_s12  }
  0xac   : >> { %561 = vrcp.f32 %v273_v4  ;;  %v288_v7 = vand.u32 2147483648, %v273_v4  ;;  %vm282_vm8 = vweird.f32 %v273_v4  ;;  %v286_v9 = vand.u32 2147483647, %v273_v4  ;;  %p268_p8 = scmp.ge.s32.totalorder %s271_s12, 5  }
  0xad   : > { %s496_s16 = sshll.u32 (%p268_p8), %s593_s6, 3 }
  0xae   : >> { %v289_v11 = vor.u32 1.1754944e-38, %v288_v7  ;;  %vm287_vm11 = vcmp.eq.f32.partialorder %v286_v9, 8.507059e+37  ;;  %s306_s19 = scalar_lea.vmem (%p268_p8), %s730_s1, %s496_s16 }
  0xb0   : >> { %v276_v13 = vld [vmem:[%s275_s15] sm:$0xff] }
  0xb2   : >> { %v562_v5 = vpop.eup %561 }
  0xb3   : >> { %v278_v6 = vmul.f32 %v562_v5, %v273_v4  ;;  %vm283_vm9 = vweird.f32 %v562_v5 }
  0xb4   : >> { %vm284_vm10 = vmor %vm282_vm8, %vm283_vm9 }
  0xb5   : >> { %v279_v8 = vsub.f32 1.0, %v278_v6 }
  0xb7   : >> { %v280_v10 = vmul.f32 %v562_v5, %v279_v8 }
  0xb9   : >> { %v281_v12 = vadd.f32 %v562_v5, %v280_v10 }
  0xbb   : >> { %v285_v14 = vsel %vm284_vm10, %v562_v5, %v281_v12 }
  0xbc   : >> { %v290_v15 = vsel %vm287_vm11, %v289_v11, %v285_v14  ;;  %270 = sbr.rel (!%p268_p8) target bundleno = 170 (0xaa), region = 201 }
  0xbd   : >> { %v291_v16 = vmul.f32 %v290_v15, %v276_v13 }
  0xbf   : >> { %v293_v17 = vsel %vm282_vm8, %v276_v13, %v291_v16 }
  0xc0   : >> { %294 = vst [vmem:[%s275_s15] sm:$0xff] %v293_v17 }
  0xc7   : > { %v343_v18 = vld [vmem:[%s660_s21] sm:$0xff]  ;;  %v345_v19 = vld [vmem:[%s660_s21 + $0x8] sm:$0xff]  ;;  %v347_v20 = vld [vmem:[%s660_s21 + $0x10] sm:$0xff] }
  0xc8   : > { %344 = vst [vmem:[%s306_s19] sm:$0xff] %v343_v18  ;;  %v349_v21 = vld [vmem:[%s660_s21 + $0x18] sm:$0xff]  ;;  %v351_v22 = vld [vmem:[%s660_s21 + $0x20] sm:$0xff] }
  0xc9   : > { %346 = vst [vmem:[%s306_s19 + $0x20] sm:$0xff] %v345_v19 }
  0xca   : > { %348 = vst [vmem:[%s306_s19 + $0x40] sm:$0xff] %v347_v20 }
  0xcb   : > { %350 = vst [vmem:[%s306_s19 + $0x60] sm:$0xff] %v349_v21 }
  0xcc   : > { %352 = vst [vmem:[%s306_s19 + $0x80] sm:$0xff] %v351_v22 }
  0xcd PF: > { %s7_s8 = sadd.s32 1, %s601_s8   ;;  %s731_s6 = smov %s597_s7 }
  0xce   : > { %p4_p9 = scmp.ge.s32.totalorder %s7_s8, 6   ;;  %s732_s7 = smov %s734_s10 }
  0xd0   :  { %6 = sbr.rel (!%p4_p9) target bundleno = 2 (0x2), region = 212 }

</bundles_post_ra>
